<compile_context>
chip_gen: v7x
topology: tpu7x:2x2x1
jax: 0.10.0
libtpu: 0.0.40
codegen_flags: <defaults>
</compile_context>

<pallas_src>
import functools

import jax
import jax.numpy as jnp
from jax.experimental import pallas as pl
from jax.experimental.pallas import tpu as pltpu

K = 14                 # Conv1d kernel size (all three convs)
POOL_K, POOL_S = 4, 2  # MaxPool1d(kernel_size=4, stride=2)
BN_EPS = 1e-5
OUT_PAD = 128          # lane-dense output slab width


# ----------------------------------------------------------------------------
# In-kernel helpers (traced inside the single fused kernel)
# ----------------------------------------------------------------------------
def _stats(y):
    """Biased mean/var over rows (batch*length) per feature column of a (R, F) value."""
    n = float(y.shape[0])
    mean = jnp.sum(y, axis=0, keepdims=True) / n
    d = y - mean
    var = jnp.sum(d * d, axis=0, keepdims=True) / n
    return mean, var


def _leaky_relu(y):
    return jnp.where(y >= 0, y, 0.01 * y)          # LeakyReLU(negative_slope=0.01)


def _softmax(y):                                    # softmax over the feature (lane) axis
    y = y - jnp.max(y, axis=-1, keepdims=True)
    e = jnp.exp(y)
    return e * pl.reciprocal(jnp.sum(e, axis=-1, keepdims=True), approx=False)


def _conv_bn(cols, w_ref, bn_ref, y_ref):
    """Conv1d (valid, stride 1) as ONE flat 2-D im2col matmul (+bias), then BatchNorm1d.

    cols: (B*Lc, K*Cin) bf16 value   w_ref: (K*Cin, Cout) bf16
    bn_ref: (3, Cout) f32 [conv bias, gamma, beta]   y_ref: (B*Lc, Cout) f32 scratch.
    """
    y = jnp.dot(cols, w_ref[...], preferred_element_type=jnp.float32)
    y = y + bn_ref[0:1, :]
    mean, var = _stats(y)
    y_ref[...] = (y - mean) * (bn_ref[1:2, :] * jax.lax.rsqrt(var + BN_EPS)) + bn_ref[2:3, :]


def _pool_batch(y_ref, base, lp):
    """MaxPool1d(4, stride 2) over rows [base, base+lc) of a flat (B*lc, C) ref using
    strided sublane reads, then LeakyReLU.  Returns a (lp, C) f32 value."""
    if lp == 1:
        m = jnp.max(y_ref[pl.ds(base, POOL_K), :], axis=0, keepdims=True)
    else:
        m = y_ref[pl.ds(base, lp, stride=POOL_S), :]
        for k in range(1, POOL_K):
            m = jnp.maximum(m, y_ref[pl.ds(base + k, lp, stride=POOL_S), :])
    return _leaky_relu(m)


def _dense(h, w_ref, bn_ref):
    """Linear (+bias) -> BatchNorm1d (batch stats) -> LeakyReLU on a (B, Fin) f32 value."""
    y = jnp.dot(h.astype(jnp.bfloat16), w_ref[...], preferred_element_type=jnp.float32)
    y = y + bn_ref[0:1, :]
    mean, var = _stats(y)
    y = (y - mean) * (bn_ref[1:2, :] * jax.lax.rsqrt(var + BN_EPS)) + bn_ref[2:3, :]
    return _leaky_relu(y)


# ----------------------------------------------------------------------------
# The single fused kernel: full DANN forward
# ----------------------------------------------------------------------------
def dann_kernel(cols1_ref,
                cw1_ref, cp1_ref, cw2_ref, cp2_ref, cw3_ref, cp3_ref,
                w1_ref, p1_ref, w2_ref, p2_ref, wd3_ref, pd3_ref,
                o_ref,
                y1s, cols2, y2s, cols3, y3s, hid,
                *, num_class, batch):
    lc1 = y1s.shape[0] // batch
    lc2 = y2s.shape[0] // batch
    lc3 = y3s.shape[0] // batch
    lp1 = (lc1 - POOL_K) // POOL_S + 1
    lp2 = (lc2 - POOL_K) // POOL_S + 1
    c1, c2 = y1s.shape[1], y2s.shape[1]

    # ---- Featurizer block 1: Conv1d -> BN -> MaxPool(4,2) -> LeakyReLU ----
    _conv_bn(cols1_ref[...], cw1_ref, cp1_ref, y1s)
    for b in range(batch):
        h = _pool_batch(y1s, b * lc1, lp1)                       # (lp1, 16) f32 value
        for k in range(K):                                       # im2col of next conv, bf16
            cols2[b * lc2:(b + 1) * lc2, k * c1:(k + 1) * c1] = \
                h[k:k + lc2, :].astype(jnp.bfloat16)

    # ---- Featurizer block 2 ----
    _conv_bn(cols2[...], cw2_ref, cp2_ref, y2s)
    for b in range(batch):
        h = _pool_batch(y2s, b * lc2, lp2)                       # (lp2, 32)
        for k in range(K):
            cols3[b * lc3:(b + 1) * lc3, k * c2:(k + 1) * c2] = \
                h[k:k + lc3, :].astype(jnp.bfloat16)

    # ---- Featurizer block 3 (pooled length == 1 -> Flatten is a no-op) ----
    _conv_bn(cols3[...], cw3_ref, cp3_ref, y3s)
    for b in range(batch):
        hid[b:b + 1, :] = _pool_batch(y3s, b * lc3, 1)           # (1, 64)
    hidden = hid[...]                                            # (B, 64)

    # ---- Heads ----
    # TODO(synk): GradientReverseLayer only flips gradients in backward; forward is identity.
    # Stage 1: classifier & discriminator Linear(64->128)+BN fused along features.
    y1 = _dense(hidden, w1_ref, p1_ref)                          # (B, 256)
    # Stage 2: block-diagonal fusion of Linear(128->num_class) and Linear(128->64).
    y2 = _dense(y1, w2_ref, p2_ref)                              # (B, num_class + 64)
    label = _softmax(y2[:, 0:num_class])                         # (B, num_class)
    domain = _softmax(_dense(y2[:, num_class:num_class + 64], wd3_ref, pd3_ref))  # (B, 2)

    # Lane-dense 128-wide output slab: [label | domain | zero pad]
    o_ref[...] = jnp.zeros_like(o_ref)
    o_ref[:, 0:num_class] = label
    o_ref[:, num_class:num_class + 2] = domain


# ----------------------------------------------------------------------------
# Wrapper: parameter re-layout + single pallas_call
# ----------------------------------------------------------------------------
def dann_forward(params, x, num_class):
    B, T, N, _ = x.shape
    # x[..., 0] in (B, T, N) is exactly the NCW conv input read channel-last -> no transpose.
    x_btn = x[..., 0].astype(jnp.float32)

    lc1 = T - K + 1;   lp1 = (lc1 - POOL_K) // POOL_S + 1
    lc2 = lp1 - K + 1; lp2 = (lc2 - POOL_K) // POOL_S + 1
    lc3 = lp2 - K + 1; lp3 = (lc3 - POOL_K) // POOL_S + 1
    assert lp3 == 1, "featurizer output must flatten to 64 features (Linear(in_features=64))"

    # Precompute block-1 im2col in XLA (kills the kernel's store-bound prologue; ~22 KB DMA).
    cols1 = jnp.concatenate([x_btn[:, k:k + lc1, :] for k in range(K)], axis=-1)
    cols1 = cols1.reshape(B * lc1, K * N).astype(jnp.bfloat16)

    def conv_w(w):   # torch Conv1d weight (Cout, Cin, K) -> im2col layout (K*Cin, Cout), bf16
        co, ci, kk = w.shape
        return jnp.transpose(w, (2, 1, 0)).reshape(kk * ci, co).astype(jnp.bfloat16)

    def lin_w(w):    # torch Linear weight (Fout, Fin) -> (Fin, Fout), bf16
        return jnp.transpose(w).astype(jnp.bfloat16)

    def bn3(bias, gamma, beta):   # pack per-layer [bias, gamma, beta] as one (3, F) f32 array
        return jnp.stack([bias, gamma, beta], axis=0).astype(jnp.float32)

    p = params
    cw1, cp1 = conv_w(p["c1_w"]), bn3(p["c1_b"], p["bn1_g"], p["bn1_b"])
    cw2, cp2 = conv_w(p["c2_w"]), bn3(p["c2_b"], p["bn2_g"], p["bn2_b"])
    cw3, cp3 = conv_w(p["c3_w"]), bn3(p["c3_b"], p["bn3_g"], p["bn3_b"])

    # Head stage 1: fuse the two Linear(64->128) layers (BN is per-feature -> exact).
    w1 = jnp.concatenate([lin_w(p["cls1_w"]), lin_w(p["d1_w"])], axis=1)            # (64, 256)
    p1 = jnp.concatenate([bn3(p["cls1_b"], p["clsbn1_g"], p["clsbn1_b"]),
                          bn3(p["d1_b"], p["dbn1_g"], p["dbn1_b"])], axis=1)        # (3, 256)
    # Head stage 2: block-diagonal (256, num_class+64) fusion of cls2 (128->nc) & d2 (128->64).
    w2 = jnp.concatenate(
        [jnp.concatenate([jnp.transpose(p["cls2_w"]),
                          jnp.zeros((128, 64), jnp.float32)], axis=1),
         jnp.concatenate([jnp.zeros((128, num_class), jnp.float32),
                          jnp.transpose(p["d2_w"])], axis=1)],
        axis=0).astype(jnp.bfloat16)                                                 # (256, nc+64)
    p2 = jnp.concatenate([bn3(p["cls2_b"], p["clsbn2_g"], p["clsbn2_b"]),
                          bn3(p["d2_b"], p["dbn2_g"], p["dbn2_b"])], axis=1)         # (3, nc+64)
    wd3, pd3 = lin_w(p["d3_w"]), bn3(p["d3_b"], p["dbn3_g"], p["dbn3_b"])

    f32, bf16 = jnp.float32, jnp.bfloat16
    scratch = [
        pltpu.VMEM((B * lc1, 16), f32),        # conv1 post-BN output (flat rows)
        pltpu.VMEM((B * lc2, K * 16), bf16),   # im2col columns for conv2 (bf16 directly)
        pltpu.VMEM((B * lc2, 32), f32),        # conv2 post-BN output
        pltpu.VMEM((B * lc3, K * 32), bf16),   # im2col columns for conv3
        pltpu.VMEM((B * lc3, 64), f32),        # conv3 post-BN output
        pltpu.VMEM((B, 64), f32),              # flattened featurizer output
    ]

    vmem = pl.BlockSpec(memory_space=pltpu.MemorySpace.VMEM)
    out = pl.pallas_call(
        functools.partial(dann_kernel, num_class=num_class, batch=B),
        out_shape=jax.ShapeDtypeStruct((B, OUT_PAD), jnp.float32),
        in_specs=[vmem] * 13,
        out_specs=vmem,
        scratch_shapes=scratch,
    )(cols1, cw1, cp1, cw2, cp2, cw3, cp3, w1, p1, w2, p2, wd3, pd3)

    return out[:, :num_class], out[:, num_class:num_class + 2]


# ----------------------------------------------------------------------------
# Deterministic parameter initialization (PyTorch layouts from the module __init__)
# ----------------------------------------------------------------------------
def init_params(key, N, num_class):
    keys = iter(jax.random.split(key, 40))

    def rnd(shape, scale=0.1):
        return scale * jax.random.normal(next(keys), shape, jnp.float32)

    p = {}
    # Conv1d weights in PyTorch layout (Cout, Cin, K)
    p["c1_w"], p["c1_b"] = rnd((16, N, K)), rnd((16,))
    p["bn1_g"], p["bn1_b"] = 1.0 + rnd((16,)), rnd((16,))
    p["c2_w"], p["c2_b"] = rnd((32, 16, K)), rnd((32,))
    p["bn2_g"], p["bn2_b"] = 1.0 + rnd((32,)), rnd((32,))
    p["c3_w"], p["c3_b"] = rnd((64, 32, K)), rnd((64,))
    p["bn3_g"], p["bn3_b"] = 1.0 + rnd((64,)), rnd((64,))
    # Classifier (Linear weights in PyTorch layout (Fout, Fin))
    p["cls1_w"], p["cls1_b"] = rnd((128, 64)), rnd((128,))
    p["clsbn1_g"], p["clsbn1_b"] = 1.0 + rnd((128,)), rnd((128,))
    p["cls2_w"], p["cls2_b"] = rnd((num_class, 128)), rnd((num_class,))
    p["clsbn2_g"], p["clsbn2_b"] = 1.0 + rnd((num_class,)), rnd((num_class,))
    # Discriminator
    p["d1_w"], p["d1_b"] = rnd((128, 64)), rnd((128,))
    p["dbn1_g"], p["dbn1_b"] = 1.0 + rnd((128,)), rnd((128,))
    p["d2_w"], p["d2_b"] = rnd((64, 128)), rnd((64,))
    p["dbn2_g"], p["dbn2_b"] = 1.0 + rnd((64,)), rnd((64,))
    p["d3_w"], p["d3_b"] = rnd((2, 64)), rnd((2,))
    p["dbn3_g"], p["dbn3_b"] = 1.0 + rnd((2,)), rnd((2,))
    return p


if __name__ == "__main__":
    # T=113 makes the featurizer output length exactly 1 -> Flatten gives (B, 64),
    # matching Linear(in_features=64) in both heads.
    B, T, N, D = 2, 113, 4, 1
    num_class = 6

    key = jax.random.PRNGKey(0)
    kx, kp = jax.random.split(key)
    x = jax.random.normal(kx, (B, T, N, D), jnp.float32)
    params = init_params(kp, N, num_class)

    fwd = jax.jit(functools.partial(dann_forward, num_class=num_class))
    label_out, domain_out = fwd(params, x)
    jax.block_until_ready((label_out, domain_out))

    assert label_out.shape == (B, num_class), label_out.shape
    assert domain_out.shape == (B, 2), domain_out.shape
    # Softmax rows must sum to 1.
    assert jnp.allclose(jnp.sum(label_out, axis=1), 1.0, atol=1e-3)
    assert jnp.allclose(jnp.sum(domain_out, axis=1), 1.0, atol=1e-3)
    print("KERNEL_OK")
</pallas_src>

<mosaic_0001>
module attributes {stable_mosaic.version = 11 : i64} {
  func.func @dann_kernel(%arg0: memref<200x56xbf16, #tpu.memory_space<vmem>>, %arg1: memref<56x16xbf16, #tpu.memory_space<vmem>>, %arg2: memref<3x16xf32, #tpu.memory_space<vmem>>, %arg3: memref<224x32xbf16, #tpu.memory_space<vmem>>, %arg4: memref<3x32xf32, #tpu.memory_space<vmem>>, %arg5: memref<448x64xbf16, #tpu.memory_space<vmem>>, %arg6: memref<3x64xf32, #tpu.memory_space<vmem>>, %arg7: memref<64x256xbf16, #tpu.memory_space<vmem>>, %arg8: memref<3x256xf32, #tpu.memory_space<vmem>>, %arg9: memref<256x70xbf16, #tpu.memory_space<vmem>>, %arg10: memref<3x70xf32, #tpu.memory_space<vmem>>, %arg11: memref<64x2xbf16, #tpu.memory_space<vmem>>, %arg12: memref<3x2xf32, #tpu.memory_space<vmem>>, %arg13: memref<2x128xf32, #tpu.memory_space<vmem>>, %arg14: memref<200x16xf32, #tpu.memory_space<vmem>>, %arg15: memref<72x224xbf16, #tpu.memory_space<vmem>>, %arg16: memref<72x32xf32, #tpu.memory_space<vmem>>, %arg17: memref<8x448xbf16, #tpu.memory_space<vmem>>, %arg18: memref<8x64xf32, #tpu.memory_space<vmem>>, %arg19: memref<2x64xf32, #tpu.memory_space<vmem>>) attributes {dimension_semantics = [], scalar_prefetch = 0 : i64, scratch_operands = 6 : i64, tpu.core_type = #tpu.core_type<tc>} {
    %c0 = arith.constant 0 : index
    %c0_0 = arith.constant 0 : index
    %0 = vector.load %arg0[%c0, %c0_0] : memref<200x56xbf16, #tpu.memory_space<vmem>>, vector<200x56xbf16>
    %c0_1 = arith.constant 0 : index
    %c0_2 = arith.constant 0 : index
    %1 = vector.load %arg1[%c0_1, %c0_2] : memref<56x16xbf16, #tpu.memory_space<vmem>>, vector<56x16xbf16>
    %cst = arith.constant dense<0.000000e+00> : vector<200x16xf32>
    %2 = tpu.matmul %0, %1, %cst {dimension_numbers = #tpu.dot_dimension_numbers<[1], [0], [0], [1], [0, 0, 1, 1], [], []>} : vector<200x56xbf16>, vector<56x16xbf16>, vector<200x16xf32> -> vector<200x16xf32>
    %c0_3 = arith.constant 0 : index
    %c0_4 = arith.constant 0 : index
    %3 = vector.load %arg2[%c0_3, %c0_4] : memref<3x16xf32, #tpu.memory_space<vmem>>, vector<1x16xf32>
    %4 = vector.broadcast %3 : vector<1x16xf32> to vector<200x16xf32>
    %5 = arith.addf %2, %4 : vector<200x16xf32>
    %cst_5 = arith.constant dense<0.000000e+00> : vector<16xf32>
    %6 = vector.multi_reduction <add>, %5, %cst_5 [0] : vector<200x16xf32> to vector<16xf32>
    %7 = vector.shape_cast %6 : vector<16xf32> to vector<1x16xf32>
    %cst_6 = arith.constant 2.000000e+02 : f32
    %8 = vector.broadcast %cst_6 : f32 to vector<1x16xf32>
    %9 = arith.divf %7, %8 : vector<1x16xf32>
    %10 = vector.broadcast %9 : vector<1x16xf32> to vector<200x16xf32>
    %11 = arith.subf %5, %10 : vector<200x16xf32>
    %12 = arith.mulf %11, %11 : vector<200x16xf32>
    %cst_7 = arith.constant dense<0.000000e+00> : vector<16xf32>
    %13 = vector.multi_reduction <add>, %12, %cst_7 [0] : vector<200x16xf32> to vector<16xf32>
    %14 = vector.shape_cast %13 : vector<16xf32> to vector<1x16xf32>
    %cst_8 = arith.constant 2.000000e+02 : f32
    %15 = vector.broadcast %cst_8 : f32 to vector<1x16xf32>
    %16 = arith.divf %14, %15 : vector<1x16xf32>
    %17 = vector.broadcast %9 : vector<1x16xf32> to vector<200x16xf32>
    %18 = arith.subf %5, %17 : vector<200x16xf32>
    %c1 = arith.constant 1 : index
    %c0_9 = arith.constant 0 : index
    %19 = vector.load %arg2[%c1, %c0_9] : memref<3x16xf32, #tpu.memory_space<vmem>>, vector<1x16xf32>
    %cst_10 = arith.constant 9.99999974E-6 : f32
    %20 = vector.broadcast %cst_10 : f32 to vector<1x16xf32>
    %21 = arith.addf %16, %20 : vector<1x16xf32>
    %22 = math.rsqrt %21 : vector<1x16xf32>
    %23 = arith.mulf %19, %22 : vector<1x16xf32>
    %24 = vector.broadcast %23 : vector<1x16xf32> to vector<200x16xf32>
    %25 = arith.mulf %18, %24 : vector<200x16xf32>
    %c2 = arith.constant 2 : index
    %c0_11 = arith.constant 0 : index
    %26 = vector.load %arg2[%c2, %c0_11] : memref<3x16xf32, #tpu.memory_space<vmem>>, vector<1x16xf32>
    %27 = vector.broadcast %26 : vector<1x16xf32> to vector<200x16xf32>
    %28 = arith.addf %25, %27 : vector<200x16xf32>
    %c0_12 = arith.constant 0 : index
    %c0_13 = arith.constant 0 : index
    %29 = vector.load %arg14[%c0_12, %c0_13] : memref<200x16xf32, #tpu.memory_space<vmem>>, vector<200x16xf32>
    tpu.vector_store %arg14[%c0_12, %c0_13], %28 {strides = array<i32>} : memref<200x16xf32, #tpu.memory_space<vmem>>, vector<200x16xf32>,
    %c0_14 = arith.constant 0 : index
    %c0_15 = arith.constant 0 : index
    %30 = tpu.strided_load %arg14[%c0_14, %c0_15] {strides = array<i32: 2, 1>} : memref<200x16xf32, #tpu.memory_space<vmem>>, vector<49x16xf32>
    %c1_16 = arith.constant 1 : index
    %c0_17 = arith.constant 0 : index
    %31 = tpu.strided_load %arg14[%c1_16, %c0_17] {strides = array<i32: 2, 1>} : memref<200x16xf32, #tpu.memory_space<vmem>>, vector<49x16xf32>
    %32 = arith.maximumf %30, %31 : vector<49x16xf32>
    %c2_18 = arith.constant 2 : index
    %c0_19 = arith.constant 0 : index
    %33 = tpu.strided_load %arg14[%c2_18, %c0_19] {strides = array<i32: 2, 1>} : memref<200x16xf32, #tpu.memory_space<vmem>>, vector<49x16xf32>
    %34 = arith.maximumf %32, %33 : vector<49x16xf32>
    %c3 = arith.constant 3 : index
    %c0_20 = arith.constant 0 : index
    %35 = tpu.strided_load %arg14[%c3, %c0_20] {strides = array<i32: 2, 1>} : memref<200x16xf32, #tpu.memory_space<vmem>>, vector<49x16xf32>
    %36 = arith.maximumf %34, %35 : vector<49x16xf32>
    %cst_21 = arith.constant 0.000000e+00 : f32
    %37 = vector.broadcast %cst_21 : f32 to vector<49x16xf32>
    %38 = arith.cmpf oge, %36, %37 : vector<49x16xf32>
    %cst_22 = arith.constant 0.00999999977 : f32
    %39 = vector.broadcast %cst_22 : f32 to vector<49x16xf32>
    %40 = arith.mulf %39, %36 : vector<49x16xf32>
    %41 = arith.select %38, %36, %40 : vector<49x16xi1>, vector<49x16xf32>
    %42 = vector.extract_strided_slice %41 {offsets = [0, 0], sizes = [36, 16], strides = [1, 1]} : vector<49x16xf32> to vector<36x16xf32>
    %43 = arith.truncf %42 : vector<36x16xf32> to vector<36x16xbf16>
    %c0_23 = arith.constant 0 : index
    %c0_24 = arith.constant 0 : index
    %44 = vector.load %arg15[%c0_23, %c0_24] : memref<72x224xbf16, #tpu.memory_space<vmem>>, vector<36x16xbf16>
    tpu.vector_store %arg15[%c0_23, %c0_24], %43 {strides = array<i32>} : memref<72x224xbf16, #tpu.memory_space<vmem>>, vector<36x16xbf16>,
    %45 = vector.extract_strided_slice %41 {offsets = [1, 0], sizes = [36, 16], strides = [1, 1]} : vector<49x16xf32> to vector<36x16xf32>
    %46 = arith.truncf %45 : vector<36x16xf32> to vector<36x16xbf16>
    %c0_25 = arith.constant 0 : index
    %c16 = arith.constant 16 : index
    %47 = vector.load %arg15[%c0_25, %c16] : memref<72x224xbf16, #tpu.memory_space<vmem>>, vector<36x16xbf16>
    tpu.vector_store %arg15[%c0_25, %c16], %46 {strides = array<i32>} : memref<72x224xbf16, #tpu.memory_space<vmem>>, vector<36x16xbf16>,
    %48 = vector.extract_strided_slice %41 {offsets = [2, 0], sizes = [36, 16], strides = [1, 1]} : vector<49x16xf32> to vector<36x16xf32>
    %49 = arith.truncf %48 : vector<36x16xf32> to vector<36x16xbf16>
    %c0_26 = arith.constant 0 : index
    %c32 = arith.constant 32 : index
    %50 = vector.load %arg15[%c0_26, %c32] : memref<72x224xbf16, #tpu.memory_space<vmem>>, vector<36x16xbf16>
    tpu.vector_store %arg15[%c0_26, %c32], %49 {strides = array<i32>} : memref<72x224xbf16, #tpu.memory_space<vmem>>, vector<36x16xbf16>,
    %51 = vector.extract_strided_slice %41 {offsets = [3, 0], sizes = [36, 16], strides = [1, 1]} : vector<49x16xf32> to vector<36x16xf32>
    %52 = arith.truncf %51 : vector<36x16xf32> to vector<36x16xbf16>
    %c0_27 = arith.constant 0 : index
    %c48 = arith.constant 48 : index
    %53 = vector.load %arg15[%c0_27, %c48] : memref<72x224xbf16, #tpu.memory_space<vmem>>, vector<36x16xbf16>
    tpu.vector_store %arg15[%c0_27, %c48], %52 {strides = array<i32>} : memref<72x224xbf16, #tpu.memory_space<vmem>>, vector<36x16xbf16>,
    %54 = vector.extract_strided_slice %41 {offsets = [4, 0], sizes = [36, 16], strides = [1, 1]} : vector<49x16xf32> to vector<36x16xf32>
    %55 = arith.truncf %54 : vector<36x16xf32> to vector<36x16xbf16>
    %c0_28 = arith.constant 0 : index
    %c64 = arith.constant 64 : index
    %56 = vector.load %arg15[%c0_28, %c64] : memref<72x224xbf16, #tpu.memory_space<vmem>>, vector<36x16xbf16>
    tpu.vector_store %arg15[%c0_28, %c64], %55 {strides = array<i32>} : memref<72x224xbf16, #tpu.memory_space<vmem>>, vector<36x16xbf16>,
    %57 = vector.extract_strided_slice %41 {offsets = [5, 0], sizes = [36, 16], strides = [1, 1]} : vector<49x16xf32> to vector<36x16xf32>
    %58 = arith.truncf %57 : vector<36x16xf32> to vector<36x16xbf16>
    %c0_29 = arith.constant 0 : index
    %c80 = arith.constant 80 : index
    %59 = vector.load %arg15[%c0_29, %c80] : memref<72x224xbf16, #tpu.memory_space<vmem>>, vector<36x16xbf16>
    tpu.vector_store %arg15[%c0_29, %c80], %58 {strides = array<i32>} : memref<72x224xbf16, #tpu.memory_space<vmem>>, vector<36x16xbf16>,
    %60 = vector.extract_strided_slice %41 {offsets = [6, 0], sizes = [36, 16], strides = [1, 1]} : vector<49x16xf32> to vector<36x16xf32>
    %61 = arith.truncf %60 : vector<36x16xf32> to vector<36x16xbf16>
    %c0_30 = arith.constant 0 : index
    %c96 = arith.constant 96 : index
    %62 = vector.load %arg15[%c0_30, %c96] : memref<72x224xbf16, #tpu.memory_space<vmem>>, vector<36x16xbf16>
    tpu.vector_store %arg15[%c0_30, %c96], %61 {strides = array<i32>} : memref<72x224xbf16, #tpu.memory_space<vmem>>, vector<36x16xbf16>,
    %63 = vector.extract_strided_slice %41 {offsets = [7, 0], sizes = [36, 16], strides = [1, 1]} : vector<49x16xf32> to vector<36x16xf32>
    %64 = arith.truncf %63 : vector<36x16xf32> to vector<36x16xbf16>
    %c0_31 = arith.constant 0 : index
    %c112 = arith.constant 112 : index
    %65 = vector.load %arg15[%c0_31, %c112] : memref<72x224xbf16, #tpu.memory_space<vmem>>, vector<36x16xbf16>
    tpu.vector_store %arg15[%c0_31, %c112], %64 {strides = array<i32>} : memref<72x224xbf16, #tpu.memory_space<vmem>>, vector<36x16xbf16>,
    %66 = vector.extract_strided_slice %41 {offsets = [8, 0], sizes = [36, 16], strides = [1, 1]} : vector<49x16xf32> to vector<36x16xf32>
    %67 = arith.truncf %66 : vector<36x16xf32> to vector<36x16xbf16>
    %c0_32 = arith.constant 0 : index
    %c128 = arith.constant 128 : index
    %68 = vector.load %arg15[%c0_32, %c128] : memref<72x224xbf16, #tpu.memory_space<vmem>>, vector<36x16xbf16>
    tpu.vector_store %arg15[%c0_32, %c128], %67 {strides = array<i32>} : memref<72x224xbf16, #tpu.memory_space<vmem>>, vector<36x16xbf16>,
    %69 = vector.extract_strided_slice %41 {offsets = [9, 0], sizes = [36, 16], strides = [1, 1]} : vector<49x16xf32> to vector<36x16xf32>
    %70 = arith.truncf %69 : vector<36x16xf32> to vector<36x16xbf16>
    %c0_33 = arith.constant 0 : index
    %c144 = arith.constant 144 : index
    %71 = vector.load %arg15[%c0_33, %c144] : memref<72x224xbf16, #tpu.memory_space<vmem>>, vector<36x16xbf16>
    tpu.vector_store %arg15[%c0_33, %c144], %70 {strides = array<i32>} : memref<72x224xbf16, #tpu.memory_space<vmem>>, vector<36x16xbf16>,
    %72 = vector.extract_strided_slice %41 {offsets = [10, 0], sizes = [36, 16], strides = [1, 1]} : vector<49x16xf32> to vector<36x16xf32>
    %73 = arith.truncf %72 : vector<36x16xf32> to vector<36x16xbf16>
    %c0_34 = arith.constant 0 : index
    %c160 = arith.constant 160 : index
    %74 = vector.load %arg15[%c0_34, %c160] : memref<72x224xbf16, #tpu.memory_space<vmem>>, vector<36x16xbf16>
    tpu.vector_store %arg15[%c0_34, %c160], %73 {strides = array<i32>} : memref<72x224xbf16, #tpu.memory_space<vmem>>, vector<36x16xbf16>,
    %75 = vector.extract_strided_slice %41 {offsets = [11, 0], sizes = [36, 16], strides = [1, 1]} : vector<49x16xf32> to vector<36x16xf32>
    %76 = arith.truncf %75 : vector<36x16xf32> to vector<36x16xbf16>
    %c0_35 = arith.constant 0 : index
    %c176 = arith.constant 176 : index
    %77 = vector.load %arg15[%c0_35, %c176] : memref<72x224xbf16, #tpu.memory_space<vmem>>, vector<36x16xbf16>
    tpu.vector_store %arg15[%c0_35, %c176], %76 {strides = array<i32>} : memref<72x224xbf16, #tpu.memory_space<vmem>>, vector<36x16xbf16>,
    %78 = vector.extract_strided_slice %41 {offsets = [12, 0], sizes = [36, 16], strides = [1, 1]} : vector<49x16xf32> to vector<36x16xf32>
    %79 = arith.truncf %78 : vector<36x16xf32> to vector<36x16xbf16>
    %c0_36 = arith.constant 0 : index
    %c192 = arith.constant 192 : index
    %80 = vector.load %arg15[%c0_36, %c192] : memref<72x224xbf16, #tpu.memory_space<vmem>>, vector<36x16xbf16>
    tpu.vector_store %arg15[%c0_36, %c192], %79 {strides = array<i32>} : memref<72x224xbf16, #tpu.memory_space<vmem>>, vector<36x16xbf16>,
    %81 = vector.extract_strided_slice %41 {offsets = [13, 0], sizes = [36, 16], strides = [1, 1]} : vector<49x16xf32> to vector<36x16xf32>
    %82 = arith.truncf %81 : vector<36x16xf32> to vector<36x16xbf16>
    %c0_37 = arith.constant 0 : index
    %c208 = arith.constant 208 : index
    %83 = vector.load %arg15[%c0_37, %c208] : memref<72x224xbf16, #tpu.memory_space<vmem>>, vector<36x16xbf16>
    tpu.vector_store %arg15[%c0_37, %c208], %82 {strides = array<i32>} : memref<72x224xbf16, #tpu.memory_space<vmem>>, vector<36x16xbf16>,
    %c100 = arith.constant 100 : index
    %c0_38 = arith.constant 0 : index
    %84 = tpu.strided_load %arg14[%c100, %c0_38] {strides = array<i32: 2, 1>} : memref<200x16xf32, #tpu.memory_space<vmem>>, vector<49x16xf32>
    %c101 = arith.constant 101 : index
    %c0_39 = arith.constant 0 : index
    %85 = tpu.strided_load %arg14[%c101, %c0_39] {strides = array<i32: 2, 1>} : memref<200x16xf32, #tpu.memory_space<vmem>>, vector<49x16xf32>
    %86 = arith.maximumf %84, %85 : vector<49x16xf32>
    %c102 = arith.constant 102 : index
    %c0_40 = arith.constant 0 : index
    %87 = tpu.strided_load %arg14[%c102, %c0_40] {strides = array<i32: 2, 1>} : memref<200x16xf32, #tpu.memory_space<vmem>>, vector<49x16xf32>
    %88 = arith.maximumf %86, %87 : vector<49x16xf32>
    %c103 = arith.constant 103 : index
    %c0_41 = arith.constant 0 : index
    %89 = tpu.strided_load %arg14[%c103, %c0_41] {strides = array<i32: 2, 1>} : memref<200x16xf32, #tpu.memory_space<vmem>>, vector<49x16xf32>
    %90 = arith.maximumf %88, %89 : vector<49x16xf32>
    %cst_42 = arith.constant 0.000000e+00 : f32
    %91 = vector.broadcast %cst_42 : f32 to vector<49x16xf32>
    %92 = arith.cmpf oge, %90, %91 : vector<49x16xf32>
    %cst_43 = arith.constant 0.00999999977 : f32
    %93 = vector.broadcast %cst_43 : f32 to vector<49x16xf32>
    %94 = arith.mulf %93, %90 : vector<49x16xf32>
    %95 = arith.select %92, %90, %94 : vector<49x16xi1>, vector<49x16xf32>
    %96 = vector.extract_strided_slice %95 {offsets = [0, 0], sizes = [36, 16], strides = [1, 1]} : vector<49x16xf32> to vector<36x16xf32>
    %97 = arith.truncf %96 : vector<36x16xf32> to vector<36x16xbf16>
    %c36 = arith.constant 36 : index
    %c0_44 = arith.constant 0 : index
    %98 = vector.load %arg15[%c36, %c0_44] : memref<72x224xbf16, #tpu.memory_space<vmem>>, vector<36x16xbf16>
    tpu.vector_store %arg15[%c36, %c0_44], %97 {strides = array<i32>} : memref<72x224xbf16, #tpu.memory_space<vmem>>, vector<36x16xbf16>,
    %99 = vector.extract_strided_slice %95 {offsets = [1, 0], sizes = [36, 16], strides = [1, 1]} : vector<49x16xf32> to vector<36x16xf32>
    %100 = arith.truncf %99 : vector<36x16xf32> to vector<36x16xbf16>
    %c36_45 = arith.constant 36 : index
    %c16_46 = arith.constant 16 : index
    %101 = vector.load %arg15[%c36_45, %c16_46] : memref<72x224xbf16, #tpu.memory_space<vmem>>, vector<36x16xbf16>
    tpu.vector_store %arg15[%c36_45, %c16_46], %100 {strides = array<i32>} : memref<72x224xbf16, #tpu.memory_space<vmem>>, vector<36x16xbf16>,
    %102 = vector.extract_strided_slice %95 {offsets = [2, 0], sizes = [36, 16], strides = [1, 1]} : vector<49x16xf32> to vector<36x16xf32>
    %103 = arith.truncf %102 : vector<36x16xf32> to vector<36x16xbf16>
    %c36_47 = arith.constant 36 : index
    %c32_48 = arith.constant 32 : index
    %104 = vector.load %arg15[%c36_47, %c32_48] : memref<72x224xbf16, #tpu.memory_space<vmem>>, vector<36x16xbf16>
    tpu.vector_store %arg15[%c36_47, %c32_48], %103 {strides = array<i32>} : memref<72x224xbf16, #tpu.memory_space<vmem>>, vector<36x16xbf16>,
    %105 = vector.extract_strided_slice %95 {offsets = [3, 0], sizes = [36, 16], strides = [1, 1]} : vector<49x16xf32> to vector<36x16xf32>
    %106 = arith.truncf %105 : vector<36x16xf32> to vector<36x16xbf16>
    %c36_49 = arith.constant 36 : index
    %c48_50 = arith.constant 48 : index
    %107 = vector.load %arg15[%c36_49, %c48_50] : memref<72x224xbf16, #tpu.memory_space<vmem>>, vector<36x16xbf16>
    tpu.vector_store %arg15[%c36_49, %c48_50], %106 {strides = array<i32>} : memref<72x224xbf16, #tpu.memory_space<vmem>>, vector<36x16xbf16>,
    %108 = vector.extract_strided_slice %95 {offsets = [4, 0], sizes = [36, 16], strides = [1, 1]} : vector<49x16xf32> to vector<36x16xf32>
    %109 = arith.truncf %108 : vector<36x16xf32> to vector<36x16xbf16>
    %c36_51 = arith.constant 36 : index
    %c64_52 = arith.constant 64 : index
    %110 = vector.load %arg15[%c36_51, %c64_52] : memref<72x224xbf16, #tpu.memory_space<vmem>>, vector<36x16xbf16>
    tpu.vector_store %arg15[%c36_51, %c64_52], %109 {strides = array<i32>} : memref<72x224xbf16, #tpu.memory_space<vmem>>, vector<36x16xbf16>,
    %111 = vector.extract_strided_slice %95 {offsets = [5, 0], sizes = [36, 16], strides = [1, 1]} : vector<49x16xf32> to vector<36x16xf32>
    %112 = arith.truncf %111 : vector<36x16xf32> to vector<36x16xbf16>
    %c36_53 = arith.constant 36 : index
    %c80_54 = arith.constant 80 : index
    %113 = vector.load %arg15[%c36_53, %c80_54] : memref<72x224xbf16, #tpu.memory_space<vmem>>, vector<36x16xbf16>
    tpu.vector_store %arg15[%c36_53, %c80_54], %112 {strides = array<i32>} : memref<72x224xbf16, #tpu.memory_space<vmem>>, vector<36x16xbf16>,
    %114 = vector.extract_strided_slice %95 {offsets = [6, 0], sizes = [36, 16], strides = [1, 1]} : vector<49x16xf32> to vector<36x16xf32>
    %115 = arith.truncf %114 : vector<36x16xf32> to vector<36x16xbf16>
    %c36_55 = arith.constant 36 : index
    %c96_56 = arith.constant 96 : index
    %116 = vector.load %arg15[%c36_55, %c96_56] : memref<72x224xbf16, #tpu.memory_space<vmem>>, vector<36x16xbf16>
    tpu.vector_store %arg15[%c36_55, %c96_56], %115 {strides = array<i32>} : memref<72x224xbf16, #tpu.memory_space<vmem>>, vector<36x16xbf16>,
    %117 = vector.extract_strided_slice %95 {offsets = [7, 0], sizes = [36, 16], strides = [1, 1]} : vector<49x16xf32> to vector<36x16xf32>
    %118 = arith.truncf %117 : vector<36x16xf32> to vector<36x16xbf16>
    %c36_57 = arith.constant 36 : index
    %c112_58 = arith.constant 112 : index
    %119 = vector.load %arg15[%c36_57, %c112_58] : memref<72x224xbf16, #tpu.memory_space<vmem>>, vector<36x16xbf16>
    tpu.vector_store %arg15[%c36_57, %c112_58], %118 {strides = array<i32>} : memref<72x224xbf16, #tpu.memory_space<vmem>>, vector<36x16xbf16>,
    %120 = vector.extract_strided_slice %95 {offsets = [8, 0], sizes = [36, 16], strides = [1, 1]} : vector<49x16xf32> to vector<36x16xf32>
    %121 = arith.truncf %120 : vector<36x16xf32> to vector<36x16xbf16>
    %c36_59 = arith.constant 36 : index
    %c128_60 = arith.constant 128 : index
    %122 = vector.load %arg15[%c36_59, %c128_60] : memref<72x224xbf16, #tpu.memory_space<vmem>>, vector<36x16xbf16>
    tpu.vector_store %arg15[%c36_59, %c128_60], %121 {strides = array<i32>} : memref<72x224xbf16, #tpu.memory_space<vmem>>, vector<36x16xbf16>,
    %123 = vector.extract_strided_slice %95 {offsets = [9, 0], sizes = [36, 16], strides = [1, 1]} : vector<49x16xf32> to vector<36x16xf32>
    %124 = arith.truncf %123 : vector<36x16xf32> to vector<36x16xbf16>
    %c36_61 = arith.constant 36 : index
    %c144_62 = arith.constant 144 : index
    %125 = vector.load %arg15[%c36_61, %c144_62] : memref<72x224xbf16, #tpu.memory_space<vmem>>, vector<36x16xbf16>
    tpu.vector_store %arg15[%c36_61, %c144_62], %124 {strides = array<i32>} : memref<72x224xbf16, #tpu.memory_space<vmem>>, vector<36x16xbf16>,
    %126 = vector.extract_strided_slice %95 {offsets = [10, 0], sizes = [36, 16], strides = [1, 1]} : vector<49x16xf32> to vector<36x16xf32>
    %127 = arith.truncf %126 : vector<36x16xf32> to vector<36x16xbf16>
    %c36_63 = arith.constant 36 : index
    %c160_64 = arith.constant 160 : index
    %128 = vector.load %arg15[%c36_63, %c160_64] : memref<72x224xbf16, #tpu.memory_space<vmem>>, vector<36x16xbf16>
    tpu.vector_store %arg15[%c36_63, %c160_64], %127 {strides = array<i32>} : memref<72x224xbf16, #tpu.memory_space<vmem>>, vector<36x16xbf16>,
    %129 = vector.extract_strided_slice %95 {offsets = [11, 0], sizes = [36, 16], strides = [1, 1]} : vector<49x16xf32> to vector<36x16xf32>
    %130 = arith.truncf %129 : vector<36x16xf32> to vector<36x16xbf16>
    %c36_65 = arith.constant 36 : index
    %c176_66 = arith.constant 176 : index
    %131 = vector.load %arg15[%c36_65, %c176_66] : memref<72x224xbf16, #tpu.memory_space<vmem>>, vector<36x16xbf16>
    tpu.vector_store %arg15[%c36_65, %c176_66], %130 {strides = array<i32>} : memref<72x224xbf16, #tpu.memory_space<vmem>>, vector<36x16xbf16>,
    %132 = vector.extract_strided_slice %95 {offsets = [12, 0], sizes = [36, 16], strides = [1, 1]} : vector<49x16xf32> to vector<36x16xf32>
    %133 = arith.truncf %132 : vector<36x16xf32> to vector<36x16xbf16>
    %c36_67 = arith.constant 36 : index
    %c192_68 = arith.constant 192 : index
    %134 = vector.load %arg15[%c36_67, %c192_68] : memref<72x224xbf16, #tpu.memory_space<vmem>>, vector<36x16xbf16>
    tpu.vector_store %arg15[%c36_67, %c192_68], %133 {strides = array<i32>} : memref<72x224xbf16, #tpu.memory_space<vmem>>, vector<36x16xbf16>,
    %135 = vector.extract_strided_slice %95 {offsets = [13, 0], sizes = [36, 16], strides = [1, 1]} : vector<49x16xf32> to vector<36x16xf32>
    %136 = arith.truncf %135 : vector<36x16xf32> to vector<36x16xbf16>
    %c36_69 = arith.constant 36 : index
    %c208_70 = arith.constant 208 : index
    %137 = vector.load %arg15[%c36_69, %c208_70] : memref<72x224xbf16, #tpu.memory_space<vmem>>, vector<36x16xbf16>
    tpu.vector_store %arg15[%c36_69, %c208_70], %136 {strides = array<i32>} : memref<72x224xbf16, #tpu.memory_space<vmem>>, vector<36x16xbf16>,
    %c0_71 = arith.constant 0 : index
    %c0_72 = arith.constant 0 : index
    %138 = vector.load %arg15[%c0_71, %c0_72] : memref<72x224xbf16, #tpu.memory_space<vmem>>, vector<72x224xbf16>
    %c0_73 = arith.constant 0 : index
    %c0_74 = arith.constant 0 : index
    %139 = vector.load %arg3[%c0_73, %c0_74] : memref<224x32xbf16, #tpu.memory_space<vmem>>, vector<224x32xbf16>
    %cst_75 = arith.constant dense<0.000000e+00> : vector<72x32xf32>
    %140 = tpu.matmul %138, %139, %cst_75 {dimension_numbers = #tpu.dot_dimension_numbers<[1], [0], [0], [1], [0, 0, 1, 1], [], []>} : vector<72x224xbf16>, vector<224x32xbf16>, vector<72x32xf32> -> vector<72x32xf32>
    %c0_76 = arith.constant 0 : index
    %c0_77 = arith.constant 0 : index
    %141 = vector.load %arg4[%c0_76, %c0_77] : memref<3x32xf32, #tpu.memory_space<vmem>>, vector<1x32xf32>
    %142 = vector.broadcast %141 : vector<1x32xf32> to vector<72x32xf32>
    %143 = arith.addf %140, %142 : vector<72x32xf32>
    %cst_78 = arith.constant dense<0.000000e+00> : vector<32xf32>
    %144 = vector.multi_reduction <add>, %143, %cst_78 [0] : vector<72x32xf32> to vector<32xf32>
    %145 = vector.shape_cast %144 : vector<32xf32> to vector<1x32xf32>
    %cst_79 = arith.constant 7.200000e+01 : f32
    %146 = vector.broadcast %cst_79 : f32 to vector<1x32xf32>
    %147 = arith.divf %145, %146 : vector<1x32xf32>
    %148 = vector.broadcast %147 : vector<1x32xf32> to vector<72x32xf32>
    %149 = arith.subf %143, %148 : vector<72x32xf32>
    %150 = arith.mulf %149, %149 : vector<72x32xf32>
    %cst_80 = arith.constant dense<0.000000e+00> : vector<32xf32>
    %151 = vector.multi_reduction <add>, %150, %cst_80 [0] : vector<72x32xf32> to vector<32xf32>
    %152 = vector.shape_cast %151 : vector<32xf32> to vector<1x32xf32>
    %cst_81 = arith.constant 7.200000e+01 : f32
    %153 = vector.broadcast %cst_81 : f32 to vector<1x32xf32>
    %154 = arith.divf %152, %153 : vector<1x32xf32>
    %155 = vector.broadcast %147 : vector<1x32xf32> to vector<72x32xf32>
    %156 = arith.subf %143, %155 : vector<72x32xf32>
    %c1_82 = arith.constant 1 : index
    %c0_83 = arith.constant 0 : index
    %157 = vector.load %arg4[%c1_82, %c0_83] : memref<3x32xf32, #tpu.memory_space<vmem>>, vector<1x32xf32>
    %cst_84 = arith.constant 9.99999974E-6 : f32
    %158 = vector.broadcast %cst_84 : f32 to vector<1x32xf32>
    %159 = arith.addf %154, %158 : vector<1x32xf32>
    %160 = math.rsqrt %159 : vector<1x32xf32>
    %161 = arith.mulf %157, %160 : vector<1x32xf32>
    %162 = vector.broadcast %161 : vector<1x32xf32> to vector<72x32xf32>
    %163 = arith.mulf %156, %162 : vector<72x32xf32>
    %c2_85 = arith.constant 2 : index
    %c0_86 = arith.constant 0 : index
    %164 = vector.load %arg4[%c2_85, %c0_86] : memref<3x32xf32, #tpu.memory_space<vmem>>, vector<1x32xf32>
    %165 = vector.broadcast %164 : vector<1x32xf32> to vector<72x32xf32>
    %166 = arith.addf %163, %165 : vector<72x32xf32>
    %c0_87 = arith.constant 0 : index
    %c0_88 = arith.constant 0 : index
    %167 = vector.load %arg16[%c0_87, %c0_88] : memref<72x32xf32, #tpu.memory_space<vmem>>, vector<72x32xf32>
    tpu.vector_store %arg16[%c0_87, %c0_88], %166 {strides = array<i32>} : memref<72x32xf32, #tpu.memory_space<vmem>>, vector<72x32xf32>,
    %c0_89 = arith.constant 0 : index
    %c0_90 = arith.constant 0 : index
    %168 = tpu.strided_load %arg16[%c0_89, %c0_90] {strides = array<i32: 2, 1>} : memref<72x32xf32, #tpu.memory_space<vmem>>, vector<17x32xf32>
    %c1_91 = arith.constant 1 : index
    %c0_92 = arith.constant 0 : index
    %169 = tpu.strided_load %arg16[%c1_91, %c0_92] {strides = array<i32: 2, 1>} : memref<72x32xf32, #tpu.memory_space<vmem>>, vector<17x32xf32>
    %170 = arith.maximumf %168, %169 : vector<17x32xf32>
    %c2_93 = arith.constant 2 : index
    %c0_94 = arith.constant 0 : index
    %171 = tpu.strided_load %arg16[%c2_93, %c0_94] {strides = array<i32: 2, 1>} : memref<72x32xf32, #tpu.memory_space<vmem>>, vector<17x32xf32>
    %172 = arith.maximumf %170, %171 : vector<17x32xf32>
    %c3_95 = arith.constant 3 : index
    %c0_96 = arith.constant 0 : index
    %173 = tpu.strided_load %arg16[%c3_95, %c0_96] {strides = array<i32: 2, 1>} : memref<72x32xf32, #tpu.memory_space<vmem>>, vector<17x32xf32>
    %174 = arith.maximumf %172, %173 : vector<17x32xf32>
    %cst_97 = arith.constant 0.000000e+00 : f32
    %175 = vector.broadcast %cst_97 : f32 to vector<17x32xf32>
    %176 = arith.cmpf oge, %174, %175 : vector<17x32xf32>
    %cst_98 = arith.constant 0.00999999977 : f32
    %177 = vector.broadcast %cst_98 : f32 to vector<17x32xf32>
    %178 = arith.mulf %177, %174 : vector<17x32xf32>
    %179 = arith.select %176, %174, %178 : vector<17x32xi1>, vector<17x32xf32>
    %180 = vector.extract_strided_slice %179 {offsets = [0, 0], sizes = [4, 32], strides = [1, 1]} : vector<17x32xf32> to vector<4x32xf32>
    %181 = arith.truncf %180 : vector<4x32xf32> to vector<4x32xbf16>
    %c0_99 = arith.constant 0 : index
    %c0_100 = arith.constant 0 : index
    %182 = vector.load %arg17[%c0_99, %c0_100] : memref<8x448xbf16, #tpu.memory_space<vmem>>, vector<4x32xbf16>
    tpu.vector_store %arg17[%c0_99, %c0_100], %181 {strides = array<i32>} : memref<8x448xbf16, #tpu.memory_space<vmem>>, vector<4x32xbf16>,
    %183 = vector.extract_strided_slice %179 {offsets = [1, 0], sizes = [4, 32], strides = [1, 1]} : vector<17x32xf32> to vector<4x32xf32>
    %184 = arith.truncf %183 : vector<4x32xf32> to vector<4x32xbf16>
    %c0_101 = arith.constant 0 : index
    %c32_102 = arith.constant 32 : index
    %185 = vector.load %arg17[%c0_101, %c32_102] : memref<8x448xbf16, #tpu.memory_space<vmem>>, vector<4x32xbf16>
    tpu.vector_store %arg17[%c0_101, %c32_102], %184 {strides = array<i32>} : memref<8x448xbf16, #tpu.memory_space<vmem>>, vector<4x32xbf16>,
    %186 = vector.extract_strided_slice %179 {offsets = [2, 0], sizes = [4, 32], strides = [1, 1]} : vector<17x32xf32> to vector<4x32xf32>
    %187 = arith.truncf %186 : vector<4x32xf32> to vector<4x32xbf16>
    %c0_103 = arith.constant 0 : index
    %c64_104 = arith.constant 64 : index
    %188 = vector.load %arg17[%c0_103, %c64_104] : memref<8x448xbf16, #tpu.memory_space<vmem>>, vector<4x32xbf16>
    tpu.vector_store %arg17[%c0_103, %c64_104], %187 {strides = array<i32>} : memref<8x448xbf16, #tpu.memory_space<vmem>>, vector<4x32xbf16>,
    %189 = vector.extract_strided_slice %179 {offsets = [3, 0], sizes = [4, 32], strides = [1, 1]} : vector<17x32xf32> to vector<4x32xf32>
    %190 = arith.truncf %189 : vector<4x32xf32> to vector<4x32xbf16>
    %c0_105 = arith.constant 0 : index
    %c96_106 = arith.constant 96 : index
    %191 = vector.load %arg17[%c0_105, %c96_106] : memref<8x448xbf16, #tpu.memory_space<vmem>>, vector<4x32xbf16>
    tpu.vector_store %arg17[%c0_105, %c96_106], %190 {strides = array<i32>} : memref<8x448xbf16, #tpu.memory_space<vmem>>, vector<4x32xbf16>,
    %192 = vector.extract_strided_slice %179 {offsets = [4, 0], sizes = [4, 32], strides = [1, 1]} : vector<17x32xf32> to vector<4x32xf32>
    %193 = arith.truncf %192 : vector<4x32xf32> to vector<4x32xbf16>
    %c0_107 = arith.constant 0 : index
    %c128_108 = arith.constant 128 : index
    %194 = vector.load %arg17[%c0_107, %c128_108] : memref<8x448xbf16, #tpu.memory_space<vmem>>, vector<4x32xbf16>
    tpu.vector_store %arg17[%c0_107, %c128_108], %193 {strides = array<i32>} : memref<8x448xbf16, #tpu.memory_space<vmem>>, vector<4x32xbf16>,
    %195 = vector.extract_strided_slice %179 {offsets = [5, 0], sizes = [4, 32], strides = [1, 1]} : vector<17x32xf32> to vector<4x32xf32>
    %196 = arith.truncf %195 : vector<4x32xf32> to vector<4x32xbf16>
    %c0_109 = arith.constant 0 : index
    %c160_110 = arith.constant 160 : index
    %197 = vector.load %arg17[%c0_109, %c160_110] : memref<8x448xbf16, #tpu.memory_space<vmem>>, vector<4x32xbf16>
    tpu.vector_store %arg17[%c0_109, %c160_110], %196 {strides = array<i32>} : memref<8x448xbf16, #tpu.memory_space<vmem>>, vector<4x32xbf16>,
    %198 = vector.extract_strided_slice %179 {offsets = [6, 0], sizes = [4, 32], strides = [1, 1]} : vector<17x32xf32> to vector<4x32xf32>
    %199 = arith.truncf %198 : vector<4x32xf32> to vector<4x32xbf16>
    %c0_111 = arith.constant 0 : index
    %c192_112 = arith.constant 192 : index
    %200 = vector.load %arg17[%c0_111, %c192_112] : memref<8x448xbf16, #tpu.memory_space<vmem>>, vector<4x32xbf16>
    tpu.vector_store %arg17[%c0_111, %c192_112], %199 {strides = array<i32>} : memref<8x448xbf16, #tpu.memory_space<vmem>>, vector<4x32xbf16>,
    %201 = vector.extract_strided_slice %179 {offsets = [7, 0], sizes = [4, 32], strides = [1, 1]} : vector<17x32xf32> to vector<4x32xf32>
    %202 = arith.truncf %201 : vector<4x32xf32> to vector<4x32xbf16>
    %c0_113 = arith.constant 0 : index
    %c224 = arith.constant 224 : index
    %203 = vector.load %arg17[%c0_113, %c224] : memref<8x448xbf16, #tpu.memory_space<vmem>>, vector<4x32xbf16>
    tpu.vector_store %arg17[%c0_113, %c224], %202 {strides = array<i32>} : memref<8x448xbf16, #tpu.memory_space<vmem>>, vector<4x32xbf16>,
    %204 = vector.extract_strided_slice %179 {offsets = [8, 0], sizes = [4, 32], strides = [1, 1]} : vector<17x32xf32> to vector<4x32xf32>
    %205 = arith.truncf %204 : vector<4x32xf32> to vector<4x32xbf16>
    %c0_114 = arith.constant 0 : index
    %c256 = arith.constant 256 : index
    %206 = vector.load %arg17[%c0_114, %c256] : memref<8x448xbf16, #tpu.memory_space<vmem>>, vector<4x32xbf16>
    tpu.vector_store %arg17[%c0_114, %c256], %205 {strides = array<i32>} : memref<8x448xbf16, #tpu.memory_space<vmem>>, vector<4x32xbf16>,
    %207 = vector.extract_strided_slice %179 {offsets = [9, 0], sizes = [4, 32], strides = [1, 1]} : vector<17x32xf32> to vector<4x32xf32>
    %208 = arith.truncf %207 : vector<4x32xf32> to vector<4x32xbf16>
    %c0_115 = arith.constant 0 : index
    %c288 = arith.constant 288 : index
    %209 = vector.load %arg17[%c0_115, %c288] : memref<8x448xbf16, #tpu.memory_space<vmem>>, vector<4x32xbf16>
    tpu.vector_store %arg17[%c0_115, %c288], %208 {strides = array<i32>} : memref<8x448xbf16, #tpu.memory_space<vmem>>, vector<4x32xbf16>,
    %210 = vector.extract_strided_slice %179 {offsets = [10, 0], sizes = [4, 32], strides = [1, 1]} : vector<17x32xf32> to vector<4x32xf32>
    %211 = arith.truncf %210 : vector<4x32xf32> to vector<4x32xbf16>
    %c0_116 = arith.constant 0 : index
    %c320 = arith.constant 320 : index
    %212 = vector.load %arg17[%c0_116, %c320] : memref<8x448xbf16, #tpu.memory_space<vmem>>, vector<4x32xbf16>
    tpu.vector_store %arg17[%c0_116, %c320], %211 {strides = array<i32>} : memref<8x448xbf16, #tpu.memory_space<vmem>>, vector<4x32xbf16>,
    %213 = vector.extract_strided_slice %179 {offsets = [11, 0], sizes = [4, 32], strides = [1, 1]} : vector<17x32xf32> to vector<4x32xf32>
    %214 = arith.truncf %213 : vector<4x32xf32> to vector<4x32xbf16>
    %c0_117 = arith.constant 0 : index
    %c352 = arith.constant 352 : index
    %215 = vector.load %arg17[%c0_117, %c352] : memref<8x448xbf16, #tpu.memory_space<vmem>>, vector<4x32xbf16>
    tpu.vector_store %arg17[%c0_117, %c352], %214 {strides = array<i32>} : memref<8x448xbf16, #tpu.memory_space<vmem>>, vector<4x32xbf16>,
    %216 = vector.extract_strided_slice %179 {offsets = [12, 0], sizes = [4, 32], strides = [1, 1]} : vector<17x32xf32> to vector<4x32xf32>
    %217 = arith.truncf %216 : vector<4x32xf32> to vector<4x32xbf16>
    %c0_118 = arith.constant 0 : index
    %c384 = arith.constant 384 : index
    %218 = vector.load %arg17[%c0_118, %c384] : memref<8x448xbf16, #tpu.memory_space<vmem>>, vector<4x32xbf16>
    tpu.vector_store %arg17[%c0_118, %c384], %217 {strides = array<i32>} : memref<8x448xbf16, #tpu.memory_space<vmem>>, vector<4x32xbf16>,
    %219 = vector.extract_strided_slice %179 {offsets = [13, 0], sizes = [4, 32], strides = [1, 1]} : vector<17x32xf32> to vector<4x32xf32>
    %220 = arith.truncf %219 : vector<4x32xf32> to vector<4x32xbf16>
    %c0_119 = arith.constant 0 : index
    %c416 = arith.constant 416 : index
    %221 = vector.load %arg17[%c0_119, %c416] : memref<8x448xbf16, #tpu.memory_space<vmem>>, vector<4x32xbf16>
    tpu.vector_store %arg17[%c0_119, %c416], %220 {strides = array<i32>} : memref<8x448xbf16, #tpu.memory_space<vmem>>, vector<4x32xbf16>,
    %c36_120 = arith.constant 36 : index
    %c0_121 = arith.constant 0 : index
    %222 = tpu.strided_load %arg16[%c36_120, %c0_121] {strides = array<i32: 2, 1>} : memref<72x32xf32, #tpu.memory_space<vmem>>, vector<17x32xf32>
    %c37 = arith.constant 37 : index
    %c0_122 = arith.constant 0 : index
    %223 = tpu.strided_load %arg16[%c37, %c0_122] {strides = array<i32: 2, 1>} : memref<72x32xf32, #tpu.memory_space<vmem>>, vector<17x32xf32>
    %224 = arith.maximumf %222, %223 : vector<17x32xf32>
    %c38 = arith.constant 38 : index
    %c0_123 = arith.constant 0 : index
    %225 = tpu.strided_load %arg16[%c38, %c0_123] {strides = array<i32: 2, 1>} : memref<72x32xf32, #tpu.memory_space<vmem>>, vector<17x32xf32>
    %226 = arith.maximumf %224, %225 : vector<17x32xf32>
    %c39 = arith.constant 39 : index
    %c0_124 = arith.constant 0 : index
    %227 = tpu.strided_load %arg16[%c39, %c0_124] {strides = array<i32: 2, 1>} : memref<72x32xf32, #tpu.memory_space<vmem>>, vector<17x32xf32>
    %228 = arith.maximumf %226, %227 : vector<17x32xf32>
    %cst_125 = arith.constant 0.000000e+00 : f32
    %229 = vector.broadcast %cst_125 : f32 to vector<17x32xf32>
    %230 = arith.cmpf oge, %228, %229 : vector<17x32xf32>
    %cst_126 = arith.constant 0.00999999977 : f32
    %231 = vector.broadcast %cst_126 : f32 to vector<17x32xf32>
    %232 = arith.mulf %231, %228 : vector<17x32xf32>
    %233 = arith.select %230, %228, %232 : vector<17x32xi1>, vector<17x32xf32>
    %234 = vector.extract_strided_slice %233 {offsets = [0, 0], sizes = [4, 32], strides = [1, 1]} : vector<17x32xf32> to vector<4x32xf32>
    %235 = arith.truncf %234 : vector<4x32xf32> to vector<4x32xbf16>
    %c4 = arith.constant 4 : index
    %c0_127 = arith.constant 0 : index
    %236 = vector.load %arg17[%c4, %c0_127] : memref<8x448xbf16, #tpu.memory_space<vmem>>, vector<4x32xbf16>
    tpu.vector_store %arg17[%c4, %c0_127], %235 {strides = array<i32>} : memref<8x448xbf16, #tpu.memory_space<vmem>>, vector<4x32xbf16>,
    %237 = vector.extract_strided_slice %233 {offsets = [1, 0], sizes = [4, 32], strides = [1, 1]} : vector<17x32xf32> to vector<4x32xf32>
    %238 = arith.truncf %237 : vector<4x32xf32> to vector<4x32xbf16>
    %c4_128 = arith.constant 4 : index
    %c32_129 = arith.constant 32 : index
    %239 = vector.load %arg17[%c4_128, %c32_129] : memref<8x448xbf16, #tpu.memory_space<vmem>>, vector<4x32xbf16>
    tpu.vector_store %arg17[%c4_128, %c32_129], %238 {strides = array<i32>} : memref<8x448xbf16, #tpu.memory_space<vmem>>, vector<4x32xbf16>,
    %240 = vector.extract_strided_slice %233 {offsets = [2, 0], sizes = [4, 32], strides = [1, 1]} : vector<17x32xf32> to vector<4x32xf32>
    %241 = arith.truncf %240 : vector<4x32xf32> to vector<4x32xbf16>
    %c4_130 = arith.constant 4 : index
    %c64_131 = arith.constant 64 : index
    %242 = vector.load %arg17[%c4_130, %c64_131] : memref<8x448xbf16, #tpu.memory_space<vmem>>, vector<4x32xbf16>
    tpu.vector_store %arg17[%c4_130, %c64_131], %241 {strides = array<i32>} : memref<8x448xbf16, #tpu.memory_space<vmem>>, vector<4x32xbf16>,
    %243 = vector.extract_strided_slice %233 {offsets = [3, 0], sizes = [4, 32], strides = [1, 1]} : vector<17x32xf32> to vector<4x32xf32>
    %244 = arith.truncf %243 : vector<4x32xf32> to vector<4x32xbf16>
    %c4_132 = arith.constant 4 : index
    %c96_133 = arith.constant 96 : index
    %245 = vector.load %arg17[%c4_132, %c96_133] : memref<8x448xbf16, #tpu.memory_space<vmem>>, vector<4x32xbf16>
    tpu.vector_store %arg17[%c4_132, %c96_133], %244 {strides = array<i32>} : memref<8x448xbf16, #tpu.memory_space<vmem>>, vector<4x32xbf16>,
    %246 = vector.extract_strided_slice %233 {offsets = [4, 0], sizes = [4, 32], strides = [1, 1]} : vector<17x32xf32> to vector<4x32xf32>
    %247 = arith.truncf %246 : vector<4x32xf32> to vector<4x32xbf16>
    %c4_134 = arith.constant 4 : index
    %c128_135 = arith.constant 128 : index
    %248 = vector.load %arg17[%c4_134, %c128_135] : memref<8x448xbf16, #tpu.memory_space<vmem>>, vector<4x32xbf16>
    tpu.vector_store %arg17[%c4_134, %c128_135], %247 {strides = array<i32>} : memref<8x448xbf16, #tpu.memory_space<vmem>>, vector<4x32xbf16>,
    %249 = vector.extract_strided_slice %233 {offsets = [5, 0], sizes = [4, 32], strides = [1, 1]} : vector<17x32xf32> to vector<4x32xf32>
    %250 = arith.truncf %249 : vector<4x32xf32> to vector<4x32xbf16>
    %c4_136 = arith.constant 4 : index
    %c160_137 = arith.constant 160 : index
    %251 = vector.load %arg17[%c4_136, %c160_137] : memref<8x448xbf16, #tpu.memory_space<vmem>>, vector<4x32xbf16>
    tpu.vector_store %arg17[%c4_136, %c160_137], %250 {strides = array<i32>} : memref<8x448xbf16, #tpu.memory_space<vmem>>, vector<4x32xbf16>,
    %252 = vector.extract_strided_slice %233 {offsets = [6, 0], sizes = [4, 32], strides = [1, 1]} : vector<17x32xf32> to vector<4x32xf32>
    %253 = arith.truncf %252 : vector<4x32xf32> to vector<4x32xbf16>
    %c4_138 = arith.constant 4 : index
    %c192_139 = arith.constant 192 : index
    %254 = vector.load %arg17[%c4_138, %c192_139] : memref<8x448xbf16, #tpu.memory_space<vmem>>, vector<4x32xbf16>
    tpu.vector_store %arg17[%c4_138, %c192_139], %253 {strides = array<i32>} : memref<8x448xbf16, #tpu.memory_space<vmem>>, vector<4x32xbf16>,
    %255 = vector.extract_strided_slice %233 {offsets = [7, 0], sizes = [4, 32], strides = [1, 1]} : vector<17x32xf32> to vector<4x32xf32>
    %256 = arith.truncf %255 : vector<4x32xf32> to vector<4x32xbf16>
    %c4_140 = arith.constant 4 : index
    %c224_141 = arith.constant 224 : index
    %257 = vector.load %arg17[%c4_140, %c224_141] : memref<8x448xbf16, #tpu.memory_space<vmem>>, vector<4x32xbf16>
    tpu.vector_store %arg17[%c4_140, %c224_141], %256 {strides = array<i32>} : memref<8x448xbf16, #tpu.memory_space<vmem>>, vector<4x32xbf16>,
    %258 = vector.extract_strided_slice %233 {offsets = [8, 0], sizes = [4, 32], strides = [1, 1]} : vector<17x32xf32> to vector<4x32xf32>
    %259 = arith.truncf %258 : vector<4x32xf32> to vector<4x32xbf16>
    %c4_142 = arith.constant 4 : index
    %c256_143 = arith.constant 256 : index
    %260 = vector.load %arg17[%c4_142, %c256_143] : memref<8x448xbf16, #tpu.memory_space<vmem>>, vector<4x32xbf16>
    tpu.vector_store %arg17[%c4_142, %c256_143], %259 {strides = array<i32>} : memref<8x448xbf16, #tpu.memory_space<vmem>>, vector<4x32xbf16>,
    %261 = vector.extract_strided_slice %233 {offsets = [9, 0], sizes = [4, 32], strides = [1, 1]} : vector<17x32xf32> to vector<4x32xf32>
    %262 = arith.truncf %261 : vector<4x32xf32> to vector<4x32xbf16>
    %c4_144 = arith.constant 4 : index
    %c288_145 = arith.constant 288 : index
    %263 = vector.load %arg17[%c4_144, %c288_145] : memref<8x448xbf16, #tpu.memory_space<vmem>>, vector<4x32xbf16>
    tpu.vector_store %arg17[%c4_144, %c288_145], %262 {strides = array<i32>} : memref<8x448xbf16, #tpu.memory_space<vmem>>, vector<4x32xbf16>,
    %264 = vector.extract_strided_slice %233 {offsets = [10, 0], sizes = [4, 32], strides = [1, 1]} : vector<17x32xf32> to vector<4x32xf32>
    %265 = arith.truncf %264 : vector<4x32xf32> to vector<4x32xbf16>
    %c4_146 = arith.constant 4 : index
    %c320_147 = arith.constant 320 : index
    %266 = vector.load %arg17[%c4_146, %c320_147] : memref<8x448xbf16, #tpu.memory_space<vmem>>, vector<4x32xbf16>
    tpu.vector_store %arg17[%c4_146, %c320_147], %265 {strides = array<i32>} : memref<8x448xbf16, #tpu.memory_space<vmem>>, vector<4x32xbf16>,
    %267 = vector.extract_strided_slice %233 {offsets = [11, 0], sizes = [4, 32], strides = [1, 1]} : vector<17x32xf32> to vector<4x32xf32>
    %268 = arith.truncf %267 : vector<4x32xf32> to vector<4x32xbf16>
    %c4_148 = arith.constant 4 : index
    %c352_149 = arith.constant 352 : index
    %269 = vector.load %arg17[%c4_148, %c352_149] : memref<8x448xbf16, #tpu.memory_space<vmem>>, vector<4x32xbf16>
    tpu.vector_store %arg17[%c4_148, %c352_149], %268 {strides = array<i32>} : memref<8x448xbf16, #tpu.memory_space<vmem>>, vector<4x32xbf16>,
    %270 = vector.extract_strided_slice %233 {offsets = [12, 0], sizes = [4, 32], strides = [1, 1]} : vector<17x32xf32> to vector<4x32xf32>
    %271 = arith.truncf %270 : vector<4x32xf32> to vector<4x32xbf16>
    %c4_150 = arith.constant 4 : index
    %c384_151 = arith.constant 384 : index
    %272 = vector.load %arg17[%c4_150, %c384_151] : memref<8x448xbf16, #tpu.memory_space<vmem>>, vector<4x32xbf16>
    tpu.vector_store %arg17[%c4_150, %c384_151], %271 {strides = array<i32>} : memref<8x448xbf16, #tpu.memory_space<vmem>>, vector<4x32xbf16>,
    %273 = vector.extract_strided_slice %233 {offsets = [13, 0], sizes = [4, 32], strides = [1, 1]} : vector<17x32xf32> to vector<4x32xf32>
    %274 = arith.truncf %273 : vector<4x32xf32> to vector<4x32xbf16>
    %c4_152 = arith.constant 4 : index
    %c416_153 = arith.constant 416 : index
    %275 = vector.load %arg17[%c4_152, %c416_153] : memref<8x448xbf16, #tpu.memory_space<vmem>>, vector<4x32xbf16>
    tpu.vector_store %arg17[%c4_152, %c416_153], %274 {strides = array<i32>} : memref<8x448xbf16, #tpu.memory_space<vmem>>, vector<4x32xbf16>,
    %c0_154 = arith.constant 0 : index
    %c0_155 = arith.constant 0 : index
    %276 = vector.load %arg17[%c0_154, %c0_155] : memref<8x448xbf16, #tpu.memory_space<vmem>>, vector<8x448xbf16>
    %c0_156 = arith.constant 0 : index
    %c0_157 = arith.constant 0 : index
    %277 = vector.load %arg5[%c0_156, %c0_157] : memref<448x64xbf16, #tpu.memory_space<vmem>>, vector<448x64xbf16>
    %cst_158 = arith.constant dense<0.000000e+00> : vector<8x64xf32>
    %278 = tpu.matmul %276, %277, %cst_158 {dimension_numbers = #tpu.dot_dimension_numbers<[1], [0], [0], [1], [0, 0, 1, 1], [], []>} : vector<8x448xbf16>, vector<448x64xbf16>, vector<8x64xf32> -> vector<8x64xf32>
    %c0_159 = arith.constant 0 : index
    %c0_160 = arith.constant 0 : index
    %279 = vector.load %arg6[%c0_159, %c0_160] : memref<3x64xf32, #tpu.memory_space<vmem>>, vector<1x64xf32>
    %280 = vector.broadcast %279 : vector<1x64xf32> to vector<8x64xf32>
    %281 = arith.addf %278, %280 : vector<8x64xf32>
    %cst_161 = arith.constant dense<0.000000e+00> : vector<64xf32>
    %282 = vector.multi_reduction <add>, %281, %cst_161 [0] : vector<8x64xf32> to vector<64xf32>
    %283 = vector.shape_cast %282 : vector<64xf32> to vector<1x64xf32>
    %cst_162 = arith.constant 8.000000e+00 : f32
    %284 = vector.broadcast %cst_162 : f32 to vector<1x64xf32>
    %285 = arith.divf %283, %284 : vector<1x64xf32>
    %286 = vector.broadcast %285 : vector<1x64xf32> to vector<8x64xf32>
    %287 = arith.subf %281, %286 : vector<8x64xf32>
    %288 = arith.mulf %287, %287 : vector<8x64xf32>
    %cst_163 = arith.constant dense<0.000000e+00> : vector<64xf32>
    %289 = vector.multi_reduction <add>, %288, %cst_163 [0] : vector<8x64xf32> to vector<64xf32>
    %290 = vector.shape_cast %289 : vector<64xf32> to vector<1x64xf32>
    %cst_164 = arith.constant 8.000000e+00 : f32
    %291 = vector.broadcast %cst_164 : f32 to vector<1x64xf32>
    %292 = arith.divf %290, %291 : vector<1x64xf32>
    %293 = vector.broadcast %285 : vector<1x64xf32> to vector<8x64xf32>
    %294 = arith.subf %281, %293 : vector<8x64xf32>
    %c1_165 = arith.constant 1 : index
    %c0_166 = arith.constant 0 : index
    %295 = vector.load %arg6[%c1_165, %c0_166] : memref<3x64xf32, #tpu.memory_space<vmem>>, vector<1x64xf32>
    %cst_167 = arith.constant 9.99999974E-6 : f32
    %296 = vector.broadcast %cst_167 : f32 to vector<1x64xf32>
    %297 = arith.addf %292, %296 : vector<1x64xf32>
    %298 = math.rsqrt %297 : vector<1x64xf32>
    %299 = arith.mulf %295, %298 : vector<1x64xf32>
    %300 = vector.broadcast %299 : vector<1x64xf32> to vector<8x64xf32>
    %301 = arith.mulf %294, %300 : vector<8x64xf32>
    %c2_168 = arith.constant 2 : index
    %c0_169 = arith.constant 0 : index
    %302 = vector.load %arg6[%c2_168, %c0_169] : memref<3x64xf32, #tpu.memory_space<vmem>>, vector<1x64xf32>
    %303 = vector.broadcast %302 : vector<1x64xf32> to vector<8x64xf32>
    %304 = arith.addf %301, %303 : vector<8x64xf32>
    %c0_170 = arith.constant 0 : index
    %c0_171 = arith.constant 0 : index
    %305 = vector.load %arg18[%c0_170, %c0_171] : memref<8x64xf32, #tpu.memory_space<vmem>>, vector<8x64xf32>
    tpu.vector_store %arg18[%c0_170, %c0_171], %304 {strides = array<i32>} : memref<8x64xf32, #tpu.memory_space<vmem>>, vector<8x64xf32>,
    %c0_172 = arith.constant 0 : index
    %c0_173 = arith.constant 0 : index
    %306 = vector.load %arg18[%c0_172, %c0_173] : memref<8x64xf32, #tpu.memory_space<vmem>>, vector<4x64xf32>
    %cst_174 = arith.constant dense<0xFF800000> : vector<64xf32>
    %307 = vector.multi_reduction <maximumf>, %306, %cst_174 [0] : vector<4x64xf32> to vector<64xf32>
    %308 = vector.shape_cast %307 : vector<64xf32> to vector<1x64xf32>
    %cst_175 = arith.constant 0.000000e+00 : f32
    %309 = vector.broadcast %cst_175 : f32 to vector<1x64xf32>
    %310 = arith.cmpf oge, %308, %309 : vector<1x64xf32>
    %cst_176 = arith.constant 0.00999999977 : f32
    %311 = vector.broadcast %cst_176 : f32 to vector<1x64xf32>
    %312 = arith.mulf %311, %308 : vector<1x64xf32>
    %313 = arith.select %310, %308, %312 : vector<1x64xi1>, vector<1x64xf32>
    %c0_177 = arith.constant 0 : index
    %c0_178 = arith.constant 0 : index
    %314 = vector.load %arg19[%c0_177, %c0_178] : memref<2x64xf32, #tpu.memory_space<vmem>>, vector<1x64xf32>
    tpu.vector_store %arg19[%c0_177, %c0_178], %313 {strides = array<i32>} : memref<2x64xf32, #tpu.memory_space<vmem>>, vector<1x64xf32>,
    %c4_179 = arith.constant 4 : index
    %c0_180 = arith.constant 0 : index
    %315 = vector.load %arg18[%c4_179, %c0_180] : memref<8x64xf32, #tpu.memory_space<vmem>>, vector<4x64xf32>
    %cst_181 = arith.constant dense<0xFF800000> : vector<64xf32>
    %316 = vector.multi_reduction <maximumf>, %315, %cst_181 [0] : vector<4x64xf32> to vector<64xf32>
    %317 = vector.shape_cast %316 : vector<64xf32> to vector<1x64xf32>
    %cst_182 = arith.constant 0.000000e+00 : f32
    %318 = vector.broadcast %cst_182 : f32 to vector<1x64xf32>
    %319 = arith.cmpf oge, %317, %318 : vector<1x64xf32>
    %cst_183 = arith.constant 0.00999999977 : f32
    %320 = vector.broadcast %cst_183 : f32 to vector<1x64xf32>
    %321 = arith.mulf %320, %317 : vector<1x64xf32>
    %322 = arith.select %319, %317, %321 : vector<1x64xi1>, vector<1x64xf32>
    %c1_184 = arith.constant 1 : index
    %c0_185 = arith.constant 0 : index
    %323 = vector.load %arg19[%c1_184, %c0_185] : memref<2x64xf32, #tpu.memory_space<vmem>>, vector<1x64xf32>
    tpu.vector_store %arg19[%c1_184, %c0_185], %322 {strides = array<i32>} : memref<2x64xf32, #tpu.memory_space<vmem>>, vector<1x64xf32>,
    %c0_186 = arith.constant 0 : index
    %c0_187 = arith.constant 0 : index
    %324 = vector.load %arg19[%c0_186, %c0_187] : memref<2x64xf32, #tpu.memory_space<vmem>>, vector<2x64xf32>
    %325 = arith.truncf %324 : vector<2x64xf32> to vector<2x64xbf16>
    %c0_188 = arith.constant 0 : index
    %c0_189 = arith.constant 0 : index
    %326 = vector.load %arg7[%c0_188, %c0_189] : memref<64x256xbf16, #tpu.memory_space<vmem>>, vector<64x256xbf16>
    %cst_190 = arith.constant dense<0.000000e+00> : vector<2x256xf32>
    %327 = tpu.matmul %325, %326, %cst_190 {dimension_numbers = #tpu.dot_dimension_numbers<[1], [0], [0], [1], [0, 0, 1, 1], [], []>} : vector<2x64xbf16>, vector<64x256xbf16>, vector<2x256xf32> -> vector<2x256xf32>
    %c0_191 = arith.constant 0 : index
    %c0_192 = arith.constant 0 : index
    %328 = vector.load %arg8[%c0_191, %c0_192] : memref<3x256xf32, #tpu.memory_space<vmem>>, vector<1x256xf32>
    %329 = vector.broadcast %328 : vector<1x256xf32> to vector<2x256xf32>
    %330 = arith.addf %327, %329 : vector<2x256xf32>
    %cst_193 = arith.constant dense<0.000000e+00> : vector<256xf32>
    %331 = vector.multi_reduction <add>, %330, %cst_193 [0] : vector<2x256xf32> to vector<256xf32>
    %332 = vector.shape_cast %331 : vector<256xf32> to vector<1x256xf32>
    %cst_194 = arith.constant 2.000000e+00 : f32
    %333 = vector.broadcast %cst_194 : f32 to vector<1x256xf32>
    %334 = arith.divf %332, %333 : vector<1x256xf32>
    %335 = vector.broadcast %334 : vector<1x256xf32> to vector<2x256xf32>
    %336 = arith.subf %330, %335 : vector<2x256xf32>
    %337 = arith.mulf %336, %336 : vector<2x256xf32>
    %cst_195 = arith.constant dense<0.000000e+00> : vector<256xf32>
    %338 = vector.multi_reduction <add>, %337, %cst_195 [0] : vector<2x256xf32> to vector<256xf32>
    %339 = vector.shape_cast %338 : vector<256xf32> to vector<1x256xf32>
    %cst_196 = arith.constant 2.000000e+00 : f32
    %340 = vector.broadcast %cst_196 : f32 to vector<1x256xf32>
    %341 = arith.divf %339, %340 : vector<1x256xf32>
    %342 = vector.broadcast %334 : vector<1x256xf32> to vector<2x256xf32>
    %343 = arith.subf %330, %342 : vector<2x256xf32>
    %c1_197 = arith.constant 1 : index
    %c0_198 = arith.constant 0 : index
    %344 = vector.load %arg8[%c1_197, %c0_198] : memref<3x256xf32, #tpu.memory_space<vmem>>, vector<1x256xf32>
    %cst_199 = arith.constant 9.99999974E-6 : f32
    %345 = vector.broadcast %cst_199 : f32 to vector<1x256xf32>
    %346 = arith.addf %341, %345 : vector<1x256xf32>
    %347 = math.rsqrt %346 : vector<1x256xf32>
    %348 = arith.mulf %344, %347 : vector<1x256xf32>
    %349 = vector.broadcast %348 : vector<1x256xf32> to vector<2x256xf32>
    %350 = arith.mulf %343, %349 : vector<2x256xf32>
    %c2_200 = arith.constant 2 : index
    %c0_201 = arith.constant 0 : index
    %351 = vector.load %arg8[%c2_200, %c0_201] : memref<3x256xf32, #tpu.memory_space<vmem>>, vector<1x256xf32>
    %352 = vector.broadcast %351 : vector<1x256xf32> to vector<2x256xf32>
    %353 = arith.addf %350, %352 : vector<2x256xf32>
    %cst_202 = arith.constant 0.000000e+00 : f32
    %354 = vector.broadcast %cst_202 : f32 to vector<2x256xf32>
    %355 = arith.cmpf oge, %353, %354 : vector<2x256xf32>
    %cst_203 = arith.constant 0.00999999977 : f32
    %356 = vector.broadcast %cst_203 : f32 to vector<2x256xf32>
    %357 = arith.mulf %356, %353 : vector<2x256xf32>
    %358 = arith.select %355, %353, %357 : vector<2x256xi1>, vector<2x256xf32>
    %359 = arith.truncf %358 : vector<2x256xf32> to vector<2x256xbf16>
    %c0_204 = arith.constant 0 : index
    %c0_205 = arith.constant 0 : index
    %360 = vector.load %arg9[%c0_204, %c0_205] : memref<256x70xbf16, #tpu.memory_space<vmem>>, vector<256x70xbf16>
    %cst_206 = arith.constant dense<0.000000e+00> : vector<2x70xf32>
    %361 = tpu.matmul %359, %360, %cst_206 {dimension_numbers = #tpu.dot_dimension_numbers<[1], [0], [0], [1], [0, 0, 1, 1], [], []>} : vector<2x256xbf16>, vector<256x70xbf16>, vector<2x70xf32> -> vector<2x70xf32>
    %c0_207 = arith.constant 0 : index
    %c0_208 = arith.constant 0 : index
    %362 = vector.load %arg10[%c0_207, %c0_208] : memref<3x70xf32, #tpu.memory_space<vmem>>, vector<1x70xf32>
    %363 = vector.broadcast %362 : vector<1x70xf32> to vector<2x70xf32>
    %364 = arith.addf %361, %363 : vector<2x70xf32>
    %cst_209 = arith.constant dense<0.000000e+00> : vector<70xf32>
    %365 = vector.multi_reduction <add>, %364, %cst_209 [0] : vector<2x70xf32> to vector<70xf32>
    %366 = vector.shape_cast %365 : vector<70xf32> to vector<1x70xf32>
    %cst_210 = arith.constant 2.000000e+00 : f32
    %367 = vector.broadcast %cst_210 : f32 to vector<1x70xf32>
    %368 = arith.divf %366, %367 : vector<1x70xf32>
    %369 = vector.broadcast %368 : vector<1x70xf32> to vector<2x70xf32>
    %370 = arith.subf %364, %369 : vector<2x70xf32>
    %371 = arith.mulf %370, %370 : vector<2x70xf32>
    %cst_211 = arith.constant dense<0.000000e+00> : vector<70xf32>
    %372 = vector.multi_reduction <add>, %371, %cst_211 [0] : vector<2x70xf32> to vector<70xf32>
    %373 = vector.shape_cast %372 : vector<70xf32> to vector<1x70xf32>
    %cst_212 = arith.constant 2.000000e+00 : f32
    %374 = vector.broadcast %cst_212 : f32 to vector<1x70xf32>
    %375 = arith.divf %373, %374 : vector<1x70xf32>
    %376 = vector.broadcast %368 : vector<1x70xf32> to vector<2x70xf32>
    %377 = arith.subf %364, %376 : vector<2x70xf32>
    %c1_213 = arith.constant 1 : index
    %c0_214 = arith.constant 0 : index
    %378 = vector.load %arg10[%c1_213, %c0_214] : memref<3x70xf32, #tpu.memory_space<vmem>>, vector<1x70xf32>
    %cst_215 = arith.constant 9.99999974E-6 : f32
    %379 = vector.broadcast %cst_215 : f32 to vector<1x70xf32>
    %380 = arith.addf %375, %379 : vector<1x70xf32>
    %381 = math.rsqrt %380 : vector<1x70xf32>
    %382 = arith.mulf %378, %381 : vector<1x70xf32>
    %383 = vector.broadcast %382 : vector<1x70xf32> to vector<2x70xf32>
    %384 = arith.mulf %377, %383 : vector<2x70xf32>
    %c2_216 = arith.constant 2 : index
    %c0_217 = arith.constant 0 : index
    %385 = vector.load %arg10[%c2_216, %c0_217] : memref<3x70xf32, #tpu.memory_space<vmem>>, vector<1x70xf32>
    %386 = vector.broadcast %385 : vector<1x70xf32> to vector<2x70xf32>
    %387 = arith.addf %384, %386 : vector<2x70xf32>
    %cst_218 = arith.constant 0.000000e+00 : f32
    %388 = vector.broadcast %cst_218 : f32 to vector<2x70xf32>
    %389 = arith.cmpf oge, %387, %388 : vector<2x70xf32>
    %cst_219 = arith.constant 0.00999999977 : f32
    %390 = vector.broadcast %cst_219 : f32 to vector<2x70xf32>
    %391 = arith.mulf %390, %387 : vector<2x70xf32>
    %392 = arith.select %389, %387, %391 : vector<2x70xi1>, vector<2x70xf32>
    %393 = vector.extract_strided_slice %392 {offsets = [0, 0], sizes = [2, 6], strides = [1, 1]} : vector<2x70xf32> to vector<2x6xf32>
    %cst_220 = arith.constant dense<0xFF800000> : vector<2xf32>
    %394 = vector.multi_reduction <maximumf>, %393, %cst_220 [1] : vector<2x6xf32> to vector<2xf32>
    %395 = vector.shape_cast %394 : vector<2xf32> to vector<2x1xf32>
    %396 = vector.broadcast %395 : vector<2x1xf32> to vector<2x6xf32>
    %397 = arith.subf %393, %396 : vector<2x6xf32>
    %398 = math.exp %397 : vector<2x6xf32>
    %cst_221 = arith.constant dense<0.000000e+00> : vector<2xf32>
    %399 = vector.multi_reduction <add>, %398, %cst_221 [1] : vector<2x6xf32> to vector<2xf32>
    %400 = vector.shape_cast %399 : vector<2xf32> to vector<2x1xf32>
    %401 = tpu.reciprocal %400 : vector<2x1xf32> -> vector<2x1xf32>
    %402 = vector.broadcast %401 : vector<2x1xf32> to vector<2x6xf32>
    %403 = arith.mulf %398, %402 : vector<2x6xf32>
    %404 = vector.extract_strided_slice %392 {offsets = [0, 6], sizes = [2, 64], strides = [1, 1]} : vector<2x70xf32> to vector<2x64xf32>
    %405 = arith.truncf %404 : vector<2x64xf32> to vector<2x64xbf16>
    %c0_222 = arith.constant 0 : index
    %c0_223 = arith.constant 0 : index
    %406 = vector.load %arg11[%c0_222, %c0_223] : memref<64x2xbf16, #tpu.memory_space<vmem>>, vector<64x2xbf16>
    %cst_224 = arith.constant dense<0.000000e+00> : vector<2x2xf32>
    %407 = tpu.matmul %405, %406, %cst_224 {dimension_numbers = #tpu.dot_dimension_numbers<[1], [0], [0], [1], [0, 0, 1, 1], [], []>} : vector<2x64xbf16>, vector<64x2xbf16>, vector<2x2xf32> -> vector<2x2xf32>
    %c0_225 = arith.constant 0 : index
    %c0_226 = arith.constant 0 : index
    %408 = vector.load %arg12[%c0_225, %c0_226] : memref<3x2xf32, #tpu.memory_space<vmem>>, vector<1x2xf32>
    %409 = vector.broadcast %408 : vector<1x2xf32> to vector<2x2xf32>
    %410 = arith.addf %407, %409 : vector<2x2xf32>
    %cst_227 = arith.constant dense<0.000000e+00> : vector<2xf32>
    %411 = vector.multi_reduction <add>, %410, %cst_227 [0] : vector<2x2xf32> to vector<2xf32>
    %412 = vector.shape_cast %411 : vector<2xf32> to vector<1x2xf32>
    %cst_228 = arith.constant 2.000000e+00 : f32
    %413 = vector.broadcast %cst_228 : f32 to vector<1x2xf32>
    %414 = arith.divf %412, %413 : vector<1x2xf32>
    %415 = vector.broadcast %414 : vector<1x2xf32> to vector<2x2xf32>
    %416 = arith.subf %410, %415 : vector<2x2xf32>
    %417 = arith.mulf %416, %416 : vector<2x2xf32>
    %cst_229 = arith.constant dense<0.000000e+00> : vector<2xf32>
    %418 = vector.multi_reduction <add>, %417, %cst_229 [0] : vector<2x2xf32> to vector<2xf32>
    %419 = vector.shape_cast %418 : vector<2xf32> to vector<1x2xf32>
    %cst_230 = arith.constant 2.000000e+00 : f32
    %420 = vector.broadcast %cst_230 : f32 to vector<1x2xf32>
    %421 = arith.divf %419, %420 : vector<1x2xf32>
    %422 = vector.broadcast %414 : vector<1x2xf32> to vector<2x2xf32>
    %423 = arith.subf %410, %422 : vector<2x2xf32>
    %c1_231 = arith.constant 1 : index
    %c0_232 = arith.constant 0 : index
    %424 = vector.load %arg12[%c1_231, %c0_232] : memref<3x2xf32, #tpu.memory_space<vmem>>, vector<1x2xf32>
    %cst_233 = arith.constant 9.99999974E-6 : f32
    %425 = vector.broadcast %cst_233 : f32 to vector<1x2xf32>
    %426 = arith.addf %421, %425 : vector<1x2xf32>
    %427 = math.rsqrt %426 : vector<1x2xf32>
    %428 = arith.mulf %424, %427 : vector<1x2xf32>
    %429 = vector.broadcast %428 : vector<1x2xf32> to vector<2x2xf32>
    %430 = arith.mulf %423, %429 : vector<2x2xf32>
    %c2_234 = arith.constant 2 : index
    %c0_235 = arith.constant 0 : index
    %431 = vector.load %arg12[%c2_234, %c0_235] : memref<3x2xf32, #tpu.memory_space<vmem>>, vector<1x2xf32>
    %432 = vector.broadcast %431 : vector<1x2xf32> to vector<2x2xf32>
    %433 = arith.addf %430, %432 : vector<2x2xf32>
    %cst_236 = arith.constant 0.000000e+00 : f32
    %434 = vector.broadcast %cst_236 : f32 to vector<2x2xf32>
    %435 = arith.cmpf oge, %433, %434 : vector<2x2xf32>
    %cst_237 = arith.constant 0.00999999977 : f32
    %436 = vector.broadcast %cst_237 : f32 to vector<2x2xf32>
    %437 = arith.mulf %436, %433 : vector<2x2xf32>
    %438 = arith.select %435, %433, %437 : vector<2x2xi1>, vector<2x2xf32>
    %cst_238 = arith.constant dense<0xFF800000> : vector<2xf32>
    %439 = vector.multi_reduction <maximumf>, %438, %cst_238 [1] : vector<2x2xf32> to vector<2xf32>
    %440 = vector.shape_cast %439 : vector<2xf32> to vector<2x1xf32>
    %441 = vector.broadcast %440 : vector<2x1xf32> to vector<2x2xf32>
    %442 = arith.subf %438, %441 : vector<2x2xf32>
    %443 = math.exp %442 : vector<2x2xf32>
    %cst_239 = arith.constant dense<0.000000e+00> : vector<2xf32>
    %444 = vector.multi_reduction <add>, %443, %cst_239 [1] : vector<2x2xf32> to vector<2xf32>
    %445 = vector.shape_cast %444 : vector<2xf32> to vector<2x1xf32>
    %446 = tpu.reciprocal %445 : vector<2x1xf32> -> vector<2x1xf32>
    %447 = vector.broadcast %446 : vector<2x1xf32> to vector<2x2xf32>
    %448 = arith.mulf %443, %447 : vector<2x2xf32>
    %cst_240 = arith.constant 0.000000e+00 : f32
    %449 = vector.broadcast %cst_240 : f32 to vector<2x128xf32>
    %c0_241 = arith.constant 0 : index
    %c0_242 = arith.constant 0 : index
    %450 = vector.load %arg13[%c0_241, %c0_242] : memref<2x128xf32, #tpu.memory_space<vmem>>, vector<2x128xf32>
    tpu.vector_store %arg13[%c0_241, %c0_242], %449 {strides = array<i32>} : memref<2x128xf32, #tpu.memory_space<vmem>>, vector<2x128xf32>,
    %c0_243 = arith.constant 0 : index
    %c0_244 = arith.constant 0 : index
    %451 = vector.load %arg13[%c0_243, %c0_244] : memref<2x128xf32, #tpu.memory_space<vmem>>, vector<2x6xf32>
    tpu.vector_store %arg13[%c0_243, %c0_244], %403 {strides = array<i32>} : memref<2x128xf32, #tpu.memory_space<vmem>>, vector<2x6xf32>,
    %c0_245 = arith.constant 0 : index
    %c6 = arith.constant 6 : index
    %452 = vector.load %arg13[%c0_245, %c6] : memref<2x128xf32, #tpu.memory_space<vmem>>, vector<2x2xf32>
    tpu.vector_store %arg13[%c0_245, %c6], %448 {strides = array<i32>} : memref<2x128xf32, #tpu.memory_space<vmem>>, vector<2x2xf32>,
    return
  }
}

</mosaic_0001>

<bundles_post_ra>
// kernel: dann_forward.1
= control target key start
LH: loop header
LB: loop body
LE: loop exit
PB: predicated region body
PF: predicated region fallthrough
CT: control target
= control target key end

     0   :  { %v6443_v0 = vmov 0.0   ;;  %vm6481_vm0 = vmmov 0   ;;  %vm206_vm1 = vcmask 1043456   ;;  %vm166_vm2 = vcmask 457728   ;;  %s4248_s28 = smov 32   ;;  %s4249_s29 = smov 96   ;;  %s6429_s1 = inlined_call_operand.vmem [shape: bf16[56,16], index: 1, kind: input, shape index: {}]   ;;  %s6430_s0 = inlined_call_operand.vmem [shape: bf16[200,56], index: 0, kind: input, shape index: {}]   ;;  %s6431_s2 = inlined_call_operand.vmem [shape: f32[3,16], index: 2, kind: input, shape index: {}]   ;;  %s6432_s3 = inlined_call_operand.vmem [shape: bf16[224,32], index: 3, kind: input, shape index: {}]   ;;  %s6433_s4 = inlined_call_operand.vmem [shape: f32[3,32], index: 4, kind: input, shape index: {}]   ;;  %s6434_s5 = inlined_call_operand.vmem [shape: bf16[448,64], index: 5, kind: input, shape index: {}]   ;;  %s6435_s7 = inlined_call_operand.vmem [shape: bf16[64,256], index: 7, kind: input, shape index: {}]   ;;  %s6436_s6 = inlined_call_operand.vmem [shape: f32[3,64], index: 6, kind: input, shape index: {}]   ;;  %s6437_s9 = inlined_call_operand.vmem [shape: bf16[256,70], index: 9, kind: input, shape index: {}]   ;;  %s6438_s8 = inlined_call_operand.vmem [shape: f32[3,256], index: 8, kind: input, shape index: {}]   ;;  %s6439_s11 = inlined_call_operand.vmem [shape: bf16[64,2], index: 11, kind: input, shape index: {}]   ;;  %s6440_s10 = inlined_call_operand.vmem [shape: f32[3,70], index: 10, kind: input, shape index: {}]   ;;  %s6441_s12 = inlined_call_operand.vmem [shape: f32[3,2], index: 12, kind: input, shape index: {}]   ;;  %s6442_s13 = inlined_call_operand.vmem [shape: f32[2,128], index: 13, kind: output, shape index: {}]  }
   0x1   :  { %4031 = vmatprep.subr.bf16.mxu0 %v6443_v0  ;;  %v4116_v1 = vld [vmem:[%s6429_s1] sm:$0xff]   ;;  %4039 = vmatprep.mubr.msk.bf16.mxu0 %vm6481_vm0, %v6443_v0  ;;  %v4117_v2 = vld [vmem:[%s6429_s1 + $0x8] sm:$0xff]   ;;  %v4118_v3 = vld [vmem:[%s6429_s1 + $0x10] sm:$0xff]   ;;  %vm346_vm3 = vcmask 130048   ;;  %vm716_vm10 = vcmask 125952   ;;  %vm721_vm14 = vcmask 123904  }
   0x2   :  { %4032 = vmatpush3.bf16.msra.mxu0 %v4116_v1  ;;  %v4119_v4 = vld [vmem:[%s6429_s1 + $0x18] ss:$0 sps:$4 sm:$0xff]   ;;  %v4120_v6 = vld [vmem:[%s6430_s0] sm:$0xff]   ;;  %v4121_v7 = vld [vmem:[%s6430_s0 + $0x8] sm:$0xff]   ;;  %s4250_s30 = smov 48   ;;  %s4251_s14 = smov 16  }
   0x3   :  { %4033 = vmatprep.subr.bf16.mxu0 %v6443_v0  ;;  %v208_v5 = vsel %vm206_vm1, %v4119_v4, 0  ;;  %v4122_v8 = vld [vmem:[%s6430_s0 + $0x10] sm:$0xff]   ;;  %v4123_v9 = vld [vmem:[%s6430_s0 + $0x18] sm:$0xff]   ;;  %v4124_v10 = vld [vmem:[%s6430_s0 + $0x20] sm:$0xff]   ;;  %s4252_s15 = smov 112   ;;  %s4257_s19 = smov 6  }
   0x4   :  { %v4125_v11 = vld [vmem:[%s6430_s0 + $0x28] sm:$0xff]   ;;  %v4126_v12 = vld [vmem:[%s6430_s0 + $0x30] sm:$0xff]   ;;  %v4127_v13 = vld [vmem:[%s6430_s0 + $0x38] sm:$0xff]  }
   0x5   :  { %v4128_v14 = vld [vmem:[%s6430_s0 + $0x40] sm:$0xff]   ;;  %v4129_v15 = vld [vmem:[%s6430_s0 + $0x48] sm:$0xff]   ;;  %v4130_v16 = vld [vmem:[%s6430_s0 + $0x50] sm:$0xff]  }
   0x6   :  { %4034 = vmatpush3.bf16.msra.mxu0 %v4117_v2  ;;  %v4131_v17 = vld [vmem:[%s6430_s0 + $0x58] sm:$0xff]   ;;  %v4132_v18 = vld [vmem:[%s6430_s0 + $0x60] ss:$0 sps:$4 sm:$0xff]   ;;  %s4254_s0 = smov 80  }
   0x7   :  { %4035 = vmatprep.subr.bf16.mxu0 %v6443_v0  ;;  %v4425_v19 = vld [vmem:[%s6431_s2] ss:$0 sm:$0xff] }
   0xa   :  { %4036 = vmatpush3.bf16.msra.mxu0 %v4118_v3 }
   0xb   :  { %4037 = vmatprep.subr.bf16.mxu0 %v6443_v0 }
   0xe   :  { %4038 = vmatpush3.bf16.msra.mxu0 %v208_v5 }
  0x11   :  { %4040 = vmatmul.mubr.msk.bf16.vlgmr.msra.gmra.mrb[0].mxu0 %vm166_vm2, %v4120_v6 }
  0x12   :  { %4043 = vmatprep.mubr.msk.bf16.mxu0 %vm6481_vm0, %v6443_v0 }
  0x19   :  { %4044 = vmatmul.mubr.msk.bf16.gmra.mrb[4].mxu0 %vm166_vm2, %v4121_v7 }
  0x1a   :  { %4047 = vmatprep.mubr.msk.bf16.mxu0 %vm6481_vm0, %v6443_v0 }
  0x21   :  { %4048 = vmatmul.mubr.msk.bf16.gmra.mrb[8].mxu0 %vm166_vm2, %v4122_v8 }
  0x22   :  { %4051 = vmatprep.mubr.msk.bf16.mxu0 %vm6481_vm0, %v6443_v0 }
  0x29   :  { %4052 = vmatmul.mubr.msk.bf16.gmra.mrb[12].mxu0 %vm166_vm2, %v4123_v9 }
  0x2a   :  { %4055 = vmatprep.mubr.msk.bf16.mxu0 %vm6481_vm0, %v6443_v0 }
  0x31   :  { %4056 = vmatmul.mubr.msk.bf16.gmra.mrb[16].mxu0 %vm166_vm2, %v4124_v10 }
  0x32   :  { %4059 = vmatprep.mubr.msk.bf16.mxu0 %vm6481_vm0, %v6443_v0 }
  0x39   :  { %4060 = vmatmul.mubr.msk.bf16.gmra.mrb[20].mxu0 %vm166_vm2, %v4125_v11 }
  0x3a   :  { %4063 = vmatprep.mubr.msk.bf16.mxu0 %vm6481_vm0, %v6443_v0 }
  0x41   :  { %4064 = vmatmul.mubr.msk.bf16.gmra.mrb[24].mxu0 %vm166_vm2, %v4126_v12 }
  0x42   :  { %4067 = vmatprep.mubr.msk.bf16.mxu0 %vm6481_vm0, %v6443_v0 }
  0x49   :  { %4068 = vmatmul.mubr.msk.bf16.gmra.mrb[28].mxu0 %vm166_vm2, %v4127_v13 }
  0x4a   :  { %4071 = vmatprep.mubr.msk.bf16.mxu0 %vm6481_vm0, %v6443_v0 }
  0x51   :  { %4072 = vmatmul.mubr.msk.bf16.gmra.mrb[32].mxu0 %vm166_vm2, %v4128_v14 }
  0x52   :  { %4075 = vmatprep.mubr.msk.bf16.mxu0 %vm6481_vm0, %v6443_v0 }
  0x59   :  { %4076 = vmatmul.mubr.msk.bf16.gmra.mrb[36].mxu0 %vm166_vm2, %v4129_v15 }
  0x5a   :  { %4079 = vmatprep.mubr.msk.bf16.mxu0 %vm6481_vm0, %v6443_v0 }
  0x61   :  { %4080 = vmatmul.mubr.msk.bf16.gmra.mrb[40].mxu0 %vm166_vm2, %v4130_v16 }
  0x62   :  { %4083 = vmatprep.mubr.msk.bf16.mxu0 %vm6481_vm0, %v6443_v0 }
  0x69   :  { %4084 = vmatmul.mubr.msk.bf16.gmra.mrb[44].mxu0 %vm166_vm2, %v4131_v17 }
  0x6a   :  { %4087 = vmatprep.mubr.msk.bf16.mxu0 %vm6481_vm0, %v6443_v0  ;;  %vm1028_vm0 = vcmask 911104  }
  0x71   :  { %4088 = vmatmul.mubr.msk.bf16.gmra.mrb[48].mxu0 %vm166_vm2, %v4132_v18  ;;  %vm797_vm2 = vcmask 1042432  }
  0xe4   :  { %v244_v20 = vpop.f32.mrb[0].mxu0 }
  0xe5   :  { %v4428_v21 = vadd.f32 %v4425_v19, %v244_v20  ;;  %v4041_v22 = vpop.f32.mrb[1].mxu0 }
  0xe6   :  { %v247_v23 = vpop.f32.mrb[2].mxu0 }
  0xe7   :  { %v4431_v24 = vadd.f32 %v4425_v19, %v247_v23  ;;  %v4042_v25 = vpop.f32.mrb[3].mxu0  ;;  %v347_v26 = vsel %vm346_vm3, %v4428_v21, 0.0 }
  0xe9   :  { %v348_v27 = vsel %vm346_vm3, %v4431_v24, 0.0 }
  0xea   :  { %v349_v28 = vadd.f32 %v348_v27, %v347_v26 }
  0xec   :  { %v252_v29 = vpop.f32.mrb[4].mxu0 }
  0xed   :  { %v4438_v30 = vadd.f32 %v4425_v19, %v252_v29  ;;  %v4045_v31 = vpop.f32.mrb[5].mxu0 }
  0xee   :  { %v255_v32 = vpop.f32.mrb[6].mxu0 }
  0xef   :  { %v350_v33 = vsel %vm346_vm3, %v4438_v30, 0.0  ;;  %v4443_v34 = vadd.f32 %v4425_v19, %v255_v32  ;;  %v4046_v35 = vpop.f32.mrb[7].mxu0 }
  0xf0   :  { %v351_v36 = vadd.f32 %v350_v33, %v349_v28 }
  0xf1   :  { %v352_v37 = vsel %vm346_vm3, %v4443_v34, 0.0 }
  0xf2   :  { %v353_v38 = vadd.f32 %v352_v37, %v351_v36 }
  0xf4   :  { %v260_v39 = vpop.f32.mrb[8].mxu0 }
  0xf5   :  { %v4448_v40 = vadd.f32 %v4425_v19, %v260_v39  ;;  %v4049_v41 = vpop.f32.mrb[9].mxu0 }
  0xf6   :  { %v263_v42 = vpop.f32.mrb[10].mxu0 }
  0xf7   :  { %v354_v43 = vsel %vm346_vm3, %v4448_v40, 0.0  ;;  %v4453_v44 = vadd.f32 %v4425_v19, %v263_v42  ;;  %v4050_v45 = vpop.f32.mrb[11].mxu0 }
  0xf8   :  { %v355_v46 = vadd.f32 %v354_v43, %v353_v38 }
  0xf9   :  { %v356_v47 = vsel %vm346_vm3, %v4453_v44, 0.0 }
  0xfa   :  { %v357_v48 = vadd.f32 %v356_v47, %v355_v46 }
  0xfc   :  { %v268_v49 = vpop.f32.mrb[12].mxu0 }
  0xfd   :  { %v4458_v50 = vadd.f32 %v4425_v19, %v268_v49  ;;  %v4053_v51 = vpop.f32.mrb[13].mxu0 }
  0xfe   :  { %v271_v52 = vpop.f32.mrb[14].mxu0 }
  0xff   :  { %v358_v53 = vsel %vm346_vm3, %v4458_v50, 0.0  ;;  %v4463_v54 = vadd.f32 %v4425_v19, %v271_v52  ;;  %v4054_v55 = vpop.f32.mrb[15].mxu0 }
 0x100   :  { %v359_v56 = vadd.f32 %v358_v53, %v357_v48 }
 0x101   :  { %v360_v57 = vsel %vm346_vm3, %v4463_v54, 0.0 }
 0x102   :  { %v361_v58 = vadd.f32 %v360_v57, %v359_v56 }
 0x104   :  { %v276_v59 = vpop.f32.mrb[16].mxu0 }
 0x105   :  { %v4468_v60 = vadd.f32 %v4425_v19, %v276_v59  ;;  %v4057_v61 = vpop.f32.mrb[17].mxu0 }
 0x106   :  { %v279_v62 = vpop.f32.mrb[18].mxu0 }
 0x107   :  { %v362_v63 = vsel %vm346_vm3, %v4468_v60, 0.0  ;;  %v4473_v1 = vadd.f32 %v4425_v19, %v279_v62  ;;  %v4058_v2 = vpop.f32.mrb[19].mxu0 }
 0x108   :  { %v363_v3 = vadd.f32 %v362_v63, %v361_v58 }
 0x109   :  { %v364_v4 = vsel %vm346_vm3, %v4473_v1, 0.0 }
 0x10a   :  { %v365_v5 = vadd.f32 %v364_v4, %v363_v3 }
 0x10c   :  { %v284_v6 = vpop.f32.mrb[20].mxu0 }
 0x10d   :  { %v4478_v7 = vadd.f32 %v4425_v19, %v284_v6  ;;  %v4061_v8 = vpop.f32.mrb[21].mxu0 }
 0x10e   :  { %v287_v9 = vpop.f32.mrb[22].mxu0 }
 0x10f   :  { %v366_v10 = vsel %vm346_vm3, %v4478_v7, 0.0  ;;  %v4483_v11 = vadd.f32 %v4425_v19, %v287_v9  ;;  %v4062_v12 = vpop.f32.mrb[23].mxu0 }
 0x110   :  { %v367_v13 = vadd.f32 %v366_v10, %v365_v5 }
 0x111   :  { %v368_v14 = vsel %vm346_vm3, %v4483_v11, 0.0 }
 0x112   :  { %v369_v15 = vadd.f32 %v368_v14, %v367_v13 }
 0x114   :  { %v292_v16 = vpop.f32.mrb[24].mxu0 }
 0x115   :  { %v4488_v17 = vadd.f32 %v4425_v19, %v292_v16  ;;  %v4065_v18 = vpop.f32.mrb[25].mxu0 }
 0x116   :  { %v295_v20 = vpop.f32.mrb[26].mxu0 }
 0x117   :  { %v370_v22 = vsel %vm346_vm3, %v4488_v17, 0.0  ;;  %v4493_v23 = vadd.f32 %v4425_v19, %v295_v20  ;;  %v4066_v25 = vpop.f32.mrb[27].mxu0 }
 0x118   :  { %v371_v26 = vadd.f32 %v370_v22, %v369_v15 }
 0x119   :  { %v372_v27 = vsel %vm346_vm3, %v4493_v23, 0.0 }
 0x11a   :  { %v373_v28 = vadd.f32 %v372_v27, %v371_v26 }
 0x11c   :  { %v300_v29 = vpop.f32.mrb[28].mxu0 }
 0x11d   :  { %v4498_v31 = vadd.f32 %v4425_v19, %v300_v29  ;;  %v4069_v32 = vpop.f32.mrb[29].mxu0 }
 0x11e   :  { %v303_v33 = vpop.f32.mrb[30].mxu0 }
 0x11f   :  { %v374_v35 = vsel %vm346_vm3, %v4498_v31, 0.0  ;;  %v4503_v36 = vadd.f32 %v4425_v19, %v303_v33  ;;  %v4070_v37 = vpop.f32.mrb[31].mxu0 }
 0x120   :  { %v375_v38 = vadd.f32 %v374_v35, %v373_v28 }
 0x121   :  { %v376_v39 = vsel %vm346_vm3, %v4503_v36, 0.0 }
 0x122   :  { %v377_v41 = vadd.f32 %v376_v39, %v375_v38 }
 0x124   :  { %v308_v42 = vpop.f32.mrb[32].mxu0 }
 0x125   :  { %v4508_v43 = vadd.f32 %v4425_v19, %v308_v42  ;;  %v4073_v45 = vpop.f32.mrb[33].mxu0 }
 0x126   :  { %v311_v46 = vpop.f32.mrb[34].mxu0 }
 0x127   :  { %v378_v47 = vsel %vm346_vm3, %v4508_v43, 0.0  ;;  %v4513_v48 = vadd.f32 %v4425_v19, %v311_v46  ;;  %v4074_v49 = vpop.f32.mrb[35].mxu0 }
 0x128   :  { %v379_v51 = vadd.f32 %v378_v47, %v377_v41 }
 0x129   :  { %v380_v52 = vsel %vm346_vm3, %v4513_v48, 0.0 }
 0x12a   :  { %v381_v53 = vadd.f32 %v380_v52, %v379_v51 }
 0x12c   :  { %v316_v55 = vpop.f32.mrb[36].mxu0 }
 0x12d   :  { %v317_v56 = vadd.f32 %v4425_v19, %v316_v55  ;;  %v4077_v57 = vpop.f32.mrb[37].mxu0 }
 0x12e   :  { %v319_v58 = vpop.f32.mrb[38].mxu0 }
 0x12f   :  { %v382_v59 = vsel %vm346_vm3, %v317_v56, 0.0  ;;  %v320_v61 = vadd.f32 %v4425_v19, %v319_v58  ;;  %v4078_v62 = vpop.f32.mrb[39].mxu0 }
 0x130   :  { %v383_v63 = vadd.f32 %v382_v59, %v381_v53 }
 0x131   :  { %v384_v2 = vsel %vm346_vm3, %v320_v61, 0.0 }
 0x132   :  { %v385_v3 = vadd.f32 %v384_v2, %v383_v63 }
 0x134   :  { %v324_v4 = vpop.f32.mrb[40].mxu0 }
 0x135   :  { %v325_v5 = vadd.f32 %v4425_v19, %v324_v4  ;;  %v4081_v6 = vpop.f32.mrb[41].mxu0 }
 0x136   :  { %v327_v8 = vpop.f32.mrb[42].mxu0 }
 0x137   :  { %v386_v9 = vsel %vm346_vm3, %v325_v5, 0.0  ;;  %v328_v10 = vadd.f32 %v4425_v19, %v327_v8  ;;  %v4082_v12 = vpop.f32.mrb[43].mxu0 }
 0x138   :  { %v387_v13 = vadd.f32 %v386_v9, %v385_v3 }
 0x139   :  { %v388_v14 = vsel %vm346_vm3, %v328_v10, 0.0 }
 0x13a   :  { %v389_v15 = vadd.f32 %v388_v14, %v387_v13 }
 0x13c   :  { %v332_v16 = vpop.f32.mrb[44].mxu0 }
 0x13d   :  { %v333_v18 = vadd.f32 %v4425_v19, %v332_v16  ;;  %v4085_v20 = vpop.f32.mrb[45].mxu0 }
 0x13e   :  { %v335_v22 = vpop.f32.mrb[46].mxu0 }
 0x13f   :  { %v390_v25 = vsel %vm346_vm3, %v333_v18, 0.0  ;;  %v336_v26 = vadd.f32 %v4425_v19, %v335_v22  ;;  %v4086_v27 = vpop.f32.mrb[47].mxu0 }
 0x140   :  { %v391_v28 = vadd.f32 %v390_v25, %v389_v15 }
 0x141   :  { %v392_v29 = vsel %vm346_vm3, %v336_v26, 0.0 }
 0x142   :  { %v393_v32 = vadd.f32 %v392_v29, %v391_v28 }
 0x144   :  { %v340_v33 = vpop.f32.mrb[48].mxu0 }
 0x145   :  { %v341_v35 = vadd.f32 %v4425_v19, %v340_v33  ;;  %v4089_v37 = vpop.f32.mrb[49].mxu0 }
 0x146   :  { %v343_v38 = vpop.f32.mrb[50].mxu0 }
 0x147   :  { %v394_v39 = vsel %vm346_vm3, %v341_v35, 0.0  ;;  %v4090_v41 = vpop.f32.mrb[51].mxu0 }
 0x148   :  { %v395_v42 = vadd.f32 %v394_v39, %v393_v32 }
 0x14a   :  { %v396_v45 = vrot.slane %v395_v42, 4 }
 0x14c   :  { %v397_v46 = vadd.f32 %v396_v45, %v395_v42 }
 0x14e   :  { %v398_v47 = vrot.slane %v397_v46, 2 }
 0x150   :  { %v399_v49 = vadd.f32 %v398_v47, %v397_v46 }
 0x152   :  { %v400_v51 = vrot.slane %v399_v49, 1 }
 0x154   :  { %v401_v52 = vadd.f32 %v400_v51, %v399_v49 }
 0x156   :  { %v403_v53 = vmul.f32 0.005, %v401_v52 }
 0x158   :  { %v4532_v55 = vsub.f32 %v4428_v21, %v403_v53  ;;  %v4535_v57 = vsub.f32 %v4431_v24, %v403_v53  ;;  %v4538_v19 = vsub.f32 %v4438_v30, %v403_v53  ;;  %v4541_v58 = vsub.f32 %v4443_v34, %v403_v53 }
 0x159   :  { %v4544_v59 = vsub.f32 %v4448_v40, %v403_v53  ;;  %v4547_v62 = vsub.f32 %v4453_v44, %v403_v53  ;;  %v4550_v63 = vsub.f32 %v4458_v50, %v403_v53  ;;  %v4553_v21 = vsub.f32 %v4463_v54, %v403_v53 }
 0x15a   :  { %v4556_v24 = vsub.f32 %v4468_v60, %v403_v53  ;;  %v4559_v30 = vsub.f32 %v4473_v1, %v403_v53  ;;  %v4562_v34 = vsub.f32 %v4478_v7, %v403_v53  ;;  %v4565_v40 = vsub.f32 %v4483_v11, %v403_v53 }
 0x15b   :  { %v4568_v44 = vsub.f32 %v4488_v17, %v403_v53  ;;  %v4571_v50 = vsub.f32 %v4493_v23, %v403_v53  ;;  %v4574_v54 = vsub.f32 %v4498_v31, %v403_v53  ;;  %v4577_v60 = vsub.f32 %v4503_v36, %v403_v53 }
 0x15c   :  { %v4580_v1 = vsub.f32 %v4508_v43, %v403_v53  ;;  %v4583_v7 = vsub.f32 %v4513_v48, %v403_v53  ;;  %v4585_v11 = vsub.f32 %v317_v56, %v403_v53  ;;  %v4587_v2 = vsub.f32 %v320_v61, %v403_v53 }
 0x15d   :  { %v4589_v17 = vsub.f32 %v325_v5, %v403_v53  ;;  %v4591_v23 = vsub.f32 %v328_v10, %v403_v53  ;;  %v4593_v3 = vsub.f32 %v333_v18, %v403_v53  ;;  %v4595_v31 = vsub.f32 %v336_v26, %v403_v53 }
 0x15e   :  { %v4597_v36 = vsub.f32 %v341_v35, %v403_v53  ;;  %v429_v43 = vmul.f32 %v4532_v55, %v4532_v55  ;;  %v430_v48 = vmul.f32 %v4535_v57, %v4535_v57  ;;  %v431_v56 = vmul.f32 %v4538_v19, %v4538_v19 }
 0x15f   :  { %v432_v61 = vmul.f32 %v4541_v58, %v4541_v58  ;;  %v433_v8 = vmul.f32 %v4544_v59, %v4544_v59  ;;  %v434_v12 = vmul.f32 %v4547_v62, %v4547_v62  ;;  %v435_v15 = vmul.f32 %v4550_v63, %v4550_v63 }
 0x160   :  { %v454_v4 = vsel %vm346_vm3, %v429_v43, 0.0  ;;  %v455_v5 = vsel %vm346_vm3, %v430_v48, 0.0  ;;  %v457_v9 = vsel %vm346_vm3, %v431_v56, 0.0  ;;  %v436_v20 = vmul.f32 %v4553_v21, %v4553_v21 }
 0x161   :  { %v456_v6 = vadd.f32 %v455_v5, %v454_v4  ;;  %v459_v13 = vsel %vm346_vm3, %v432_v61, 0.0  ;;  %v461_v16 = vsel %vm346_vm3, %v433_v8, 0.0  ;;  %v463_v22 = vsel %vm346_vm3, %v434_v12, 0.0 }
 0x162   :  { %v437_v26 = vmul.f32 %v4556_v24, %v4556_v24  ;;  %v465_v27 = vsel %vm346_vm3, %v435_v15, 0.0  ;;  %v438_v29 = vmul.f32 %v4559_v30, %v4559_v30  ;;  %v467_v32 = vsel %vm346_vm3, %v436_v20, 0.0 }
 0x163   :  { %v458_v10 = vadd.f32 %v457_v9, %v456_v6  ;;  %v439_v35 = vmul.f32 %v4562_v34, %v4562_v34  ;;  %v440_v39 = vmul.f32 %v4565_v40, %v4565_v40  ;;  %v441_v45 = vmul.f32 %v4568_v44, %v4568_v44 }
 0x164   :  { %v469_v37 = vsel %vm346_vm3, %v437_v26, 0.0  ;;  %v471_v41 = vsel %vm346_vm3, %v438_v29, 0.0  ;;  %v442_v49 = vmul.f32 %v4571_v50, %v4571_v50  ;;  %v443_v53 = vmul.f32 %v4574_v54, %v4574_v54 }
 0x165   :  { %v460_v14 = vadd.f32 %v459_v13, %v458_v10  ;;  %v473_v46 = vsel %vm346_vm3, %v439_v35, 0.0  ;;  %v475_v51 = vsel %vm346_vm3, %v440_v39, 0.0  ;;  %v477_v43 = vsel %vm346_vm3, %v441_v45, 0.0 }
 0x166   :  { %v444_v56 = vmul.f32 %v4577_v60, %v4577_v60  ;;  %v479_v61 = vsel %vm346_vm3, %v442_v49, 0.0  ;;  %v445_v5 = vmul.f32 %v4580_v1, %v4580_v1  ;;  %v481_v6 = vsel %vm346_vm3, %v443_v53, 0.0 }
 0x167   :  { %v462_v18 = vadd.f32 %v461_v16, %v460_v14  ;;  %v446_v9 = vmul.f32 %v4583_v7, %v4583_v7  ;;  %v447_v13 = vmul.f32 %v4585_v11, %v4585_v11  ;;  %v448_v16 = vmul.f32 %v4587_v2, %v4587_v2 }
 0x168   :  { %v483_v10 = vsel %vm346_vm3, %v444_v56, 0.0  ;;  %v485_v14 = vsel %vm346_vm3, %v445_v5, 0.0 }
 0x169   :  { %v464_v25 = vadd.f32 %v463_v22, %v462_v18  ;;  %v487_v18 = vsel %vm346_vm3, %v446_v9, 0.0  ;;  %v449_v22 = vmul.f32 %v4589_v17, %v4589_v17  ;;  %v510_v9 = vld [vmem:[%s6431_s2 + $0x1] sm:$0x1] }
 0x16b   :  { %v466_v28 = vadd.f32 %v465_v27, %v464_v25  ;;  %v489_v25 = vsel %vm346_vm3, %v447_v13, 0.0  ;;  %v450_v27 = vmul.f32 %v4591_v23, %v4591_v23 }
 0x16d   :  { %v468_v33 = vadd.f32 %v467_v32, %v466_v28  ;;  %v491_v28 = vsel %vm346_vm3, %v448_v16, 0.0  ;;  %v451_v32 = vmul.f32 %v4593_v3, %v4593_v3 }
 0x16f   :  { %v470_v38 = vadd.f32 %v469_v37, %v468_v33  ;;  %v493_v33 = vsel %vm346_vm3, %v449_v22, 0.0  ;;  %v452_v37 = vmul.f32 %v4595_v31, %v4595_v31 }
 0x171   :  { %v472_v42 = vadd.f32 %v471_v41, %v470_v38  ;;  %v495_v38 = vsel %vm346_vm3, %v450_v27, 0.0  ;;  %v453_v41 = vmul.f32 %v4597_v36, %v4597_v36 }
 0x173   :  { %v474_v47 = vadd.f32 %v473_v46, %v472_v42  ;;  %v497_v42 = vsel %vm346_vm3, %v451_v32, 0.0  ;;  %v499_v46 = vsel %vm346_vm3, %v452_v37, 0.0  ;;  %v501_v49 = vsel %vm346_vm3, %v453_v41, 0.0 }
 0x175   :  { %v476_v52 = vadd.f32 %v475_v51, %v474_v47 }
 0x177   :  { %v478_v48 = vadd.f32 %v477_v43, %v476_v52 }
 0x179   :  { %v480_v4 = vadd.f32 %v479_v61, %v478_v48 }
 0x17b   :  { %v482_v8 = vadd.f32 %v481_v6, %v480_v4  ;;  %v514_v6 = vlaneseq }
 0x17d   :  { %v484_v12 = vadd.f32 %v483_v10, %v482_v8  ;;  %v4674_v8 = vshrl.u32 %v514_v6, 7 }
 0x17f   :  { %v486_v15 = vadd.f32 %v485_v14, %v484_v12  ;;  %6486 = vst [vmem:[#allocation8_spill] sm:$0xff] %v4674_v8  ;;  %v4680_v10 = vsub.s32 0, %v4674_v8 }
 0x181   :  { %v488_v20 = vadd.f32 %v487_v18, %v486_v15  ;;  %6487 = vst [vmem:[#allocation9_spill] sm:$0xff] %v4680_v10 }
 0x183   :  { %v490_v26 = vadd.f32 %v489_v25, %v488_v20 }
 0x185   :  { %v492_v29 = vadd.f32 %v491_v28, %v490_v26 }
 0x187   :  { %v494_v35 = vadd.f32 %v493_v33, %v492_v29 }
 0x189   :  { %v496_v39 = vadd.f32 %v495_v38, %v494_v35 }
 0x18b   :  { %v498_v45 = vadd.f32 %v497_v42, %v496_v39 }
 0x18d   :  { %v500_v47 = vadd.f32 %v499_v46, %v498_v45 }
 0x18f   :  { %v502_v51 = vadd.f32 %v501_v49, %v500_v47 }
 0x191   :  { %v503_v52 = vrot.slane %v502_v51, 4 }
 0x193   :  { %v504_v53 = vadd.f32 %v503_v52, %v502_v51 }
 0x195   :  { %v505_v43 = vrot.slane %v504_v53, 2 }
 0x197   :  { %v506_v48 = vadd.f32 %v505_v43, %v504_v53 }
 0x199   :  { %v507_v56 = vrot.slane %v506_v48, 1 }
 0x19b   :  { %v508_v61 = vadd.f32 %v507_v56, %v506_v48 }
 0x19d   :  { %v509_v4 = vmul.f32 0.005, %v508_v61 }
 0x19f   :  { %v511_v5 = vadd.f32 1e-05, %v509_v4 }
 0x1a1   :  { %4223 = vrsqrt.f32 %v511_v5 }
 0x1ab   :  { %v4224_v12 = vpop.eup %4223 }
 0x1ac   :  { %v513_v13 = vmul.f32 %v4224_v12, %v510_v9 }
 0x1ae   :  { %v517_v14 = vrot.slane %v513_v13, %v4680_v10 }
 0x1b0   :  { %v518_v15 = vmul.f32 %v517_v14, %v4532_v55  ;;  %v519_v16 = vmul.f32 %v517_v14, %v4535_v57  ;;  %v520_v18 = vmul.f32 %v517_v14, %v4538_v19  ;;  %v521_v20 = vmul.f32 %v517_v14, %v4541_v58  ;;  %v3766_v19 = vld [vmem:[%s6431_s2 + $0x2] ss:$0 sm:$0xff]  ;;  %s4247_s2 = smov 64  }
 0x1b1   :  { %v522_v22 = vmul.f32 %v517_v14, %v4544_v59  ;;  %v523_v25 = vmul.f32 %v517_v14, %v4547_v62  ;;  %v524_v26 = vmul.f32 %v517_v14, %v4550_v63  ;;  %v525_v27 = vmul.f32 %v517_v14, %v4553_v21 }
 0x1b2   :  { %v526_v28 = vmul.f32 %v517_v14, %v4556_v24  ;;  %v527_v29 = vmul.f32 %v517_v14, %v4559_v30  ;;  %v528_v55 = vmul.f32 %v517_v14, %v4562_v34  ;;  %v529_v57 = vmul.f32 %v517_v14, %v4565_v40 }
 0x1b3   :  { %v530_v58 = vmul.f32 %v517_v14, %v4568_v44  ;;  %v531_v59 = vmul.f32 %v517_v14, %v4571_v50  ;;  %v532_v62 = vmul.f32 %v517_v14, %v4574_v54  ;;  %v533_v63 = vmul.f32 %v517_v14, %v4577_v60 }
 0x1b4   :  { %v534_v21 = vmul.f32 %v517_v14, %v4580_v1  ;;  %v535_v24 = vmul.f32 %v517_v14, %v4583_v7  ;;  %v536_v30 = vmul.f32 %v517_v14, %v4585_v11  ;;  %v537_v34 = vmul.f32 %v517_v14, %v4587_v2 }
 0x1b5   :  { %v538_v40 = vmul.f32 %v517_v14, %v4589_v17  ;;  %v539_v32 = vmul.f32 %v517_v14, %v4591_v23  ;;  %v540_v44 = vmul.f32 %v517_v14, %v4593_v3  ;;  %v541_v50 = vmul.f32 %v517_v14, %v4595_v31 }
 0x1b6   :  { %v542_v54 = vmul.f32 %v517_v14, %v4597_v36  ;;  %v548_v33 = vadd.f32 %v3766_v19, %v518_v15  ;;  %v549_v60 = vadd.f32 %v3766_v19, %v519_v16  ;;  %v550_v35 = vadd.f32 %v3766_v19, %v520_v18 }
 0x1b7   :  { %v551_v1 = vadd.f32 %v3766_v19, %v521_v20  ;;  %v552_v37 = vadd.f32 %v3766_v19, %v522_v22  ;;  %v553_v7 = vadd.f32 %v3766_v19, %v523_v25  ;;  %v554_v38 = vadd.f32 %v3766_v19, %v524_v26 }
 0x1b8   :  { %v555_v11 = vadd.f32 %v3766_v19, %v525_v27  ;;  %v556_v39 = vadd.f32 %v3766_v19, %v526_v28  ;;  %v557_v2 = vadd.f32 %v3766_v19, %v527_v29  ;;  %v558_v41 = vadd.f32 %v3766_v19, %v528_v55  ;;  %573 = vst.msk [vmem:[#allocation2] sm:$0xff] %vm346_vm3, %v548_v33 }
 0x1b9   :  { %574 = vst.msk [vmem:[#allocation2 + $0x8] sm:$0xff] %vm346_vm3, %v549_v60  ;;  %575 = vst.msk [vmem:[#allocation2 + $0x10] sm:$0xff] %vm346_vm3, %v550_v35  ;;  %v559_v17 = vadd.f32 %v3766_v19, %v529_v57  ;;  %v560_v23 = vadd.f32 %v3766_v19, %v530_v58  ;;  %v561_v3 = vadd.f32 %v3766_v19, %v531_v59 }
 0x1ba   :  { %v562_v31 = vadd.f32 %v3766_v19, %v532_v62  ;;  %576 = vst.msk [vmem:[#allocation2 + $0x18] sm:$0xff] %vm346_vm3, %v551_v1  ;;  %577 = vst.msk [vmem:[#allocation2 + $0x20] sm:$0xff] %vm346_vm3, %v552_v37  ;;  %v563_v36 = vadd.f32 %v3766_v19, %v533_v63  ;;  %v564_v42 = vadd.f32 %v3766_v19, %v534_v21 }
 0x1bb   :  { %578 = vst.msk [vmem:[#allocation2 + $0x28] sm:$0xff] %vm346_vm3, %v553_v7  ;;  %579 = vst.msk [vmem:[#allocation2 + $0x30] sm:$0xff] %vm346_vm3, %v554_v38  ;;  %v565_v45 = vadd.f32 %v3766_v19, %v535_v24  ;;  %v566_v46 = vadd.f32 %v3766_v19, %v536_v30  ;;  %v567_v47 = vadd.f32 %v3766_v19, %v537_v34 }
 0x1bc   :  { %580 = vst.msk [vmem:[#allocation2 + $0x38] sm:$0xff] %vm346_vm3, %v555_v11  ;;  %581 = vst.msk [vmem:[#allocation2 + $0x40] sm:$0xff] %vm346_vm3, %v556_v39  ;;  %v568_v49 = vadd.f32 %v3766_v19, %v538_v40  ;;  %v569_v51 = vadd.f32 %v3766_v19, %v539_v32  ;;  %v570_v52 = vadd.f32 %v3766_v19, %v540_v44 }
 0x1bd   :  { %582 = vst.msk [vmem:[#allocation2 + $0x48] sm:$0xff] %vm346_vm3, %v557_v2  ;;  %583 = vst.msk [vmem:[#allocation2 + $0x50] sm:$0xff] %vm346_vm3, %v558_v41  ;;  %v571_v53 = vadd.f32 %v3766_v19, %v541_v50  ;;  %v572_v43 = vadd.f32 %v3766_v19, %v542_v54 }
 0x1be   :  { %584 = vst.msk [vmem:[#allocation2 + $0x58] sm:$0xff] %vm346_vm3, %v559_v17  ;;  %585 = vst.msk [vmem:[#allocation2 + $0x60] sm:$0xff] %vm346_vm3, %v560_v23 }
 0x1bf   :  { %586 = vst.msk [vmem:[#allocation2 + $0x68] sm:$0xff] %vm346_vm3, %v561_v3  ;;  %587 = vst.msk [vmem:[#allocation2 + $0x70] sm:$0xff] %vm346_vm3, %v562_v31 }
 0x1c0   :  { %588 = vst.msk [vmem:[#allocation2 + $0x78] sm:$0xff] %vm346_vm3, %v563_v36  ;;  %589 = vst.msk [vmem:[#allocation2 + $0x80] sm:$0xff] %vm346_vm3, %v564_v42  ;;  %v598_v48 = vld [vmem:[#allocation2] ss:$2 sm:$0xff]  ;;  %v612_v56 = vld [vmem:[#allocation2 + $0x1] ss:$2 sm:$0xff] }
 0x1c1   :  { %590 = vst.msk [vmem:[#allocation2 + $0x88] sm:$0xff] %vm346_vm3, %v565_v45  ;;  %591 = vst.msk [vmem:[#allocation2 + $0x90] sm:$0xff] %vm346_vm3, %v566_v46  ;;  %v600_v61 = vld [vmem:[#allocation2 + $0x10] ss:$2 sm:$0xff]  ;;  %v614_v4 = vld [vmem:[#allocation2 + $0x11] ss:$2 sm:$0xff]  ;;  %v625_v5 = vmax.f32 %v598_v48, %v612_v56 }
 0x1c2   :  { %592 = vst.msk [vmem:[#allocation2 + $0x98] sm:$0xff] %vm346_vm3, %v567_v47  ;;  %593 = vst.msk [vmem:[#allocation2 + $0xa0] sm:$0xff] %vm346_vm3, %v568_v49  ;;  %v626_v15 = vmax.f32 %v600_v61, %v614_v4  ;;  %v633_v16 = vld [vmem:[#allocation2 + $0x2] ss:$2 sm:$0xff]  ;;  %v635_v26 = vld [vmem:[#allocation2 + $0x12] ss:$2 sm:$0xff] }
 0x1c3   :  { %594 = vst.msk [vmem:[#allocation2 + $0xa8] sm:$0xff] %vm346_vm3, %v569_v51  ;;  %595 = vst.msk [vmem:[#allocation2 + $0xb0] sm:$0xff] %vm346_vm3, %v570_v52  ;;  %v646_v57 = vmax.f32 %v625_v5, %v633_v16  ;;  %v654_v21 = vld [vmem:[#allocation2 + $0x3] ss:$2 sm:$0xff]  ;;  %v656_v37 = vld [vmem:[#allocation2 + $0x13] ss:$2 sm:$0xff] }
 0x1c4   :  { %596 = vst.msk [vmem:[#allocation2 + $0xb8] sm:$0xff] %vm346_vm3, %v571_v53  ;;  %597 = vst.msk [vmem:[#allocation2 + $0xc0] sm:$0xff] %vm346_vm3, %v572_v43  ;;  %v647_v44 = vmax.f32 %v626_v15, %v635_v26  ;;  %v606_v4 = vld [vmem:[#allocation2 + $0x40] ss:$2 sm:$0xff]  ;;  %v620_v5 = vld [vmem:[#allocation2 + $0x41] ss:$2 sm:$0xff] }
 0x1c5   :  { %v667_v39 = vmax.f32 %v646_v57, %v654_v21  ;;  %vm798_vm3 = vcmask 1046532  }
 0x1c6   :  { %v1346_v6 = vld [vmem:[#allocation2 + $0x64] ss:$2 sm:$0xff]  ;;  %v1360_v9 = vld [vmem:[#allocation2 + $0x65] ss:$2 sm:$0xff]  ;;  %v668_v42 = vmax.f32 %v647_v44, %v656_v37 }
 0x1c7   :  { %v1348_v12 = vld [vmem:[#allocation2 + $0x74] ss:$2 sm:$0xff]  ;;  %v1362_v13 = vld [vmem:[#allocation2 + $0x75] ss:$2 sm:$0xff]  ;;  %v1373_v14 = vmax.f32 %v1346_v6, %v1360_v9  ;;  %vm674_vm7 = vcmp.ge.f32.partialorder %v667_v39, 0.0 }
 0x1c8   :  { %v1374_v18 = vmax.f32 %v1348_v12, %v1362_v13  ;;  %v1383_v20 = vld [vmem:[#allocation2 + $0x76] ss:$2 sm:$0xff]  ;;  %v1381_v22 = vld [vmem:[#allocation2 + $0x66] ss:$2 sm:$0xff]  ;;  %v1404_v27 = vld [vmem:[#allocation2 + $0x77] ss:$2 sm:$0xff] }
 0x1c9   :  { %v1350_v25 = vld [vmem:[#allocation2 + $0x84] ss:$2 sm:$0xff]  ;;  %v1394_v28 = vmax.f32 %v1373_v14, %v1381_v22  ;;  %v1402_v29 = vld [vmem:[#allocation2 + $0x67] ss:$2 sm:$0xff]  ;;  %v1352_v62 = vld [vmem:[#allocation2 + $0x94] ss:$2 sm:$0xff] }
 0x1ca   :  { %v1364_v55 = vld [vmem:[#allocation2 + $0x85] ss:$2 sm:$0xff]  ;;  %v1395_v19 = vmax.f32 %v1374_v18, %v1383_v20  ;;  %v1385_v59 = vld [vmem:[#allocation2 + $0x86] ss:$2 sm:$0xff]  ;;  %v1366_v63 = vld [vmem:[#allocation2 + $0x95] ss:$2 sm:$0xff]  ;;  %v629_v18 = vmax.f32 %v606_v4, %v620_v5 }
 0x1cb   :  { %v1375_v58 = vmax.f32 %v1350_v25, %v1364_v55  ;;  %v1415_v24 = vmax.f32 %v1394_v28, %v1402_v29  ;;  %v1406_v30 = vld [vmem:[#allocation2 + $0x87] ss:$2 sm:$0xff]  ;;  %v1376_v34 = vmax.f32 %v1352_v62, %v1366_v63  ;;  %v1354_v40 = vld [vmem:[#allocation2 + $0xa4] ss:$2 sm:$0xff]  ;;  %v1356_v1 = vld [vmem:[#allocation2 + $0xb4] ss:$2 sm:$0xff] }
 0x1cc   :  { %v1368_v32 = vld [vmem:[#allocation2 + $0xa5] ss:$2 sm:$0xff]  ;;  %v1416_v50 = vmax.f32 %v1395_v19, %v1404_v27  ;;  %v1387_v33 = vld [vmem:[#allocation2 + $0x96] ss:$2 sm:$0xff]  ;;  %v1389_v35 = vld [vmem:[#allocation2 + $0xa6] ss:$2 sm:$0xff] }
 0x1cd   :  { %v1396_v54 = vmax.f32 %v1375_v58, %v1385_v59  ;;  %v1377_v60 = vmax.f32 %v1354_v40, %v1368_v32  ;;  %vm1422_vm4 = vcmp.ge.f32.partialorder %v1415_v24, 0.0  ;;  %v1429_v7 = vmul.f32 0.01, %v1415_v24  ;;  %v1370_v11 = vld [vmem:[#allocation2 + $0xb5] ss:$2 sm:$0xff] }
 0x1ce   :  { %v1397_v38 = vmax.f32 %v1376_v34, %v1387_v33  ;;  %vm1423_vm5 = vcmp.ge.f32.partialorder %v1416_v50, 0.0  ;;  %v1430_v2 = vmul.f32 0.01, %v1416_v50  ;;  %v1408_v17 = vld [vmem:[#allocation2 + $0x97] ss:$2 sm:$0xff]  ;;  %v1378_v36 = vmax.f32 %v1356_v1, %v1370_v11 }
 0x1cf   :  { %v1417_v41 = vmax.f32 %v1396_v54, %v1406_v30  ;;  %v1398_v23 = vmax.f32 %v1377_v60, %v1389_v35  ;;  %v1436_v3 = vsel %vm1422_vm4, %v1415_v24, %v1429_v7  ;;  %v1410_v49 = vld [vmem:[#allocation2 + $0xa7] ss:$2 sm:$0xff]  ;;  %v1391_v53 = vld [vmem:[#allocation2 + $0xb6] ss:$2 sm:$0xff]  ;;  %v681_v61 = vmul.f32 0.01, %v667_v39  ;;  %vm4794_vm4 = vmor %vm797_vm2, %vm798_vm3 }
 0x1d0   :  { %v1418_v31 = vmax.f32 %v1397_v38, %v1408_v17  ;;  %v1437_v45 = vsel %vm1423_vm5, %v1416_v50, %v1430_v2  ;;  %v4736_v46 = vpack.c.bf16 %v1436_v3, %v1436_v3  ;;  %v1399_v56 = vmax.f32 %v1378_v36, %v1391_v53  ;;  %v1412_v6 = vld [vmem:[#allocation2 + $0xb7] ss:$2 sm:$0xff]  ;;  %v608_v12 = vld [vmem:[#allocation2 + $0x50] ss:$2 sm:$0xff]  ;;  %v602_v22 = vld [vmem:[#allocation2 + $0x20] ss:$2 sm:$0xff] }
 0x1d1   :  { %vm1424_vm6 = vcmp.ge.f32.partialorder %v1417_v41, 0.0  ;;  %v1431_v47 = vmul.f32 0.01, %v1417_v41  ;;  %v4738_v51 = vpack.c.bf16 %v1437_v45, %v1437_v45  ;;  %v1419_v48 = vmax.f32 %v1398_v23, %v1410_v49  ;;  %v622_v13 = vld [vmem:[#allocation2 + $0x51] ss:$2 sm:$0xff] }
 0x1d2   :  { %v1432_v52 = vmul.f32 0.01, %v1418_v31  ;;  %1625 = vrot.lane.b32.xlu0 %v4736_v46, %s4247_s2  ;;  %vm1425_vm8 = vcmp.ge.f32.partialorder %v1418_v31, 0.0  ;;  %vm675_vm9 = vcmp.ge.f32.partialorder %v668_v42, 0.0  ;;  %v682_v9 = vmul.f32 0.01, %v668_v42 }
 0x1d3   :  { %v1438_v43 = vsel %vm1424_vm6, %v1417_v41, %v1431_v47  ;;  %1627 = vrot.lane.b32.xlu1 %v4738_v51, %s4247_s2  ;;  %v1420_v15 = vmax.f32 %v1399_v56, %v1412_v6  ;;  %v688_v16 = vsel %vm674_vm7, %v667_v39, %v681_v61  ;;  %v641_v20 = vld [vmem:[#allocation2 + $0x42] ss:$2 sm:$0xff]  ;;  %vm1426_vm11 = vcmp.ge.f32.partialorder %v1419_v48, 0.0  ;;  %v616_v28 = vld [vmem:[#allocation2 + $0x21] ss:$2 sm:$0xff] }
 0x1d4   :  { %v4744_v14 = vpack.c.bf16 %v1438_v43, %v1438_v43  ;;  %v1439_v25 = vsel %vm1425_vm8, %v1418_v31, %v1432_v52  ;;  %v1433_v26 = vmul.f32 0.01, %v1419_v48  ;;  %v689_v27 = vsel %vm675_vm9, %v668_v42, %v682_v9  ;;  %v662_v58 = vld [vmem:[#allocation2 + $0x43] ss:$2 sm:$0xff]  ;;  %v643_v24 = vld [vmem:[#allocation2 + $0x52] ss:$2 sm:$0xff] }
 0x1d5   :  { %v4751_v29 = vpack.c.bf16 %v688_v16, %v688_v16  ;;  %v4753_v55 = vpack.c.bf16 %v689_v27, %v689_v27  ;;  %v650_v57 = vmax.f32 %v629_v18, %v641_v20  ;;  %v630_v19 = vmax.f32 %v608_v12, %v622_v13  ;;  %v637_v30 = vld [vmem:[#allocation2 + $0x22] ss:$2 sm:$0xff]  ;;  %v664_v32 = vld [vmem:[#allocation2 + $0x53] ss:$2 sm:$0xff]  ;;  %v658_v54 = vld [vmem:[#allocation2 + $0x23] ss:$2 sm:$0xff] }
 0x1d6   :  { %1971 = vrot.lane.b32.xlu0 %v4738_v51, %s4247_s2  ;;  %v627_v59 = vmax.f32 %v602_v22, %v616_v28  ;;  %v4755_v62 = vpack.c.bf16 %v1439_v25, %v1439_v25  ;;  %v1434_v63 = vmul.f32 0.01, %v1420_v15  ;;  %v1440_v34 = vsel %vm1426_vm11, %v1419_v48, %v1433_v26  ;;  %v604_v7 = vld [vmem:[#allocation2 + $0x30] ss:$2 sm:$0xff]  ;;  %v618_v38 = vld [vmem:[#allocation2 + $0x31] ss:$2 sm:$0xff] }
 0x1d7   :  { %1973 = vrot.lane.b32.xlu1 %v4744_v14, %s4247_s2  ;;  %v671_v21 = vmax.f32 %v650_v57, %v662_v58  ;;  %717 = vst.msk [vmem:[#allocation3] sm:$0xf] %vm716_vm10, %v4751_v29  ;;  %718 = vst.msk [vmem:[#allocation3 + $0x8] sm:$0xf] %vm716_vm10, %v4753_v55  ;;  %vm1427_vm12 = vcmp.ge.f32.partialorder %v1420_v15, 0.0  ;;  %v651_v40 = vmax.f32 %v630_v19, %v643_v24  ;;  %v3772_v42 = vrot.slane %v4751_v29, 9 }
 0x1d8   :  { %1099 = vst.msk [vmem:[#allocation3 + $0x4] sm:$0xf] %vm716_vm10, %v4753_v55  ;;  %v648_v44 = vmax.f32 %v627_v59, %v637_v30  ;;  %v4768_v35 = vpack.c.bf16 %v1440_v34, %v1440_v34  ;;  %v1441_v1 = vsel %vm1427_vm12, %v1420_v15, %v1434_v63  ;;  %v628_v17 = vmax.f32 %v604_v7, %v618_v38  ;;  %v639_v36 = vld [vmem:[#allocation2 + $0x32] ss:$2 sm:$0xff]  ;;  %v660_v53 = vld [vmem:[#allocation2 + $0x33] ss:$2 sm:$0xff] }
 0x1d9   :  { %vm678_vm13 = vcmp.ge.f32.partialorder %v671_v21, 0.0  ;;  %v685_v50 = vmul.f32 0.01, %v671_v21  ;;  %v672_v33 = vmax.f32 %v651_v40, %v664_v32  ;;  %v4780_v23 = vpack.c.bf16 %v1441_v1, %v1441_v1 }
 0x1da   :  { %1629 = vrot.lane.b32.xlu0 %v4744_v14, %s4247_s2  ;;  %v669_v60 = vmax.f32 %v648_v44, %v658_v54  ;;  %v802_v45 = vrot.slane %v4753_v55, 5  ;;  %v649_v49 = vmax.f32 %v628_v17, %v639_v36  ;;  %v6488_v52 = vmov 0 }
 0x1db   :  { %1631 = vrot.lane.b32.xlu1 %v4755_v62, %s4247_s2  ;;  %v692_v37 = vsel %vm678_vm13, %v671_v21, %v685_v50  ;;  %vm679_vm15 = vcmp.ge.f32.partialorder %v672_v33, 0.0  ;;  %v686_v39 = vmul.f32 0.01, %v672_v33  ;;  %v6489_v52 = vsel %vm4794_vm4, 4294967295, %v6488_v52 }
 0x1dc   :  { %v4772_v11 = vpack.c.bf16 %v692_v37, %v692_v37  ;;  %vm676_vm1 = vcmp.ge.f32.partialorder %v669_v60, 0.0  ;;  %v683_v2 = vmul.f32 0.01, %v669_v60  ;;  %6490 = vst [vmem:[#allocation10_spill] sm:$0xff] %v6489_v52  ;;  %v1552_v43 = vrot.slane %v4736_v46, 7 }
 0x1dd   :  { %v693_v41 = vsel %vm679_vm15, %v672_v33, %v686_v39  ;;  %v670_v48 = vmax.f32 %v649_v49, %v660_v53  ;;  %v803_v61 = vsel %vm4794_vm4, %v3772_v42, %v802_v45  ;;  %vm6480_vm5 = vcmask 1041408  }
 0x1de   :  { %1975 = vrot.lane.b32.xlu0 %v4755_v62, %s4247_s2  ;;  %722 = vst.msk [vmem:[#allocation3 + $0x20] sm:$0x3] %vm721_vm14, %v4772_v11  ;;  %v4782_v3 = vpack.c.bf16 %v693_v41, %v693_v41  ;;  %v690_v31 = vsel %vm676_vm1, %v669_v60, %v683_v2  ;;  %v6447_v56 = vrot.slane %v4772_v11, 5  ;;  %vm886_vm6 = vcmask 1045508  }
 0x1df   :  { %1977 = vrot.lane.b32.xlu1 %v4768_v35, %s4247_s2  ;;  %1102 = vst.msk [vmem:[#allocation3 + $0x1c] sm:$0xf] %vm716_vm10, %v4772_v11  ;;  %v4788_v47 = vpack.c.bf16 %v690_v31, %v690_v31  ;;  %vm677_vm7 = vcmp.ge.f32.partialorder %v670_v48, 0.0  ;;  %v684_v4 = vmul.f32 0.01, %v670_v48  ;;  %v4811_v5 = vrot.slane %v4738_v51, 7  ;;  %vm4821_vm8 = vmor %vm6480_vm5, %vm886_vm6 }
 0x1e0   :  { %1103 = vst.msk [vmem:[#allocation3 + $0x24] sm:$0x3] %vm721_vm14, %v4782_v3  ;;  %v3773_v6 = vrot.slane %v4751_v29, 10  ;;  %v813_v9 = vrot.slane %v6447_v56, 4  ;;  %v890_v12 = vrot.slane %v4753_v55, 6  ;;  %v1184_v13 = vrot.slane %v4782_v3, 5 }
 0x1e1   :  { %719 = vst.msk [vmem:[#allocation3 + $0x10] sm:$0xf] %vm716_vm10, %v4788_v47  ;;  %1100 = vst.msk [vmem:[#allocation3 + $0xc] sm:$0xf] %vm716_vm10, %v4788_v47  ;;  %v691_v15 = vsel %vm677_vm7, %v670_v48, %v684_v4  ;;  %v6491_v16 = vmov 0  ;;  %v6445_v20 = vrot.slane %v4772_v11, 7 }
 0x1e2   :  { %1633 = vrot.lane.b32.xlu0 %v4768_v35, %s4247_s2  ;;  %v6492_v16 = vsel %vm4821_vm8, 4294967295, %v6491_v16  ;;  %v4825_v18 = vpack.c.bf16 %v691_v15, %v691_v15  ;;  %v3783_v22 = vrot.slane %v4753_v55, 9  ;;  %vm989_vm9 = vcmask 1040384  }
 0x1e3   :  { %1979 = vrot.lane.b32.xlu1 %v4780_v23, %s4247_s2  ;;  %6493 = vst [vmem:[#allocation11_spill] sm:$0xff] %v6492_v16  ;;  %vm990_vm11 = vcmask 1044484   ;;  %v994_v25 = vrot.slane %v4753_v55, 7  ;;  %v891_v26 = vsel %vm4821_vm8, %v3773_v6, %v890_v12  ;;  %v1186_v27 = vrot.slane %v1184_v13, 4 }
 0x1e4   :  { %720 = vst.msk [vmem:[#allocation3 + $0x18] sm:$0xf] %vm716_vm10, %v4825_v18  ;;  %1101 = vst.msk [vmem:[#allocation3 + $0x14] sm:$0xf] %vm716_vm10, %v4825_v18  ;;  %v4838_v28 = vrot.slane %v4788_v47, 5  ;;  %v1262_v57 = vrot.slane %v4782_v3, 6  ;;  %v4883_v2 = vsel %vm4794_vm4, %v813_v9, %v1184_v13 }
 0x1e5   :  { %v3776_v19 = vrot.slane %v4751_v29, 11  ;;  %v3794_v58 = vrot.slane %v4736_v46, 9  ;;  %v1709_v59 = vrot.slane %v4738_v51, 5  ;;  %vm4846_vm12 = vmor %vm989_vm9, %vm990_vm11  ;;  %v6494_v63 = vmov 0 }
 0x1e6   :  { %1565 = vrot.lane.b32.xlu0 %v1552_v43, %s4248_s28  ;;  %v6495_v63 = vsel %vm4846_vm12, 4294967295, %v6494_v63  ;;  %v804_v21 = vrot.slane %v802_v45, 4  ;;  %v6446_v24 = vrot.slane %v4772_v11, 6  ;;  %v1005_v30 = vrot.slane %v6445_v20, 4 }
 0x1e7   :  { %814 = vrot.lane.b32.xlu1 %v803_v61, %s4248_s28  ;;  %6496 = vst [vmem:[#allocation12_spill] sm:$0xff] %v6495_v63  ;;  %vm1030_vm13 = vsmask.f32 256  ;;  %v4854_v34 = vrot.slane %v4788_v47, 6  ;;  %v3784_v40 = vrot.slane %v4753_v55, 10  ;;  %v892_v32 = vrot.slane %v890_v12, 4 }
 0x1e8   :  { %v996_v44 = vrot.slane %v994_v25, 4  ;;  %v1176_v50 = vsel %vm4794_vm4, %v3783_v22, %v4838_v28  ;;  %v1264_v54 = vrot.slane %v1262_v57, 4  ;;  %v997_v33 = vrot.slane %v4788_v47, 7 }
 0x1e9   :  { %v1006_v60 = vrot.slane %v4782_v3, 7  ;;  %v4864_v1 = vrot.slane %v1552_v43, 4  ;;  %v995_v37 = vsel %vm4846_vm12, %v3776_v19, %v994_v25  ;;  %v1710_v7 = vsel %vm4794_vm4, %v3794_v58, %v1709_v59 }
 0x1ea   :  { %1913 = vrot.lane.b32.xlu0 %v4811_v5, %s4248_s28  ;;  %vm1031_vm14 = vsmask.f32 4368  ;;  %v806_v38 = vsel %vm4794_vm4, %v804_v21, %v4838_v28  ;;  %v4879_v39 = vrot.slane %v6446_v24, 4  ;;  %v1254_v17 = vsel %vm4821_vm8, %v3784_v40, %v4854_v34 }
 0x1eb   :  { %822 = vrot.lane.b32.xlu1 %v813_v9, %s4248_s28  ;;  %v4887_v41 = vsel %vm4846_vm12, %v1005_v30, %v1006_v60  ;;  %v894_v31 = vsel %vm4821_vm8, %v892_v32, %v4854_v34  ;;  %v807_v36 = vrot.slane %v4838_v28, 4  ;;  %v4897_v42 = vshrl.u32 %v4751_v29, 16  ;;  %vm4927_vm15 = vmor %vm1030_vm13, %vm1031_vm14 }
 0x1ec   :  { %v4901_v45 = vsel %vm4846_vm12, %v996_v44, %v997_v33  ;;  %v895_v49 = vrot.slane %v4854_v34, 4  ;;  %v4904_v53 = vrot.slane %v997_v33, 4  ;;  %v4907_v43 = vshrl.u32 %v4753_v55, 16 }
 0x1ed   :  { %v808_v48 = vrot.slane %v4825_v18, 5  ;;  %v1556_v61 = vrot.slane %v4811_v5, 4  ;;  %v1557_v4 = vrot.slane %v4744_v14, 7  ;;  %v4914_v6 = vshrl.u32 %v4788_v47, 16 }
 0x1ee   :  { %902 = vrot.lane.b32.xlu0 %v891_v26, %s4247_s2  ;;  %v4918_v9 = vshll.u32 %v4753_v55, 16  ;;  %v3777_v12 = vrot.slane %v4897_v42, 11  ;;  %v1035_v13 = vrot.slane %v4907_v43, 7  ;;  %v4923_v15 = vshrl.u32 %v4825_v18, 16 }
 0x1ef   :  { %1195 = vrot.lane.b32.xlu1 %v1186_v27, %s4248_s28  ;;  %v6497_v22 = vmov 0  ;;  %v4932_v25 = vshll.u32 %v4825_v18, 16  ;;  %v1039_v26 = vrot.slane %v4914_v6, 7  ;;  %v4936_v55 = vshll.u32 %v4788_v47, 16 }
 0x1f0   :  { %v6498_v22 = vsel %vm4927_vm15, 4294967295, %v6497_v22  ;;  %v4939_v27 = vshrl.u32 %v4772_v11, 16  ;;  %v1036_v28 = vor.u32 %v1035_v13, %v4918_v9  ;;  %v1043_v19 = vrot.slane %v4923_v15, 7 }
 0x1f1   :  { %6499 = vst [vmem:[#allocation13_spill] sm:$0xff] %v6498_v22  ;;  %v4943_v58 = vrot.slane %v1035_v13, 4  ;;  %v4946_v21 = vshrl.u32 %v4782_v3, 16  ;;  %v4949_v30 = vrot.slane %v1039_v26, 4  ;;  %v4952_v40 = vor.u32 %v1039_v26, %v4936_v55 }
 0x1f2   :  { %1187 = vrot.lane.b32.xlu0 %v1176_v50, %s4248_s28  ;;  %v4955_v47 = vshll.u32 %v4782_v3, 16  ;;  %v1047_v32 = vrot.slane %v4939_v27, 7  ;;  %v4961_v44 = vsel %vm4927_vm15, %v3777_v12, %v1036_v28  ;;  %v4964_v50 = vor.u32 %v1043_v19, %v4932_v25 }
 0x1f3   :  { %1273 = vrot.lane.b32.xlu1 %v1264_v54, %s4247_s2  ;;  %6500 = vst [vmem:[#allocation14_spill] sm:$0xff] %v4943_v58  ;;  %6501 = vst [vmem:[#allocation15_spill] sm:$0xff] %v4949_v30  ;;  %v1053_v54 = vrot.slane %v4946_v21, 7  ;;  %v4968_v33 = vshll.u32 %v4772_v11, 16  ;;  %v896_v60 = vrot.slane %v4825_v18, 6  ;;  %v809_v28 = vsel %vm4794_vm4, %v807_v36, %v808_v48 }
 0x1f4   :  { %6502 = vst [vmem:[#allocation16_spill] sm:$0xff] %v4952_v40  ;;  %6503 = vst [vmem:[#allocation17_spill] sm:$0xff] %v4961_v44  ;;  %v6450_v0 = vrot.slane %v4755_v62, 7  ;;  %v1711_v12 = vrot.slane %v1709_v59, 4  ;;  %v810_v20 = vrot.slane %v808_v48, 4  ;;  %v5026_v56 = vsel %vm4846_vm12, %v1556_v61, %v1557_v4 }
 0x1f5   :  { %6504 = vst [vmem:[#allocation18_spill] sm:$0xff] %v4964_v50  ;;  %v4985_v13 = vor.u32 %v1053_v54, %v4955_v47  ;;  %v4988_v26 = vor.u32 %v1047_v32, %v4968_v33  ;;  %v5004_v54 = vshll.u32 %v4738_v51, 16  ;;  %v898_v24 = vrot.slane %v896_v60, 4 }
 0x1f6   :  { %1008 = vrot.lane.b32.xlu0 %v995_v37, %s4249_s29  ;;  %vm723_vm1 = vsmask.f32 3328  ;;  %vm724_vm2 = vsmask.f32 7440  ;;  %v772_v59 = vrot.slane %v4939_v27, 4  ;;  %v897_v37 = vsel %vm4821_vm8, %v895_v49, %v896_v60 }
 0x1f7   :  { %816 = vrot.lane.b32.xlu1 %v806_v38, %s4248_s28  ;;  %v4975_v38 = vrot.slane %v1047_v32, 4  ;;  %6507 = vst [vmem:[#allocation21_spill] sm:$0xff] %v4985_v13  ;;  %6508 = vst [vmem:[#allocation22_spill] sm:$0xff] %v4988_v26  ;;  %v1559_v32 = vrot.slane %v1557_v4, 4  ;;  %v1498_v36 = vrot.slane %v5004_v54, 7  ;;  %v5055_v8 = vshrl.u32 %v4736_v46, 16 }
 0x1f8   :  { %v6510_v4 = vrot.slane %v4772_v11, 6  ;;  %vm836_vm3 = vsmask.f32 2304  ;;  %vm837_vm6 = vsmask.f32 6416  ;;  %v859_v60 = vrot.slane %v4968_v33, 6  ;;  %vm5115_vm11 = vmor %vm723_vm1, %vm724_vm2 }
 0x1f9   :  { %6505 = vst [vmem:[#allocation19_spill] sm:$0xff] %v4975_v38  ;;  %v5040_v48 = vsel %vm4846_vm12, %v1559_v32, %v6450_v0  ;;  %v858_v32 = vrot.slane %v4939_v27, 5  ;;  %v6509_v0 = vrot.slane %v4772_v11, 5  ;;  %vm930_vm7 = vsmask.f32 1280  ;;  %vm5140_vm13 = vmor %vm836_vm3, %vm837_vm6 }
 0x1fa   :  { %1265 = vrot.lane.b32.xlu0 %v1254_v17, %s4247_s2  ;;  %v4977_v17 = vrot.slane %v1043_v19, 4  ;;  %v5001_v19 = vshrl.u32 %v4738_v51, 16  ;;  %v5066_v34 = vsel %vm4821_vm8, %v898_v24, %v6510_v4  ;;  %vm931_vm9 = vsmask.f32 5392 }
 0x1fb   :  { %904 = vrot.lane.b32.xlu1 %v894_v31, %s4247_s2  ;;  %v1000_v31 = vrot.slane %v4825_v18, 7  ;;  %v4998_v18 = vsel %vm4821_vm8, %v4879_v39, %v1262_v57  ;;  %v843_v10 = vrot.slane %v4907_v43, 5  ;;  %v748_v40 = vrot.slane %v4936_v55, 5  ;;  %vm5161_vm14 = vmor %vm930_vm7, %vm931_vm9 }
 0x1fc   :  { %6506 = vst [vmem:[#allocation20_spill] sm:$0xff] %v4977_v17  ;;  %v1495_v57 = vrot.slane %v5001_v19, 6  ;;  %v844_v58 = vrot.slane %v4918_v9, 6  ;;  %v848_v4 = vrot.slane %v4914_v6, 5  ;;  %v752_v22 = vrot.slane %v4914_v6, 4 }
 0x1fd   :  { %v1002_v3 = vrot.slane %v1000_v31, 4  ;;  %v1001_v49 = vsel %vm4846_vm12, %v4904_v53, %v1000_v31  ;;  %v839_v31 = vrot.slane %v4897_v42, 5  ;;  %v758_v44 = vrot.slane %v4932_v25, 5 }
 0x1fe   :  { %1723 = vrot.lane.b32.xlu0 %v1710_v7, %s4249_s29  ;;  %v1712_v7 = vrot.slane %v4744_v14, 5  ;;  %v5082_v24 = vor.u32 %v1498_v36, %v1495_v57  ;;  %v5099_v57 = vshll.u32 %v4744_v14, 16  ;;  %v738_v36 = vrot.slane %v4918_v9, 5 }
 0x1ff   :  { %1189 = vrot.lane.b32.xlu1 %v809_v28, %s4248_s28  ;;  %vm1477_vm1 = vcmask 125954   ;;  %vm1580_vm2 = vcmask 388354   ;;  %vm1619_vm3 = vcmask 519554   ;;  %vm1640_vm6 = vcmask 650754  }
 0x200   :  { %v5042_v61 = vrot.slane %v1712_v7, 4  ;;  %vm795_vm9 = vcmask 255104   ;;  %vm987_vm5 = vcmask 779904  }
 0x202   :  { %910 = vrot.lane.b32.xlu0 %v4879_v39, %s4247_s2  ;;  %v812_v39 = vsel %vm4794_vm4, %v810_v20, %v6509_v0  ;;  %v5080_v20 = vshll.u32 %v4736_v46, 16 }
 0x203   :  { %1010 = vrot.lane.b32.xlu1 %v4901_v45, %s4249_s29  ;;  %v5052_v45 = vsel %vm4794_vm4, %v1711_v12, %v1712_v7  ;;  %v6511_v12 = vrot.slane %v4772_v11, 7  ;;  %v6512_v7 = vrot.slane %v4968_v33, 5  ;;  %v729_v11 = vrot.slane %v4897_v42, 4 }
 0x205   :  { %v5077_v0 = vsel %vm4846_vm12, %v1002_v3, %v6511_v12  ;;  %v5086_v53 = vor.u32 %v772_v59, %v6512_v7  ;;  %v730_v3 = vshll.u32 %v4751_v29, 16  ;;  %v5096_v12 = vshrl.u32 %v4744_v14, 16 }
 0x206   :  { %818 = vrot.lane.b32.xlu0 %v809_v28, %s4248_s28  ;;  %v5090_v28 = vor.u32 %v859_v60, %v858_v32  ;;  %v1226_v32 = vrot.slane %v4946_v21, 5  ;;  %v1227_v60 = vrot.slane %v4955_v47, 6  ;;  %v742_v7 = vrot.slane %v4907_v43, 4 }
 0x207   :  { %1267 = vrot.lane.b32.xlu1 %v897_v37, %s4247_s2  ;;  %v732_v59 = vrot.slane %v730_v3, 5  ;;  %v849_v29 = vrot.slane %v4936_v55, 6  ;;  %v840_v13 = vrot.slane %v730_v3, 6 }
 0x208   :  { %v743_v17 = vor.u32 %v742_v7, %v738_v36  ;;  %v845_v7 = vor.u32 %v844_v58, %v843_v10  ;;  %v937_v58 = vrot.slane %v4907_v43, 6  ;;  %v933_v43 = vrot.slane %v4897_v42, 6 }
 0x209   :  { %v733_v26 = vor.u32 %v732_v59, %v729_v11  ;;  %v5122_v11 = vor.u32 %v1227_v60, %v1226_v32  ;;  %v850_v50 = vor.u32 %v849_v29, %v848_v4  ;;  %v841_v30 = vor.u32 %v840_v13, %v839_v31 }
 0x20a   :  { %906 = vrot.lane.b32.xlu0 %v897_v37, %s4247_s2  ;;  %v744_v59 = vrot.slane %v743_v17, 4  ;;  %v847_v10 = vrot.slane %v845_v7, 4  ;;  %v6515_v17 = vmov 0  ;;  %v938_v31 = vrot.slane %v4918_v9, 7 }
 0x20b   :  { %820 = vrot.lane.b32.xlu1 %v812_v39, %s4248_s28  ;;  %v734_v38 = vrot.slane %v733_v26, 4  ;;  %v6516_v17 = vsel %vm5140_vm13, 4294967295, %v6515_v17  ;;  %v842_v13 = vrot.slane %v841_v30, 4  ;;  %v934_v32 = vrot.slane %v730_v3, 7 }
 0x20c   :  { %v5135_v26 = vsel %vm5115_vm11, %v744_v59, %v748_v40  ;;  %6517 = vst [vmem:[#allocation23_spill] sm:$0xff] %v6516_v17  ;;  %v5148_v4 = vsel %vm5140_vm13, %v847_v10, %v850_v50  ;;  %v939_v30 = vor.u32 %v938_v31, %v937_v58  ;;  %v852_v9 = vrot.slane %v850_v50, 4 }
 0x20d   :  { %v5131_v16 = vsel %vm5115_vm11, %v734_v38, %v738_v36  ;;  %v942_v38 = vrot.slane %v4914_v6, 6  ;;  %v943_v36 = vrot.slane %v4936_v55, 7  ;;  %v5155_v60 = vsel %vm5140_vm13, %v842_v13, %v845_v7 }
 0x20e   :  { %1191 = vrot.lane.b32.xlu0 %v812_v39, %s4248_s28  ;;  %v753_v39 = vor.u32 %v752_v22, %v748_v40  ;;  %v6518_v6 = vmov 0  ;;  %v935_v55 = vor.u32 %v934_v32, %v933_v43  ;;  %v853_v40 = vrot.slane %v4923_v15, 5 }
 0x20f   :  { %908 = vrot.lane.b32.xlu1 %v5066_v34, %s4247_s2  ;;  %v6519_v6 = vsel %vm5161_vm14, 4294967295, %v6518_v6  ;;  %v944_v42 = vor.u32 %v943_v36, %v942_v38  ;;  %v941_v50 = vrot.slane %v939_v30, 4  ;;  %v947_v29 = vrot.slane %v4923_v15, 6 }
 0x210   :  { %v754_v22 = vrot.slane %v753_v39, 4  ;;  %6520 = vst [vmem:[#allocation24_spill] sm:$0xff] %v6519_v6  ;;  %v936_v59 = vrot.slane %v935_v55, 4  ;;  %v762_v58 = vrot.slane %v4923_v15, 4  ;;  %v6521_v31 = vrot.slane %v4955_v47, 5 }
 0x211   :  { %v946_v10 = vrot.slane %v944_v42, 4  ;;  %v5178_v13 = vsel %vm5161_vm14, %v941_v50, %v944_v42  ;;  %v6522_v38 = vrot.slane %v5086_v53, 4  ;;  %v955_v36 = vrot.slane %v4939_v27, 6 }
 0x212   :  { %1012 = vrot.lane.b32.xlu0 %v1001_v49, %s4249_s29  ;;  %v854_v49 = vrot.slane %v4932_v25, 6  ;;  %v5169_v3 = vsel %vm5115_vm11, %v754_v22, %v758_v44  ;;  %v5193_v15 = vsel %vm5161_vm14, %v936_v59, %v939_v30  ;;  %v763_v43 = vor.u32 %v762_v58, %v758_v44 }
 0x213   :  { %1193 = vrot.lane.b32.xlu1 %v4883_v2, %s4248_s28  ;;  %v948_v2 = vrot.slane %v4932_v25, 7  ;;  %v5186_v25 = vsel %vm5115_vm11, %v6522_v38, %v6521_v31  ;;  %v958_v27 = vrot.slane %v4968_v33, 7  ;;  %v1501_v50 = vrot.slane %v5082_v24, 4 }
 0x214   :  { %v855_v7 = vor.u32 %v854_v49, %v853_v40  ;;  %v764_v55 = vrot.slane %v763_v43, 4  ;;  %v1313_v40 = vrot.slane %v4946_v21, 6  ;;  %v6525_v59 = vrot.slane %v5001_v19, 5 }
 0x215   :  { %v949_v39 = vor.u32 %v948_v2, %v947_v29  ;;  %v959_v49 = vor.u32 %v958_v27, %v955_v36  ;;  %v1505_v29 = vrot.slane %v5096_v12, 6  ;;  %v1508_v2 = vrot.slane %v5099_v57, 7 }
 0x216   :  { %1269 = vrot.lane.b32.xlu0 %v5066_v34, %s4247_s2  ;;  %v5197_v34 = vsel %vm5140_vm13, %v852_v9, %v855_v7  ;;  %v857_v32 = vrot.slane %v855_v7, 4  ;;  %v965_v9 = vrot.slane %v4955_v47, 7  ;;  %v6526_v7 = vrot.slane %v5004_v54, 6 }
 0x217   :  { %1014 = vrot.lane.b32.xlu1 %v5077_v0, %s4249_s29  ;;  %v5201_v22 = vsel %vm5161_vm14, %v946_v10, %v949_v39  ;;  %v951_v42 = vrot.slane %v949_v39, 4  ;;  %v6523_v0 = vrot.slane %v5090_v28, 4  ;;  %v6527_v58 = vrot.slane %v4968_v33, 5 }
 0x218   :  { %v5214_v44 = vsel %vm5140_vm13, %v857_v32, %v5090_v28  ;;  %v5229_v10 = vor.u32 %v6526_v7, %v6525_v59  ;;  %v5237_v39 = vor.u32 %v1313_v40, %v965_v9  ;;  %v1656_v31 = vrot.slane %v5004_v54, 5 }
 0x219   :  { %v5209_v30 = vsel %vm5140_vm13, %v6523_v0, %v5122_v11  ;;  %v5242_v38 = vsel %vm5161_vm14, %v951_v42, %v959_v49  ;;  %v1509_v36 = vor.u32 %v1508_v2, %v1505_v29  ;;  %v1658_v43 = vrot.slane %v5001_v19, 4 }
 0x21a   :  { %6524 = vst [vmem:[#allocation25_spill] sm:$0xff] %v5209_v30  ;;  %1016 = vrot.lane.b32.xlu0 %v4887_v41, %s4249_s29  ;;  %v5235_v41 = vsel %vm5115_vm11, %v764_v55, %v6527_v58  ;;  %6528 = vst [vmem:[#allocation26_spill] sm:$0xff] %v5237_v39  ;;  %v6529_v32 = vrot.slane %v4768_v35, 5  ;;  %v5248_v33 = vshrl.u32 %v4755_v62, 16  ;;  %v1661_v0 = vrot.slane %v5099_v57, 5 }
 0x21b   :  { %1271 = vrot.lane.b32.xlu1 %v4998_v18, %s4247_s2  ;;  %v961_v18 = vrot.slane %v959_v49, 4  ;;  %v1652_v55 = vrot.slane %v5055_v8, 4  ;;  %v5261_v40 = vsel %vm5161_vm14, %v1501_v50, %v1509_v36  ;;  %v1659_v49 = vor.u32 %v1658_v43, %v1656_v31 }
 0x21c   :  { %v1720_v27 = vrot.slane %v6529_v32, 4  ;;  %6531 = vst [vmem:[#allocation28_spill] sm:$0xff] %v5261_v40  ;;  %v6533_v2 = vsel %vm4846_vm12, %v4864_v1, %v4811_v5  ;;  %v5274_v59 = vshll.u32 %v4755_v62, 16  ;;  %v5277_v7 = vshrl.u32 %v4768_v35, 16 }
 0x21d   :  { %v5257_v42 = vsel %vm5161_vm14, %v961_v18, %v5237_v39  ;;  %v5265_v29 = vsel %vm5161_vm14, %v961_v18, %v965_v9  ;;  %v1653_v50 = vrot.slane %v5080_v20, 5  ;;  %v1751_v58 = vrot.slane %v5096_v12, 5 }
 0x21e   :  { %1569 = vrot.lane.b32.xlu0 %v5026_v56, %s4248_s28  ;;  %6530 = vst [vmem:[#allocation27_spill] sm:$0xff] %v5257_v42  ;;  %6532 = vst [vmem:[#allocation29_spill] sm:$0xff] %v5265_v29  ;;  %v1660_v43 = vrot.slane %v1659_v49, 4  ;;  %v1750_v9 = vrot.slane %v5229_v10, 4  ;;  %v1752_v18 = vrot.slane %v5099_v57, 6  ;;  %v1663_v32 = vrot.slane %v5096_v12, 4 }
 0x21f   :  { %1567 = vrot.lane.b32.xlu1 %v6533_v2, %s4248_s28  ;;  %v6534_v5 = vrot.slane %v4755_v62, 5  ;;  %v5290_v2 = vshll.u32 %v4768_v35, 16  ;;  %v1654_v39 = vor.u32 %v1653_v50, %v1652_v55  ;;  %v5293_v29 = vrot.slane %v4738_v51, 6 }
 0x220   :  { %v5299_v49 = vsel %vm5115_vm11, %v1660_v43, %v1661_v0  ;;  %v1753_v40 = vor.u32 %v1752_v18, %v1751_v58  ;;  %v1664_v42 = vor.u32 %v1663_v32, %v1661_v0  ;;  %v1515_v30 = vrot.slane %v5248_v33, 6 }
 0x221   :  { %v1716_v1 = vsel %vm4794_vm4, %v5042_v61, %v6534_v5  ;;  %6535 = vst [vmem:[#allocation30_spill] sm:$0xff] %v5299_v49  ;;  %v6536_v61 = vrot.slane %v4780_v23, 5  ;;  %v1655_v55 = vrot.slane %v1654_v39, 4  ;;  %v1666_v50 = vrot.slane %v5274_v59, 5  ;;  %1827 = vst.msk [vmem:[#allocation3 + $0x24] sm:$0xc] %vm1477_vm1, %v5293_v29 }
 0x222   :  { %1917 = vrot.lane.b32.xlu0 %v5040_v48, %s4248_s28  ;;  %v1511_v43 = vrot.slane %v1509_v36, 4  ;;  %v5313_v0 = vsel %vm5140_vm13, %v1750_v9, %v1753_v40  ;;  %v1665_v58 = vrot.slane %v1664_v42, 4  ;;  %v1518_v18 = vrot.slane %v5274_v59, 7 }
 0x223   :  { %1915 = vrot.lane.b32.xlu1 %v5026_v56, %s4248_s28  ;;  %v1722_v51 = vsel %vm4794_vm4, %v1720_v27, %v6536_v61  ;;  %6537 = vst [vmem:[#allocation31_spill] sm:$0xff] %v5313_v0  ;;  %v1525_v56 = vrot.slane %v5277_v7, 6  ;;  %v5320_v39 = vsel %vm5115_vm11, %v1655_v55, %v1656_v31  ;;  %v1528_v27 = vrot.slane %v5290_v2, 7 }
 0x224   :  { %6538 = vst [vmem:[#allocation32_spill] sm:$0xff] %v5320_v39  ;;  %v1668_v5 = vrot.slane %v5248_v33, 4  ;;  %v6539_v36 = vrot.slane %v4755_v62, 7  ;;  %v5330_v61 = vsel %vm5115_vm11, %v1665_v58, %v1666_v50  ;;  %v1519_v32 = vor.u32 %v1518_v18, %v1515_v30 }
 0x225   :  { %6540 = vst [vmem:[#allocation33_spill] sm:$0xff] %v5330_v61  ;;  %v5335_v31 = vshll.u32 %v4780_v23, 16  ;;  %v5338_v55 = vshrl.u32 %v4780_v23, 16  ;;  %v1674_v58 = vrot.slane %v5290_v2, 5  ;;  %v1755_v61 = vrot.slane %v1753_v40, 4 }
 0x226   :  { %1727 = vrot.lane.b32.xlu0 %v1716_v1, %s4249_s29  ;;  %v1562_v9 = vrot.slane %v6539_v36, 4  ;;  %v1529_v1 = vor.u32 %v1528_v27, %v1525_v56  ;;  %v1669_v0 = vor.u32 %v1668_v5, %v1666_v50  ;;  %v5342_v36 = vsel %vm5161_vm14, %v1511_v43, %v1519_v32 }
 0x227   :  { %1725 = vrot.lane.b32.xlu1 %v5052_v45, %s4249_s29  ;;  %6541 = vst [vmem:[#allocation34_spill] sm:$0xff] %v5342_v36  ;;  %v1521_v42 = vrot.slane %v1519_v32, 4  ;;  %v1756_v18 = vrot.slane %v5248_v33, 5  ;;  %v1757_v45 = vrot.slane %v5274_v59, 6  ;;  %v1459_v39 = vrot.slane %v4736_v46, 6 }
 0x228   :  { %v1670_v30 = vrot.slane %v1669_v0, 4  ;;  %v6542_v50 = vrot.slane %v5055_v8, 7  ;;  %v1761_v32 = vrot.slane %v5277_v7, 5  ;;  %v1762_v40 = vrot.slane %v5290_v2, 6 }
 0x229   :  { %v5354_v43 = vsel %vm5161_vm14, %v1521_v42, %v1529_v1  ;;  %v6544_v0 = vrot.slane %v4755_v62, 5  ;;  %v1758_v27 = vor.u32 %v1757_v45, %v1756_v18  ;;  %1478 = vst.msk [vmem:[#allocation3 + $0x20] sm:$0xc] %vm1477_vm1, %v1459_v39  ;;  %v1678_v5 = vrot.slane %v5277_v7, 4 }
 0x22a   :  { %1731 = vrot.lane.b32.xlu0 %v1722_v51, %s4249_s29  ;;  %v1587_v56 = vor.u32 %v6542_v50, %v5080_v20  ;;  %6543 = vst [vmem:[#allocation35_spill] sm:$0xff] %v5354_v43  ;;  %v5364_v51 = vsel %vm5115_vm11, %v1670_v30, %v1674_v58  ;;  %v6546_v42 = vrot.slane %v4768_v35, 7  ;;  %v1460_v43 = vrot.slane %v1459_v39, 4 }
 0x22b   :  { %1571 = vrot.lane.b32.xlu1 %v5040_v48, %s4248_s28  ;;  %v1717_v46 = vrot.slane %v6544_v0, 4  ;;  %6545 = vst [vmem:[#allocation36_spill] sm:$0xff] %v5364_v51  ;;  %v1763_v36 = vor.u32 %v1762_v40, %v1761_v32  ;;  %v1684_v48 = vrot.slane %v5335_v31, 5  ;;  %v5375_v0 = vsel %vm5140_vm13, %v1755_v61, %v1758_v27 }
 0x22c   :  { %v1564_v50 = vsel %vm4846_vm12, %v1562_v9, %v6546_v42  ;;  %6547 = vst [vmem:[#allocation37_spill] sm:$0xff] %v5375_v0  ;;  %v1760_v30 = vrot.slane %v1758_v27, 4  ;;  %v1679_v51 = vor.u32 %v1678_v5, %v1674_v58  ;;  %v1874_v18 = vrot.slane %v5338_v55, 6 }
 0x22d   :  { %v1870_v45 = vrot.slane %v1529_v1, 4  ;;  %v1877_v49 = vrot.slane %v5335_v31, 7  ;;  %v2023_v9 = vrot.slane %v5338_v55, 4  ;;  %v1765_v39 = vrot.slane %v1763_v36, 4 }
 0x22e   :  { %1604 = vrot.lane.b32.xlu0 %v1587_v56, %s4250_s30  ;;  %v5384_v32 = vsel %vm5140_vm13, %v1760_v30, %v1763_v36  ;;  %v1680_v61 = vrot.slane %v1679_v51, 4  ;;  %v1768_v58 = vrot.slane %v5338_v55, 5  ;;  %v1769_v40 = vrot.slane %v5335_v31, 6 }
 0x22f   :  { %1919 = vrot.lane.b32.xlu1 %v1564_v50, %s4248_s28  ;;  %v1589_v27 = vrot.slane %v5001_v19, 7  ;;  %v1878_v56 = vor.u32 %v1877_v49, %v1874_v18  ;;  %v5389_v1 = vor.u32 %v2023_v9, %v1684_v48  ;;  %v1463_v5 = vrot.slane %v5293_v29, 4 }
 0x230   :  { %v5394_v42 = vsel %vm5115_vm11, %v1680_v61, %v1684_v48  ;;  %v1770_v0 = vor.u32 %v1769_v40, %v1768_v58  ;;  %v1464_v36 = vrot.slane %v4744_v14, 6  ;;  %v1462_v30 = vsel %vm4821_vm8, %v1460_v43, %v5293_v29 }
 0x231   :  { %v6549_v19 = vrot.slane %v4768_v35, 5  ;;  %v5408_v48 = vsel %vm5161_vm14, %v1870_v45, %v1878_v56  ;;  %1479 = vst.msk [vmem:[#allocation3 + $0x28] sm:$0xf] %vm716_vm10, %v1462_v30  ;;  %v1467_v14 = vrot.slane %v4755_v62, 6  ;;  %v1590_v9 = vor.u32 %v1589_v27, %v5004_v54 }
 0x232   :  { %1880 = vrot.lane.b32.xlu0 %v5082_v24, %s4251_s14  ;;  %v5415_v29 = vsel %vm5140_vm13, %v1765_v39, %v1770_v0  ;;  %v1465_v43 = vsel %vm4821_vm8, %v1463_v5, %v1464_v36  ;;  %v1466_v18 = vrot.slane %v1464_v36, 4  ;;  %v1820_v0 = vrot.slane %v4780_v23, 6 }
 0x233   :  { %v1719_v49 = vsel %vm4794_vm4, %v1717_v46, %v6549_v19  ;;  %v1470_v46 = vrot.slane %v4768_v35, 6  ;;  %1828 = vst.msk [vmem:[#allocation3 + $0x2c] sm:$0xf] %vm716_vm10, %v1465_v43  ;;  %1480 = vst.msk [vmem:[#allocation3 + $0x30] sm:$0xf] %vm716_vm10, %v1465_v43  ;;  %v1469_v45 = vrot.slane %v1467_v14, 4 }
 0x234   :  { %1729 = vrot.lane.b32.xlu1 %v1719_v49, %s4249_s29  ;;  %v1468_v62 = vsel %vm4821_vm8, %v1466_v18, %v1467_v14  ;;  %v6550_v39 = vrot.slane %v4768_v35, 7  ;;  %v1911_v56 = vrot.slane %v4780_v23, 7  ;;  %v1486_v35 = vrot.slane %v5055_v8, 6  ;;  %v6554_v14 = vld [vmem:[#allocation15_spill] sm:$0xff]  ;;  %v6555_v43 = vld [vmem:[#allocation18_spill] sm:$0xff] }
 0x235   :  { %v1819_v61 = vrot.slane %v1470_v46, 4  ;;  %1481 = vst.msk [vmem:[#allocation3 + $0x38] sm:$0xf] %vm716_vm10, %v1468_v62  ;;  %1829 = vst.msk [vmem:[#allocation3 + $0x34] sm:$0xf] %vm716_vm10, %v1468_v62  ;;  %v1471_v54 = vsel %vm4821_vm8, %v1469_v45, %v1470_v46  ;;  %v1489_v5 = vrot.slane %v5080_v20, 7  ;;  %v6556_v18 = vsel %vm4927_vm15, %v6554_v14, %v6555_v43 }
 0x236   :  { %1951 = vrot.lane.b32.xlu0 %v1590_v9, %s4250_s30  ;;  %v1910_v58 = vrot.slane %v6550_v39, 4  ;;  %1830 = vst.msk [vmem:[#allocation3 + $0x3c] sm:$0xf] %vm716_vm10, %v1471_v54  ;;  %1482 = vst.msk [vmem:[#allocation3 + $0x40] sm:$0xf] %vm716_vm10, %v1471_v54  ;;  %v6472_v30 = vmov 0  }
 0x237   :  { %v1821_v40 = vsel %vm4821_vm8, %v1819_v61, %v1820_v0  ;;  %2235 = vmatprep.subr.bf16.mxu1 %v6472_v30  ;;  %3063 = vmatprep.subr.bf16.mxu0 %v6472_v30  ;;  %v5449_v23 = vor.u32 %v1489_v5, %v1486_v35  ;;  %v3795_v51 = vrot.slane %v5055_v8, 9  ;;  %v6552_v20 = vrot.slane %v5055_v8, 7  ;;  %v4133_v45 = vld [vmem:[%s6432_s3] sm:$0xff]   ;;  %v4134_v8 = vld [vmem:[%s6432_s3 + $0x8] sm:$0xff]  }
 0x238   :  { %1573 = vrot.lane.b32.xlu1 %v1564_v50, %s4248_s28  ;;  %1831 = vst.msk [vmem:[#allocation3 + $0x44] sm:$0xf] %vm716_vm10, %v1821_v40  ;;  %v1912_v36 = vsel %vm4846_vm12, %v1910_v58, %v1911_v56  ;;  %v6551_v50 = vld [vmem:[#allocation17_spill] sm:$0xff]  ;;  %v1592_v46 = vrot.slane %v1589_v27, 4  ;;  %2236 = vmatpush1.bf16.msra.mxu1 %v4133_v45  ;;  %v1593_v62 = vrot.slane %v5096_v12, 7  ;;  %v6557_v27 = vld [vmem:[#allocation19_spill] sm:$0xff] }
 0x239   :  { %v1588_v19 = vrot.slane %v6552_v20, 4  ;;  %2237 = vmatprep.subr.bf16.mxu1 %v6472_v30  ;;  %v6558_v61 = vld [vmem:[#allocation21_spill] sm:$0xff]  ;;  %v6560_v39 = vld [vmem:[#allocation14_spill] sm:$0xff]  ;;  %v6561_v58 = vld [vmem:[#allocation16_spill] sm:$0xff]  ;;  %v1749_v56 = vsel %vm5140_vm13, %v3795_v51, %v5229_v10  ;;  %v1597_v5 = vrot.slane %v5248_v33, 7  ;;  %vm1546_vm8 = vcmask 257154  }
 0x23a   :  { %1056 = vrot.lane.b32.xlu0 %v6551_v50, %s4252_s15  ;;  %v6559_v0 = vsel %vm4927_vm15, %v6557_v27, %v6558_v61  ;;  %v6562_v54 = vsel %vm4927_vm15, %v6560_v39, %v6561_v58  ;;  %v1594_v35 = vor.u32 %v1593_v62, %v5099_v57  ;;  %v6563_v50 = vld [vmem:[#allocation20_spill] sm:$0xff]  ;;  %v6564_v20 = vld [vmem:[#allocation22_spill] sm:$0xff]  ;;  %v1596_v51 = vrot.slane %v1593_v62, 4 }
 0x23b   :  { %v6565_v14 = vsel %vm4927_vm15, %v6563_v50, %v6564_v20  ;;  %v1598_v43 = vor.u32 %v1597_v5, %v5274_v59  ;;  %v4136_v45 = vld [vmem:[%s6432_s3 + $0x18] sm:$0xff]   ;;  %v4138_v39 = vld [vmem:[%s6432_s3 + $0x28] sm:$0xff]   ;;  %v1372_v49 = vld [vmem:[#allocation2 + $0xc5] ss:$2 sm:$0x1]  ;;  %vm834_vm1 = vcmask 386304  }
 0x23c   :  { %1921 = vrot.lane.b32.xlu1 %v1912_v36, %s4248_s28  ;;  %2238 = vmatpush1.bf16.msra.mxu1 %v4134_v8  ;;  %v4135_v36 = vld [vmem:[%s6432_s3 + $0x10] sm:$0xff]   ;;  %v1595_v33 = vsel %vm4927_vm15, %v1592_v46, %v1594_v35  ;;  %v1591_v8 = vsel %vm4927_vm15, %v1588_v19, %v1590_v9  ;;  %v4137_v9 = vld [vmem:[%s6432_s3 + $0x20] sm:$0xff]   ;;  %v6567_v35 = vrot.slane %v5086_v53, 4 }
 0x23d   :  { %2239 = vmatprep.subr.bf16.mxu1 %v6472_v30  ;;  %v1599_v59 = vsel %vm4927_vm15, %v1596_v51, %v1598_v43 }
 0x23e   :  { %1060 = vrot.lane.b32.xlu0 %v6556_v18, %s4252_s15  ;;  %v1601_v18 = vrot.slane %v5277_v7, 7  ;;  %v1600_v7 = vrot.slane %v1597_v5, 4 }
 0x240   :  { %1531 = vrot.lane.b32.xlu1 %v5449_v23, %s4251_s14  ;;  %2240 = vmatpush1.bf16.msra.mxu1 %v4135_v36  ;;  %v1602_v62 = vor.u32 %v1601_v18, %v5290_v2  ;;  %v1948_v2 = vrot.slane %v5338_v55, 7  ;;  %v1947_v5 = vrot.slane %v1601_v18, 4  ;;  %v4139_v36 = vld [vmem:[%s6432_s3 + $0x30] sm:$0xff]  }
 0x241   :  { %2241 = vmatprep.subr.bf16.mxu1 %v6472_v30 }
 0x242   :  { %1064 = vrot.lane.b32.xlu0 %v6559_v0, %s4252_s15  ;;  %v1603_v0 = vsel %vm4927_vm15, %v1600_v7, %v1602_v62  ;;  %v1949_v55 = vor.u32 %v1948_v2, %v5335_v31  ;;  %v6569_v31 = vrot.slane %v5090_v28, 4  ;;  %v4141_v28 = vld [vmem:[%s6432_s3 + $0x40] sm:$0xff]  }
 0x244   :  { %1058 = vrot.lane.b32.xlu1 %v6562_v54, %s4252_s15  ;;  %v5482_v12 = vpop.permute.xlu0 %1625  ;;  %2242 = vmatpush1.bf16.msra.mxu1 %v4136_v45  ;;  %v1950_v53 = vsel %vm4927_vm15, %v1947_v5, %v1949_v55 }
 0x245   :  { %v5484_v40 = vpop.permute.xlu1 %1627  ;;  %2243 = vmatprep.subr.bf16.mxu1 %v6472_v30 }
 0x246   :  { %1772 = vrot.lane.b32.xlu0 %v1749_v56, %s4252_s15  ;;  %v1150_v56 = vrot.slane %v4946_v21, 4  ;;  %v6568_v21 = vrot.slane %v4955_v47, 5 }
 0x248   :  { %1062 = vrot.lane.b32.xlu1 %v6565_v14, %s4252_s15  ;;  %v5502_v10 = vpop.permute.xlu0 %1971  ;;  %2244 = vmatpush1.bf16.msra.mxu1 %v4137_v9  ;;  %v1151_v14 = vor.u32 %v1150_v56, %v6568_v21  ;;  %v624_v21 = vld [vmem:[#allocation2 + $0x61] ss:$2 sm:$0x1] }
 0x249   :  { %v5504_v57 = vpop.permute.xlu1 %1973  ;;  %2245 = vmatprep.subr.bf16.mxu1 %v6472_v30 }
 0x24a   :  { %1608 = vrot.lane.b32.xlu0 %v1595_v33, %s4250_s30  ;;  %v1152_v43 = vrot.slane %v1151_v14, 4 }
 0x24c   :  { %1606 = vrot.lane.b32.xlu1 %v1591_v8, %s4250_s30  ;;  %v5518_v27 = vpop.permute.xlu0 %1629  ;;  %2246 = vmatpush1.bf16.msra.mxu1 %v4138_v39  ;;  %v1230_v8 = vrot.slane %v5122_v11, 4  ;;  %v4143_v11 = vld [vmem:[%s6432_s3 + $0x50] sm:$0xff]  }
 0x24d   :  { %v5520_v46 = vpop.permute.xlu1 %1631  ;;  %2247 = vmatprep.subr.bf16.mxu1 %v6472_v30 }
 0x24e   :  { %1955 = vrot.lane.b32.xlu0 %v1599_v59, %s4250_s30 }
 0x250   :  { %1953 = vrot.lane.b32.xlu1 %v1595_v33, %s4250_s30  ;;  %v5531_v19 = vpop.permute.xlu0 %1975  ;;  %2248 = vmatpush1.bf16.msra.mxu1 %v4139_v36  ;;  %v4140_v33 = vld [vmem:[%s6432_s3 + $0x38] sm:$0xff]   ;;  %v610_v36 = vld [vmem:[#allocation2 + $0x60] ss:$2 sm:$0x1] }
 0x251   :  { %v5533_v61 = vpop.permute.xlu1 %1977  ;;  %2249 = vmatprep.subr.bf16.mxu1 %v6472_v30 }
 0x252   :  { %1612 = vrot.lane.b32.xlu0 %v1603_v0, %s4250_s30 }
 0x254   :  { %1610 = vrot.lane.b32.xlu1 %v1599_v59, %s4250_s30  ;;  %v5544_v58 = vpop.permute.xlu0 %1633  ;;  %2250 = vmatpush1.bf16.msra.mxu1 %v4140_v33  ;;  %v4142_v59 = vld [vmem:[%s6432_s3 + $0x48] sm:$0xff]   ;;  %v645_v33 = vld [vmem:[#allocation2 + $0x62] ss:$2 sm:$0x1] }
 0x255   :  { %v5546_v54 = vpop.permute.xlu1 %1979  ;;  %2251 = vmatprep.subr.bf16.mxu1 %v6472_v30 }
 0x256   :  { %6566 = vst [vmem:[#allocation11_spill] sm:$0xff] %v5546_v54  ;;  %783 = vrot.lane.b32.xlu0 %v6567_v35, %s4251_s14  ;;  %v6582_v54 = vld [vmem:[#allocation37_spill] sm:$0xff] }
 0x258   :  { %1957 = vrot.lane.b32.xlu1 %v1603_v0, %s4250_s30  ;;  %v5558_v50 = vpop.permute.xlu0 %1565  ;;  %2252 = vmatpush1.bf16.msra.mxu1 %v4141_v28 }
 0x259   :  { %v5560_v20 = vpop.permute.xlu1 %814  ;;  %2253 = vmatprep.subr.bf16.mxu1 %v6472_v30 }
 0x25a   :  { %871 = vrot.lane.b32.xlu0 %v6569_v31, %s4250_s30 }
 0x25c   :  { %1959 = vrot.lane.b32.xlu1 %v1950_v53, %s4250_s30  ;;  %v5574_v51 = vpop.permute.xlu0 %1913  ;;  %2254 = vmatpush1.bf16.msra.mxu1 %v4142_v59 }
 0x25d   :  { %v5576_v47 = vpop.permute.xlu1 %822  ;;  %2255 = vmatprep.subr.bf16.mxu1 %v6472_v30 }
 0x25e   :  { %775 = vrot.lane.b32.xlu0 %v5131_v16, %s4251_s14 }
 0x260   :  { %1161 = vrot.lane.b32.xlu1 %v1152_v43, %s4251_s14  ;;  %v5585_v18 = vpop.permute.xlu0 %902  ;;  %2256 = vmatpush1.bf16.msra.mxu1 %v4143_v11 }
 0x261   :  { %v5587_v45 = vpop.permute.xlu1 %1195  ;;  %2257 = vmatprep.subr.bf16.mxu1 %v6472_v30 }
 0x262   :  { %777 = vrot.lane.b32.xlu0 %v5135_v26, %s4251_s14 }
 0x264   :  { %1239 = vrot.lane.b32.xlu1 %v1230_v8, %s4250_s30  ;;  %v5594_v16 = vpop.permute.xlu0 %1187  ;;  %v666_v8 = vld [vmem:[#allocation2 + $0x63] ss:$2 sm:$0x1] }
 0x265   :  { %v5599_v7 = vpop.permute.xlu1 %1273 }
 0x266   :  { %863 = vrot.lane.b32.xlu0 %v5155_v60, %s4250_s30  ;;  %v4144_v60 = vld [vmem:[%s6432_s3 + $0x58] sm:$0xff]  }
 0x267   :  { %2258 = vmatpush1.bf16.msra.mxu1 %v4144_v60 }
 0x268   :  { %865 = vrot.lane.b32.xlu1 %v5148_v4, %s4250_s30  ;;  %v5609_v62 = vpop.permute.xlu0 %1008  ;;  %2259 = vmatprep.subr.bf16.mxu1 %v6472_v30 }
 0x269   :  { %v5611_v9 = vpop.permute.xlu1 %816 }
 0x26a   :  { %1153 = vrot.lane.b32.xlu0 %v5135_v26, %s4251_s14  ;;  %v4145_v26 = vld [vmem:[%s6432_s3 + $0x60] sm:$0xff]  }
 0x26b   :  { %2260 = vmatpush1.bf16.msra.mxu1 %v4145_v26 }
 0x26c   :  { %1155 = vrot.lane.b32.xlu1 %v5169_v3, %s4251_s14  ;;  %v5621_v0 = vpop.permute.xlu0 %1265  ;;  %2261 = vmatprep.subr.bf16.mxu1 %v6472_v30 }
 0x26d   :  { %v5623_v2 = vpop.permute.xlu1 %904 }
 0x26e   :  { %967 = vrot.lane.b32.xlu0 %v5193_v15, %s4254_s0  ;;  %v4146_v15 = vld [vmem:[%s6432_s3 + $0x68] sm:$0xff]  }
 0x26f   :  { %2262 = vmatpush1.bf16.msra.mxu1 %v4146_v15  ;;  %v1491_v15 = vrot.slane %v5449_v23, 4  ;;  %v6572_v23 = vld [vmem:[#allocation28_spill] sm:$0xff] }
 0x270   :  { %969 = vrot.lane.b32.xlu1 %v5178_v13, %s4254_s0  ;;  %v5633_v39 = vpop.permute.xlu0 %1723 }
 0x271   :  { %v5635_v56 = vpop.permute.xlu1 %1189 }
 0x272   :  { %1231 = vrot.lane.b32.xlu0 %v5148_v4, %s4250_s30 }
 0x274   :  { %1233 = vrot.lane.b32.xlu1 %v5197_v34, %s4250_s30  ;;  %v5645_v35 = vpop.permute.xlu0 %910 }
 0x275   :  { %v5647_v5 = vpop.permute.xlu1 %1010 }
 0x276   :  { %1325 = vrot.lane.b32.xlu0 %v5178_v13, %s4254_s0  ;;  %v631_v13 = vmax.f32 %v610_v36, %v624_v21  ;;  %v6571_v21 = vld [vmem:[#allocation27_spill] sm:$0xff] }
 0x278   :  { %1327 = vrot.lane.b32.xlu1 %v5201_v22, %s4254_s0  ;;  %v5653_v4 = vpop.permute.xlu0 %818  ;;  %v652_v43 = vmax.f32 %v631_v13, %v645_v33 }
 0x279   :  { %v5655_v55 = vpop.permute.xlu1 %1267 }
 0x27a   :  { %779 = vrot.lane.b32.xlu0 %v5169_v3, %s4251_s14 }
 0x27c   :  { %781 = vrot.lane.b32.xlu1 %v5235_v41, %s4251_s14  ;;  %v5661_v14 = vpop.permute.xlu0 %906 }
 0x27d   :  { %v5663_v53 = vpop.permute.xlu1 %820 }
 0x27e   :  { %867 = vrot.lane.b32.xlu0 %v5197_v34, %s4250_s30  ;;  %v673_v34 = vmax.f32 %v652_v43, %v666_v8  ;;  %v1500_v43 = vsel %vm5161_vm14, %v1491_v15, %v5082_v24 }
 0x280   :  { %869 = vrot.lane.b32.xlu1 %v5214_v44, %s4250_s30  ;;  %v5669_v31 = vpop.permute.xlu0 %1191  ;;  %vm680_vm10 = vcmp.ge.f32.partialorder %v673_v34, 0.0 }
 0x281   :  { %v5671_v3 = vpop.permute.xlu1 %908 }
 0x282   :  { %1157 = vrot.lane.b32.xlu0 %v5235_v41, %s4251_s14  ;;  %v687_v41 = vmul.f32 0.01, %v673_v34 }
 0x284   :  { %1159 = vrot.lane.b32.xlu1 %v5186_v25, %s4251_s14  ;;  %v5677_v28 = vpop.permute.xlu0 %1012  ;;  %v6570_v25 = vld [vmem:[#allocation25_spill] sm:$0xff]  ;;  %v694_v36 = vsel %vm680_vm10, %v673_v34, %v687_v41  ;;  %vm883_vm10 = vcmask 517504  }
 0x285   :  { %v5679_v59 = vpop.permute.xlu1 %1193  ;;  %v6573_v41 = vld [vmem:[#allocation29_spill] sm:$0xff] }
 0x286   :  { %971 = vrot.lane.b32.xlu0 %v5201_v22, %s4254_s0 }
 0x288   :  { %973 = vrot.lane.b32.xlu1 %v5242_v38, %s4254_s0  ;;  %v5685_v11 = vpop.permute.xlu0 %1269 }
 0x289   :  { %v5687_v60 = vpop.permute.xlu1 %1014 }
 0x28a   :  { %1235 = vrot.lane.b32.xlu0 %v5214_v44, %s4250_s30  ;;  %v3938_v44 = vpack.c.bf16 %v694_v36, %v694_v36 }
 0x28c   :  { %1237 = vrot.lane.b32.xlu1 %v6570_v25, %s4250_s30  ;;  %v5693_v26 = vpop.permute.xlu0 %1016  ;;  %v6574_v25 = vld [vmem:[#allocation26_spill] sm:$0xff] }
 0x28d   :  { %v5696_v22 = vpop.permute.xlu1 %1271  ;;  %v1319_v36 = vrot.slane %v6574_v25, 4  ;;  %v1358_v25 = vld [vmem:[#allocation2 + $0xc4] ss:$2 sm:$0x1] }
 0x28e   :  { %1329 = vrot.lane.b32.xlu0 %v5242_v38, %s4254_s0  ;;  %v1321_v38 = vshll.u32 %v3938_v44, 16  ;;  %v6576_v44 = vld [vmem:[#allocation32_spill] sm:$0xff] }
 0x290   :  { %1331 = vrot.lane.b32.xlu1 %v6571_v21, %s4254_s0  ;;  %v5702_v13 = vpop.permute.xlu0 %1569  ;;  %v6575_v21 = vld [vmem:[#allocation30_spill] sm:$0xff]  ;;  %v1323_v24 = vrot.slane %v1321_v38, 7  ;;  %v6577_v38 = vld [vmem:[#allocation31_spill] sm:$0xff] }
 0x291   :  { %v5704_v33 = vpop.permute.xlu1 %1567 }
 0x292   :  { %1533 = vrot.lane.b32.xlu0 %v1500_v43, %s4251_s14  ;;  %v1324_v43 = vsel %vm5161_vm14, %v1319_v36, %v1323_v24  ;;  %v1379_v36 = vmax.f32 %v1358_v25, %v1372_v49  ;;  %v6578_v24 = vld [vmem:[#allocation33_spill] sm:$0xff] }
 0x294   :  { %1882 = vrot.lane.b32.xlu1 %v6572_v23, %s4251_s14  ;;  %v5712_v8 = vpop.permute.xlu0 %1917 }
 0x295   :  { %v5714_v34 = vpop.permute.xlu1 %1915 }
 0x296   :  { %975 = vrot.lane.b32.xlu0 %v6573_v41, %s4254_s0 }
 0x298   :  { %1688 = vrot.lane.b32.xlu1 %v6575_v21, %s4254_s0  ;;  %v5721_v30 = vpop.permute.xlu0 %1727 }
 0x299   :  { %v5723_v15 = vpop.permute.xlu1 %1725 }
 0x29a   :  { %1686 = vrot.lane.b32.xlu0 %v6576_v44, %s4254_s0  ;;  %v1393_v44 = vld [vmem:[#allocation2 + $0xc6] ss:$2 sm:$0x1] }
 0x29b   :  { %v1400_v63 = vmax.f32 %v1379_v36, %v1393_v44  ;;  %v6580_v36 = vld [vmem:[#allocation35_spill] sm:$0xff] }
 0x29c   :  { %1333 = vrot.lane.b32.xlu1 %v1324_v43, %s4254_s0  ;;  %v5730_v17 = vpop.permute.xlu0 %1731 }
 0x29d   :  { %v5732_v41 = vpop.permute.xlu1 %1571 }
 0x29e   :  { %2031 = vrot.lane.b32.xlu0 %v6575_v21, %s4254_s0 }
 0x2a0   :  { %1774 = vrot.lane.b32.xlu1 %v6577_v38, %s4252_s15  ;;  %v1605_v52 = vpop.permute.xlu0 %1604  ;;  %v6579_v38 = vld [vmem:[#allocation34_spill] sm:$0xff] }
 0x2a1   :  { %v5738_v6 = vpop.permute.xlu1 %1919 }
 0x2a2   :  { %1535 = vrot.lane.b32.xlu0 %v6572_v23, %s4251_s14  ;;  %v1414_v23 = vld [vmem:[#allocation2 + $0xc7] ss:$2 sm:$0x1] }
 0x2a4   :  { %2033 = vrot.lane.b32.xlu1 %v6578_v24, %s4254_s0  ;;  %v1881_v43 = vpop.permute.xlu0 %1880 }
 0x2a5   :  { %1895 = vst.msk [vmem:[#allocation3 + $0x24] sm:$0xc] %vm1546_vm8, %v1881_v43  ;;  %v1421_v43 = vmax.f32 %v1400_v63, %v1414_v23  ;;  %v6583_v63 = vld [vmem:[#allocation36_spill] sm:$0xff] }
 0x2a6   :  { %v5745_v21 = vpop.permute.xlu1 %1729  ;;  %1884 = vrot.lane.b32.xlu0 %v6579_v38, %s4251_s14  ;;  %1928 = vst.msk [vmem:[#allocation3 + $0x24] sm:$0xc] %vm1580_vm2, %v5574_v51 }
 0x2a7   :  { %vm1428_vm7 = vcmp.ge.f32.partialorder %v1421_v43, 0.0 }
 0x2a8   :  { %1537 = vrot.lane.b32.xlu1 %v6579_v38, %s4251_s14  ;;  %v1952_v49 = vpop.permute.xlu0 %1951  ;;  %v1435_v38 = vmul.f32 0.01, %v1421_v43 }
 0x2a9   :  { %1966 = vst.msk [vmem:[#allocation3 + $0x24] sm:$0xc] %vm1619_vm3, %v1952_v49 }
 0x2aa   :  { %v5754_v25 = vpop.permute.xlu1 %1573  ;;  %1690 = vrot.lane.b32.xlu0 %v6578_v24, %s4254_s0  ;;  %1986 = vst.msk [vmem:[#allocation3 + $0x24] sm:$0xc] %vm1640_vm6, %v5502_v10  ;;  %v1442_v23 = vsel %vm1428_vm7, %v1421_v43, %v1435_v38  ;;  %vm6485_vm7 = vcmask 650752  }
 0x2ac   :  { %1886 = vrot.lane.b32.xlu1 %v6580_v36, %s4251_s14  ;;  %v5762_v51 = vpop.permute.xlu0 %1056 }
 0x2ae   :  { %v5764_v44 = vpop.permute.xlu1 %1921  ;;  %1776 = vrot.lane.b32.xlu0 %v6582_v54, %s4252_s15  ;;  %v3952_v54 = vpack.c.bf16 %v1442_v23, %v1442_v23 }
 0x2af   :  { %6581 = vst [vmem:[#allocation17_spill] sm:$0xff] %v5764_v44 }
 0x2b0   :  { %1692 = vrot.lane.b32.xlu1 %v6583_v63, %s4254_s0  ;;  %v5770_v49 = vpop.permute.xlu0 %1060  ;;  %v2027_v43 = vshll.u32 %v3952_v54, 16 }
 0x2b2   :  { %v1532_v24 = vpop.permute.xlu1 %1531  ;;  %2035 = vrot.lane.b32.xlu0 %v6583_v63, %s4254_s0  ;;  %v2029_v38 = vrot.slane %v2027_v43, 5 }
 0x2b3   :  { %1547 = vst.msk [vmem:[#allocation3 + $0x20] sm:$0xc] %vm1546_vm8, %v1532_v24  ;;  %vm922_vm8 = vcmask 648704  }
 0x2b4   :  { %1581 = vst.msk [vmem:[#allocation3 + $0x20] sm:$0xc] %vm1580_vm2, %v5558_v50  ;;  %1778 = vrot.lane.b32.xlu1 %v5384_v32, %s4252_s15  ;;  %v5780_v10 = vpop.permute.xlu0 %1064  ;;  %vm790_vm2 = vcmask 257152  }
 0x2b5   :  { %1620 = vst.msk [vmem:[#allocation3 + $0x20] sm:$0xc] %vm1619_vm3, %v1605_v52  ;;  %v2025_v52 = vrot.slane %v5389_v1, 4  ;;  %vm6483_vm3 = vcmask 388352  }
 0x2b6   :  { %v5782_v44 = vpop.permute.xlu1 %1058  ;;  %1641 = vst.msk [vmem:[#allocation3 + $0x20] sm:$0xc] %vm1640_vm6, %v5482_v12  ;;  %1539 = vrot.lane.b32.xlu0 %v6580_v36, %s4251_s14  ;;  %vm6484_vm6 = vcmask 519552  }
 0x2b7   :  { %v2030_v63 = vsel %vm5115_vm11, %v2025_v52, %v2029_v38 }
 0x2b8   :  { %2037 = vrot.lane.b32.xlu1 %v5394_v42, %s4254_s0  ;;  %v5790_v50 = vpop.permute.xlu0 %1772 }
 0x2ba   :  { %v5792_v32 = vpop.permute.xlu1 %1062  ;;  %1694 = vrot.lane.b32.xlu0 %v5394_v42, %s4254_s0 }
 0x2bc   :  { %1888 = vrot.lane.b32.xlu1 %v5408_v48, %s4251_s14  ;;  %v5799_v12 = vpop.permute.xlu0 %1608 }
 0x2be   :  { %v5801_v36 = vpop.permute.xlu1 %1606  ;;  %1780 = vrot.lane.b32.xlu0 %v5415_v29, %s4252_s15 }
 0x2c0   :  { %2039 = vrot.lane.b32.xlu1 %v2030_v63, %s4254_s0  ;;  %v5808_v24 = vpop.permute.xlu0 %1955 }
 0x2c2   :  { %v5810_v42 = vpop.permute.xlu1 %1953 }
 0x2c4   :  { %v5812_v1 = vpop.permute.xlu0 %1612 }
 0x2c6   :  { %v5814_v48 = vpop.permute.xlu1 %1610 }
 0x2c8   :  { %v784_v23 = vpop.permute.xlu0 %783 }
 0x2c9   :  { %796 = vst.msk [vmem:[#allocation3 + $0x20] sm:$0x3] %vm795_vm9, %v784_v23 }
 0x2ca   :  { %v5816_v54 = vpop.permute.xlu1 %1957  ;;  %835 = vst.msk [vmem:[#allocation3 + $0x20] sm:$0x3] %vm834_vm1, %v5576_v47 }
 0x2cc   :  { %v872_v29 = vpop.permute.xlu0 %871 }
 0x2cd   :  { %884 = vst.msk [vmem:[#allocation3 + $0x20] sm:$0x3] %vm883_vm10, %v872_v29 }
 0x2ce   :  { %v5821_v43 = vpop.permute.xlu1 %1959  ;;  %923 = vst.msk [vmem:[#allocation3 + $0x20] sm:$0x3] %vm922_vm8, %v5645_v35 }
 0x2d0   :  { %v776_v52 = vpop.permute.xlu0 %775 }
 0x2d1   :  { %791 = vst.msk [vmem:[#allocation3] sm:$0xf] %vm790_vm2, %v776_v52 }
 0x2d2   :  { %v1162_v38 = vpop.permute.xlu1 %1161  ;;  %830 = vst.msk [vmem:[#allocation3] sm:$0xf] %vm6483_vm3, %v5560_v20 }
 0x2d3   :  { %1172 = vst.msk [vmem:[#allocation3 + $0x24] sm:$0x3] %vm795_vm9, %v1162_v38  ;;  %vm982_vm9 = vcmask 781952  }
 0x2d4   :  { %1206 = vst.msk [vmem:[#allocation3 + $0x24] sm:$0x3] %vm834_vm1, %v5587_v45  ;;  %v778_v47 = vpop.permute.xlu0 %777  ;;  %vm1023_vm1 = vcmask 913152  }
 0x2d5   :  { %792 = vst.msk [vmem:[#allocation3 + $0x8] sm:$0xf] %vm790_vm2, %v778_v47 }
 0x2d6   :  { %v1240_v63 = vpop.permute.xlu1 %1239  ;;  %831 = vst.msk [vmem:[#allocation3 + $0x8] sm:$0xf] %vm6483_vm3, %v5611_v9 }
 0x2d7   :  { %1250 = vst.msk [vmem:[#allocation3 + $0x24] sm:$0x3] %vm883_vm10, %v1240_v63  ;;  %vm6482_vm10 = vcmask 1044352  }
 0x2d8   :  { %1284 = vst.msk [vmem:[#allocation3 + $0x24] sm:$0x3] %vm922_vm8, %v5599_v7  ;;  %v864_v35 = vpop.permute.xlu0 %863  ;;  %vm2219_vm8 = vcmask 785408  }
 0x2d9   :  { %879 = vst.msk [vmem:[#allocation3] sm:$0xf] %vm6484_vm6, %v864_v35 }
 0x2da   :  { %v866_v23 = vpop.permute.xlu1 %865  ;;  %918 = vst.msk [vmem:[#allocation3] sm:$0xf] %vm6485_vm7, %v5585_v18 }
 0x2db   :  { %880 = vst.msk [vmem:[#allocation3 + $0x8] sm:$0xf] %vm6484_vm6, %v866_v23 }
 0x2dc   :  { %919 = vst.msk [vmem:[#allocation3 + $0x8] sm:$0xf] %vm6485_vm7, %v5623_v2  ;;  %v1154_v20 = vpop.permute.xlu0 %1153 }
 0x2dd   :  { %1168 = vst.msk [vmem:[#allocation3 + $0x4] sm:$0xf] %vm790_vm2, %v1154_v20 }
 0x2de   :  { %v1156_v45 = vpop.permute.xlu1 %1155  ;;  %1202 = vst.msk [vmem:[#allocation3 + $0x4] sm:$0xf] %vm6483_vm3, %v5594_v16 }
 0x2df   :  { %1169 = vst.msk [vmem:[#allocation3 + $0xc] sm:$0xf] %vm790_vm2, %v1156_v45 }
 0x2e0   :  { %1203 = vst.msk [vmem:[#allocation3 + $0xc] sm:$0xf] %vm6483_vm3, %v5635_v56  ;;  %v968_v7 = vpop.permute.xlu0 %967 }
 0x2e1   :  { %983 = vst.msk [vmem:[#allocation3] sm:$0xf] %vm982_vm9, %v968_v7 }
 0x2e2   :  { %v970_v18 = vpop.permute.xlu1 %969  ;;  %1024 = vst.msk [vmem:[#allocation3] sm:$0xf] %vm1023_vm1, %v5609_v62 }
 0x2e3   :  { %984 = vst.msk [vmem:[#allocation3 + $0x8] sm:$0xf] %vm982_vm9, %v970_v18 }
 0x2e4   :  { %1025 = vst.msk [vmem:[#allocation3 + $0x8] sm:$0xf] %vm1023_vm1, %v5647_v5  ;;  %v1232_v16 = vpop.permute.xlu0 %1231 }
 0x2e5   :  { %1072 = vst.msk [vmem:[#allocation3] sm:$0xf] %vm6482_vm10, %v5762_v51  ;;  %1073 = vst.msk [vmem:[#allocation3 + $0x8] sm:$0xf] %vm6482_vm10, %v5782_v44 }
 0x2e6   :  { %v1234_v9 = vpop.permute.xlu1 %1233  ;;  %1246 = vst.msk [vmem:[#allocation3 + $0x4] sm:$0xf] %vm6484_vm6, %v1232_v16 }
 0x2e7   :  { %1247 = vst.msk [vmem:[#allocation3 + $0xc] sm:$0xf] %vm6484_vm6, %v1234_v9 }
 0x2e8   :  { %1280 = vst.msk [vmem:[#allocation3 + $0x4] sm:$0xf] %vm6485_vm7, %v5621_v0  ;;  %1281 = vst.msk [vmem:[#allocation3 + $0xc] sm:$0xf] %vm6485_vm7, %v5655_v55  ;;  %v1326_v62 = vpop.permute.xlu0 %1325 }
 0x2e9   :  { %1340 = vst.msk [vmem:[#allocation3 + $0x4] sm:$0xf] %vm982_vm9, %v1326_v62 }
 0x2ea   :  { %v1328_v2 = vpop.permute.xlu1 %1327 }
 0x2eb   :  { %1341 = vst.msk [vmem:[#allocation3 + $0xc] sm:$0xf] %vm982_vm9, %v1328_v2 }
 0x2ec   :  { %v780_v56 = vpop.permute.xlu0 %779  ;;  %v4147_v51 = vld [vmem:[#allocation3] ss:$8 sps:$4 sm:$0xff]  }
 0x2ed   :  { %793 = vst.msk [vmem:[#allocation3 + $0x10] sm:$0xf] %vm790_vm2, %v780_v56 }
 0x2ee   :  { %v782_v5 = vpop.permute.xlu1 %781  ;;  %832 = vst.msk [vmem:[#allocation3 + $0x10] sm:$0xf] %vm6483_vm3, %v5653_v4 }
 0x2ef   :  { %794 = vst.msk [vmem:[#allocation3 + $0x18] sm:$0xf] %vm790_vm2, %v782_v5 }
 0x2f0   :  { %833 = vst.msk [vmem:[#allocation3 + $0x18] sm:$0xf] %vm6483_vm3, %v5663_v53  ;;  %v868_v0 = vpop.permute.xlu0 %867 }
 0x2f1   :  { %881 = vst.msk [vmem:[#allocation3 + $0x10] sm:$0xf] %vm6484_vm6, %v868_v0 }
 0x2f2   :  { %v870_v55 = vpop.permute.xlu1 %869  ;;  %v4149_v44 = vld [vmem:[#allocation3 + $0x4] ss:$8 sps:$4 sm:$0xff]   ;;  %920 = vst.msk [vmem:[#allocation3 + $0x10] sm:$0xf] %vm6485_vm7, %v5661_v14 }
 0x2f3   :  { %882 = vst.msk [vmem:[#allocation3 + $0x18] sm:$0xf] %vm6484_vm6, %v870_v55  ;;  %3828 = vmatprep.mubr.msk.bf16.mxu1 %vm2219_vm8, %v4149_v44 }
 0x2f4   :  { %921 = vst.msk [vmem:[#allocation3 + $0x18] sm:$0xf] %vm6485_vm7, %v5671_v3  ;;  %v1158_v4 = vpop.permute.xlu0 %1157  ;;  %2268 = vmatmul.mubr.bf16.vlgmr.msra.gmra.mrb[0].mxu1 %v4147_v51 }
 0x2f5   :  { %1170 = vst.msk [vmem:[#allocation3 + $0x14] sm:$0xf] %vm790_vm2, %v1158_v4 }
 0x2f6   :  { %v1160_v53 = vpop.permute.xlu1 %1159  ;;  %1204 = vst.msk [vmem:[#allocation3 + $0x14] sm:$0xf] %vm6483_vm3, %v5669_v31 }
 0x2f7   :  { %1171 = vst.msk [vmem:[#allocation3 + $0x1c] sm:$0xf] %vm790_vm2, %v1160_v53 }
 0x2f8   :  { %1205 = vst.msk [vmem:[#allocation3 + $0x1c] sm:$0xf] %vm6483_vm3, %v5679_v59  ;;  %v972_v29 = vpop.permute.xlu0 %971 }
 0x2f9   :  { %985 = vst.msk [vmem:[#allocation3 + $0x10] sm:$0xf] %vm982_vm9, %v972_v29 }
 0x2fa   :  { %v974_v14 = vpop.permute.xlu1 %973  ;;  %1026 = vst.msk [vmem:[#allocation3 + $0x10] sm:$0xf] %vm1023_vm1, %v5677_v28 }
 0x2fb   :  { %986 = vst.msk [vmem:[#allocation3 + $0x18] sm:$0xf] %vm982_vm9, %v974_v14 }
 0x2fc   :  { %1027 = vst.msk [vmem:[#allocation3 + $0x18] sm:$0xf] %vm1023_vm1, %v5687_v60  ;;  %v1236_v31 = vpop.permute.xlu0 %1235 }
 0x2fd   :  { %1074 = vst.msk [vmem:[#allocation3 + $0x10] sm:$0xf] %vm6482_vm10, %v5770_v49  ;;  %1075 = vst.msk [vmem:[#allocation3 + $0x18] sm:$0xf] %vm6482_vm10, %v5792_v32  ;;  %vm1076_vm10 = vcmask 1042304  }
 0x2fe   :  { %v1238_v3 = vpop.permute.xlu1 %1237  ;;  %1248 = vst.msk [vmem:[#allocation3 + $0x14] sm:$0xf] %vm6484_vm6, %v1236_v31 }
 0x2ff   :  { %1249 = vst.msk [vmem:[#allocation3 + $0x1c] sm:$0xf] %vm6484_vm6, %v1238_v3 }
 0x300   :  { %1282 = vst.msk [vmem:[#allocation3 + $0x14] sm:$0xf] %vm6485_vm7, %v5685_v11  ;;  %1283 = vst.msk [vmem:[#allocation3 + $0x1c] sm:$0xf] %vm6485_vm7, %v5696_v22  ;;  %v1330_v28 = vpop.permute.xlu0 %1329 }
 0x301   :  { %1342 = vst.msk [vmem:[#allocation3 + $0x14] sm:$0xf] %vm982_vm9, %v1330_v28 }
 0x302   :  { %v1332_v59 = vpop.permute.xlu1 %1331 }
 0x303   :  { %1343 = vst.msk [vmem:[#allocation3 + $0x1c] sm:$0xf] %vm982_vm9, %v1332_v59 }
 0x304   :  { %v1534_v60 = vpop.permute.xlu0 %1533 }
 0x305   :  { %1548 = vst.msk [vmem:[#allocation3 + $0x28] sm:$0xf] %vm790_vm2, %v1534_v60 }
 0x306   :  { %v1883_v49 = vpop.permute.xlu1 %1882  ;;  %1582 = vst.msk [vmem:[#allocation3 + $0x28] sm:$0xf] %vm6483_vm3, %v5704_v33 }
 0x307   :  { %1896 = vst.msk [vmem:[#allocation3 + $0x2c] sm:$0xf] %vm790_vm2, %v1883_v49 }
 0x308   :  { %1929 = vst.msk [vmem:[#allocation3 + $0x2c] sm:$0xf] %vm6483_vm3, %v5714_v34  ;;  %v976_v11 = vpop.permute.xlu0 %975  ;;  %v2053_v22 = vld [vmem:[#allocation3 + $0x10] sm:$0xff]  ;;  %vm1701_vm3 = vcmask 781954  }
 0x309   :  { %1621 = vst.msk [vmem:[#allocation3 + $0x28] sm:$0xf] %vm6484_vm6, %v5801_v36  ;;  %1967 = vst.msk [vmem:[#allocation3 + $0x2c] sm:$0xf] %vm6484_vm6, %v5810_v42  ;;  %vm1738_vm6 = vcmask 913154  }
 0x30a   :  { %1642 = vst.msk [vmem:[#allocation3 + $0x28] sm:$0xf] %vm6485_vm7, %v5484_v40  ;;  %1987 = vst.msk [vmem:[#allocation3 + $0x2c] sm:$0xf] %vm6485_vm7, %v5504_v57  ;;  %v1689_v33 = vpop.permute.xlu1 %1688  ;;  %v2054_v34 = vld [vmem:[#allocation3 + $0x18] sm:$0xff]  ;;  %vm1787_vm7 = vcmask 1044354  }
 0x30b   :  { %988 = vst.msk [vmem:[#allocation3 + $0x20] sm:$0x3] %vm987_vm5, %v976_v11  ;;  %v4150_v32 = vld [vmem:[#allocation3 + $0x14] ss:$8 sps:$4 sm:$0xff]   ;;  %v3806_v36 = vcombine.low %v2053_v22, %v2054_v34 }
 0x30c   :  { %1703 = vst.msk [vmem:[#allocation3 + $0x28] sm:$0xf] %vm982_vm9, %v1689_v33  ;;  %3829 = vmatprep.mubr.msk.bf16.mxu1 %vm2219_vm8, %v4150_v32  ;;  %v1687_v40 = vpop.permute.xlu0 %1686 }
 0x30d   :  { %1029 = vst.msk [vmem:[#allocation3 + $0x20] sm:$0x3] %vm1028_vm0, %v5693_v26  ;;  %2276 = vmatmul.mubr.bf16.gmra.mrb[4].mxu1 %v3806_v36  ;;  %vm6584_vm0 = vcmask 1044352  }
 0x30e   :  { %1740 = vst.msk [vmem:[#allocation3 + $0x28] sm:$0xf] %vm1023_vm1, %v5723_v15  ;;  %v1334_v57 = vpop.permute.xlu1 %1333 }
 0x30f   :  { %1077 = vst.msk [vmem:[#allocation3 + $0x20] sm:$0x3] %vm1076_vm10, %v5780_v10  ;;  %vm6585_vm10 = vcmask 388352  }
 0x310   :  { %1702 = vst.msk [vmem:[#allocation3 + $0x20] sm:$0xc] %vm1701_vm3, %v1687_v40  ;;  %v2032_v26 = vpop.permute.xlu0 %2031 }
 0x311   :  { %1344 = vst.msk [vmem:[#allocation3 + $0x24] sm:$0x3] %vm987_vm5, %v1334_v57  ;;  %vm6586_vm5 = vcmask 519552  }
 0x312   :  { %1739 = vst.msk [vmem:[#allocation3 + $0x20] sm:$0xc] %vm1738_vm6, %v5633_v39  ;;  %v1775_v42 = vpop.permute.xlu1 %1774  ;;  %vm6587_vm6 = vcmask 650752  }
 0x313   :  { %1788 = vst.msk [vmem:[#allocation3 + $0x20] sm:$0xc] %vm1787_vm7, %v5790_v50 }
 0x314   :  { %2046 = vst.msk [vmem:[#allocation3 + $0x24] sm:$0xc] %vm1701_vm3, %v2032_v26  ;;  %v1536_v15 = vpop.permute.xlu0 %1535  ;;  %vm6588_vm3 = vmmov %vm6585_vm10 }
 0x315   :  { %1789 = vst.msk [vmem:[#allocation3 + $0x28] sm:$0xf] %vm6584_vm0, %v1775_v42  ;;  %vm6589_vm7 = vmmov %vm6588_vm3 }
 0x316   :  { %v2034_v10 = vpop.permute.xlu1 %2033  ;;  %1549 = vst.msk [vmem:[#allocation3 + $0x30] sm:$0xf] %vm790_vm2, %v1536_v15  ;;  %vm6590_vm0 = vmmov %vm6586_vm5 }
 0x317   :  { %2047 = vst.msk [vmem:[#allocation3 + $0x2c] sm:$0xf] %vm982_vm9, %v2034_v10 }
 0x318   :  { %1583 = vst.msk [vmem:[#allocation3 + $0x30] sm:$0xf] %vm6585_vm10, %v5702_v13  ;;  %v1885_v39 = vpop.permute.xlu0 %1884  ;;  %vm6591_vm10 = vmmov %vm6590_vm0 }
 0x319   :  { %1622 = vst.msk [vmem:[#allocation3 + $0x30] sm:$0xf] %vm6586_vm5, %v5799_v12  ;;  %vm6592_vm5 = vmmov %vm6587_vm6 }
 0x31a   :  { %1643 = vst.msk [vmem:[#allocation3 + $0x30] sm:$0xf] %vm6587_vm6, %v5518_v27  ;;  %v1538_v50 = vpop.permute.xlu1 %1537  ;;  %vm6593_vm6 = vmmov %vm6592_vm5 }
 0x31b   :  { %1897 = vst.msk [vmem:[#allocation3 + $0x34] sm:$0xf] %vm790_vm2, %v1885_v39  ;;  %1550 = vst.msk [vmem:[#allocation3 + $0x38] sm:$0xf] %vm790_vm2, %v1538_v50 }
 0x31c   :  { %1930 = vst.msk [vmem:[#allocation3 + $0x34] sm:$0xf] %vm6588_vm3, %v5712_v8  ;;  %v1691_v27 = vpop.permute.xlu0 %1690  ;;  %v2055_v8 = vld [vmem:[#allocation3 + $0x20] sm:$0xff] }
 0x31d   :  { %1584 = vst.msk [vmem:[#allocation3 + $0x38] sm:$0xf] %vm6589_vm7, %v5732_v41  ;;  %vm6594_vm7 = vmmov %vm6590_vm0 }
 0x31e   :  { %1968 = vst.msk [vmem:[#allocation3 + $0x34] sm:$0xf] %vm6590_vm0, %v5808_v24  ;;  %v1887_v13 = vpop.permute.xlu1 %1886  ;;  %v2056_v12 = vld [vmem:[#allocation3 + $0x28] sm:$0xff]  ;;  %vm6595_vm0 = vmmov %vm6592_vm5 }
 0x31f   :  { %1623 = vst.msk [vmem:[#allocation3 + $0x38] sm:$0xf] %vm6591_vm10, %v5814_v48  ;;  %v4152_v52 = vld [vmem:[#allocation3 + $0x24] ss:$8 sps:$4 sm:$0xff]   ;;  %v3808_v41 = vcombine.low %v2055_v8, %v2056_v12  ;;  %vm6596_vm10 = vcmask 1044352  }
 0x320   :  { %1988 = vst.msk [vmem:[#allocation3 + $0x34] sm:$0xf] %vm6592_vm5, %v5531_v19  ;;  %3830 = vmatprep.mubr.msk.bf16.mxu1 %vm2219_vm8, %v4152_v52  ;;  %vm6597_vm5 = vmmov %vm6596_vm10 }
 0x321   :  { %1644 = vst.msk [vmem:[#allocation3 + $0x38] sm:$0xf] %vm6593_vm6, %v5520_v46  ;;  %v1777_v46 = vpop.permute.xlu0 %1776  ;;  %2284 = vmatmul.mubr.bf16.gmra.mrb[8].mxu1 %v3808_v41  ;;  %vm6598_vm6 = vmmov %vm6588_vm3 }
 0x322   :  { %1704 = vst.msk [vmem:[#allocation3 + $0x30] sm:$0xf] %vm982_vm9, %v1691_v27  ;;  %v1693_v19 = vpop.permute.xlu1 %1692 }
 0x323   :  { %1898 = vst.msk [vmem:[#allocation3 + $0x3c] sm:$0xf] %vm790_vm2, %v1887_v13 }
 0x324   :  { %1741 = vst.msk [vmem:[#allocation3 + $0x30] sm:$0xf] %vm1023_vm1, %v5721_v30 }
 0x325   :  { %1931 = vst.msk [vmem:[#allocation3 + $0x3c] sm:$0xf] %vm6588_vm3, %v5738_v6  ;;  %v2036_v30 = vpop.permute.xlu0 %2035  ;;  %vm6599_vm3 = vmmov %vm6594_vm7 }
 0x326   :  { %1969 = vst.msk [vmem:[#allocation3 + $0x3c] sm:$0xf] %vm6594_vm7, %v5816_v54  ;;  %v1779_v6 = vpop.permute.xlu1 %1778  ;;  %vm6600_vm7 = vmmov %vm6595_vm0  ;;  %v6601_v54 = vld [vmem:[#allocation17_spill] sm:$0xff] }
 0x327   :  { %1989 = vst.msk [vmem:[#allocation3 + $0x3c] sm:$0xf] %vm6595_vm0, %v5533_v61  ;;  %vm6602_vm0 = vmmov %vm6598_vm6 }
 0x328   :  { %1790 = vst.msk [vmem:[#allocation3 + $0x30] sm:$0xf] %vm6596_vm10, %v1777_v46  ;;  %vm6603_vm10 = vmmov %vm6599_vm3 }
 0x329   :  { %1705 = vst.msk [vmem:[#allocation3 + $0x38] sm:$0xf] %vm982_vm9, %v1693_v19  ;;  %2048 = vst.msk [vmem:[#allocation3 + $0x34] sm:$0xf] %vm982_vm9, %v2036_v30  ;;  %v1540_v24 = vpop.permute.xlu0 %1539 }
 0x32a   :  { %1742 = vst.msk [vmem:[#allocation3 + $0x38] sm:$0xf] %vm1023_vm1, %v5745_v21  ;;  %v2038_v48 = vpop.permute.xlu1 %2037 }
 0x32b   :  { %1791 = vst.msk [vmem:[#allocation3 + $0x38] sm:$0xf] %vm6597_vm5, %v1779_v6  ;;  %vm6605_vm5 = vmmov %vm6600_vm7  ;;  %v4159_v6 = vld [vmem:[%s6434_s5 + $0x80] sm:$0xff]  }
 0x32c   :  { %1551 = vst.msk [vmem:[#allocation3 + $0x40] sm:$0xf] %vm790_vm2, %v1540_v24  ;;  %3064 = vmatpush1.bf16.msra.mxu0 %v4159_v6 }
 0x32d   :  { %2049 = vst.msk [vmem:[#allocation3 + $0x3c] sm:$0xf] %vm982_vm9, %v2038_v48  ;;  %v1695_v61 = vpop.permute.xlu0 %1694  ;;  %v4160_v48 = vld [vmem:[%s6434_s5 + $0x88] sm:$0xff]  }
 0x32e   :  { %1585 = vst.msk [vmem:[#allocation3 + $0x40] sm:$0xf] %vm6598_vm6, %v5754_v25  ;;  %v1889_v21 = vpop.permute.xlu1 %1888  ;;  %vm6606_vm6 = vcmask 1044352  }
 0x32f   :  { %1624 = vst.msk [vmem:[#allocation3 + $0x40] sm:$0xf] %vm6599_vm3, %v5812_v1  ;;  %v6604_v1 = vld [vmem:[#allocation11_spill] sm:$0xff] }
 0x330   :  { %1645 = vst.msk [vmem:[#allocation3 + $0x40] sm:$0xf] %vm6600_vm7, %v5544_v58  ;;  %vm2647_vm7 = vcmask 257026  }
 0x331   :  { %1706 = vst.msk [vmem:[#allocation3 + $0x40] sm:$0xf] %vm982_vm9, %v1695_v61  ;;  %v1781_v25 = vpop.permute.xlu0 %1780  ;;  %v6607_v61 = vmov 0  }
 0x332   :  { %1899 = vst.msk [vmem:[#allocation3 + $0x44] sm:$0xf] %vm790_vm2, %v1889_v21  ;;  %v2040_v58 = vpop.permute.xlu1 %2039  ;;  %v4156_v47 = vld [vmem:[#allocation3 + $0x30] ss:$8 sps:$4 sm:$0xff]   ;;  %vm2307_vm2 = vcmask 261120   ;;  %3065 = vmatprep.subr.bf16.mxu0 %v6607_v61 }
 0x333   :  { %1743 = vst.msk [vmem:[#allocation3 + $0x40] sm:$0xf] %vm1023_vm1, %v5730_v17  ;;  %3066 = vmatpush1.bf16.msra.mxu0 %v4160_v48 }
 0x334   :  { %1932 = vst.msk [vmem:[#allocation3 + $0x44] sm:$0xf] %vm6602_vm0, %v6601_v54  ;;  %v4154_v38 = vld [vmem:[#allocation3 + $0x34] ss:$8 sps:$4 sm:$0xff]   ;;  %3067 = vmatprep.subr.bf16.mxu0 %v6607_v61 }
 0x335   :  { %1970 = vst.msk [vmem:[#allocation3 + $0x44] sm:$0xf] %vm6603_vm10, %v5821_v43  ;;  %3831 = vmatprep.mubr.msk.bf16.mxu1 %vm2219_vm8, %v4154_v38  ;;  %v3803_v43 = vld [vmem:[%s6433_s4] ss:$0 sm:$0xff]  ;;  %vm2481_vm10 = vcmask 779776  }
 0x336   :  { %1990 = vst.msk [vmem:[#allocation3 + $0x44] sm:$0xf] %vm6605_vm5, %v6604_v1  ;;  %2292 = vmatmul.mubr.bf16.gmra.mrb[12].mxu1 %v4156_v47  ;;  %vm2490_vm5 = vcmask 1042176  }
 0x337   :  { %1792 = vst.msk [vmem:[#allocation3 + $0x40] sm:$0xf] %vm6606_vm6, %v1781_v25  ;;  %v4161_v25 = vld [vmem:[%s6434_s5 + $0x90] sm:$0xff]   ;;  %vm3019_vm6 = vcmask 523264  }
 0x338   :  { %2050 = vst.msk [vmem:[#allocation3 + $0x44] sm:$0xf] %vm982_vm9, %v2040_v58  ;;  %v4162_v58 = vld [vmem:[%s6434_s5 + $0x98] sm:$0xff]   ;;  %3068 = vmatpush1.bf16.msra.mxu0 %v4161_v25 }
 0x339   :  { %3069 = vmatprep.subr.bf16.mxu0 %v6607_v61 }
 0x33c   :  { %3070 = vmatpush1.bf16.msra.mxu0 %v4162_v58 }
 0x33d   :  { %3071 = vmatprep.subr.bf16.mxu0 %v6607_v61 }
 0x33f   :  { %v2059_v17 = vld [vmem:[#allocation3 + $0x40] sm:$0xff] }
 0x340   :  { %v3813_v63 = vcombine.high %v2059_v17, %v2059_v17  ;;  %v3812_v35 = vcombine.low %v2059_v17, %v2059_v17 }
 0x342   :  { %3832 = vmatprep.mubr.msk.bf16.mxu1 %vm2219_vm8, %v3813_v63  ;;  %vm2457_vm8 = vcmask 254976  }
 0x343   :  { %2300 = vmatmul.mubr.bf16.gmra.mrb[16].mxu1 %v3812_v35 }
 0x3c7   :  { %v2269_v23 = vpop.f32.mrb[0].mxu1 }
 0x3c8   :  { %v5996_v20 = vadd.f32 %v3803_v43, %v2269_v23  ;;  %v2271_v45 = vpop.f32.mrb[1].mxu1 }
 0x3c9   :  { %v2272_v7 = vpop.f32.mrb[2].mxu1 }
 0x3ca   :  { %v2273_v18 = vadd.f32 %v3803_v43, %v2272_v7  ;;  %v2274_v16 = vpop.f32.mrb[3].mxu1  ;;  %v2308_v9 = vsel %vm2307_vm2, %v5996_v20, 0.0 }
 0x3cc   :  { %v2309_v62 = vsel %vm2307_vm2, %v2273_v18, 0.0 }
 0x3cd   :  { %v2310_v2 = vadd.f32 %v2309_v62, %v2308_v9 }
 0x3e0   :  { %v2277_v56 = vpop.f32.mrb[4].mxu1 }
 0x3e1   :  { %v2278_v5 = vadd.f32 %v3803_v43, %v2277_v56  ;;  %v2279_v0 = vpop.f32.mrb[5].mxu1 }
 0x3e2   :  { %v2280_v55 = vpop.f32.mrb[6].mxu1 }
 0x3e3   :  { %v2311_v51 = vsel %vm2307_vm2, %v2278_v5, 0.0  ;;  %v2281_v44 = vadd.f32 %v3803_v43, %v2280_v55  ;;  %v2282_v4 = vpop.f32.mrb[7].mxu1 }
 0x3e4   :  { %v2312_v53 = vadd.f32 %v2311_v51, %v2310_v2 }
 0x3e5   :  { %v2313_v29 = vsel %vm2307_vm2, %v2281_v44, 0.0 }
 0x3e6   :  { %v2314_v14 = vadd.f32 %v2313_v29, %v2312_v53  ;;  %v4164_v53 = vld [vmem:[%s6434_s5 + $0xa8] sm:$0xff]  }
 0x3f4   :  { %v2285_v31 = vpop.f32.mrb[8].mxu1 }
 0x3f5   :  { %v2286_v3 = vadd.f32 %v3803_v43, %v2285_v31  ;;  %v2287_v28 = vpop.f32.mrb[9].mxu1  ;;  %v4165_v31 = vld [vmem:[%s6434_s5 + $0xb0] sm:$0xff]  }
 0x3f6   :  { %v2288_v59 = vpop.f32.mrb[10].mxu1 }
 0x3f7   :  { %v2315_v60 = vsel %vm2307_vm2, %v2286_v3, 0.0  ;;  %v2289_v49 = vadd.f32 %v3803_v43, %v2288_v59  ;;  %v2290_v11 = vpop.f32.mrb[11].mxu1 }
 0x3f8   :  { %v2316_v22 = vadd.f32 %v2315_v60, %v2314_v14 }
 0x3f9   :  { %v2317_v33 = vsel %vm2307_vm2, %v2289_v49, 0.0 }
 0x3fa   :  { %v2318_v34 = vadd.f32 %v2317_v33, %v2316_v22 }
 0x409   :  { %v2293_v32 = vpop.f32.mrb[12].mxu1 }
 0x40a   :  { %v2294_v36 = vadd.f32 %v3803_v43, %v2293_v32  ;;  %v2295_v40 = vpop.f32.mrb[13].mxu1 }
 0x40b   :  { %v2296_v57 = vpop.f32.mrb[14].mxu1 }
 0x40c   :  { %v2319_v26 = vsel %vm2307_vm2, %v2294_v36, 0.0  ;;  %v2297_v42 = vadd.f32 %v3803_v43, %v2296_v57  ;;  %v2298_v15 = vpop.f32.mrb[15].mxu1 }
 0x40d   :  { %v2320_v10 = vadd.f32 %v2319_v26, %v2318_v34 }
 0x40e   :  { %v2321_v39 = vsel %vm2307_vm2, %v2297_v42, 0.0 }
 0x40f   :  { %v2322_v50 = vadd.f32 %v2321_v39, %v2320_v10 }
 0x416   :  { %v2301_v27 = vpop.f32.mrb[16].mxu1 }
 0x417   :  { %v2302_v13 = vadd.f32 %v3803_v43, %v2301_v27  ;;  %v2303_v8 = vpop.f32.mrb[17].mxu1  ;;  %v4163_v43 = vld [vmem:[%s6434_s5 + $0xa0] sm:$0xff]  }
 0x418   :  { %v2304_v12 = vpop.f32.mrb[18].mxu1  ;;  %3072 = vmatpush1.bf16.msra.mxu0 %v4163_v43  ;;  %v2375_v8 = vld [vmem:[%s6433_s4 + $0x1] sm:$0x1] }
 0x419   :  { %v2323_v52 = vsel %vm2307_vm2, %v2302_v13, 0.0  ;;  %v2305_v41 = vpop.f32.mrb[19].mxu1  ;;  %3073 = vmatprep.subr.bf16.mxu0 %v6607_v61 }
 0x41a   :  { %v2324_v46 = vadd.f32 %v2323_v52, %v2322_v50  ;;  %v6608_v41 = vld [vmem:[#allocation9_spill] sm:$0xff] }
 0x41c   :  { %v2325_v19 = vrot.slane %v2324_v46, 4  ;;  %3074 = vmatpush1.bf16.msra.mxu0 %v4164_v53 }
 0x41d   :  { %3075 = vmatprep.subr.bf16.mxu0 %v6607_v61 }
 0x41e   :  { %v2326_v30 = vadd.f32 %v2325_v19, %v2324_v46  ;;  %v3833_v19 = vld [vmem:[%s6433_s4 + $0x2] ss:$0 sm:$0xff]  ;;  %s4256_s4 = smov 122  }
 0x420   :  { %v2327_v24 = vrot.slane %v2326_v30, 2  ;;  %3076 = vmatpush1.bf16.msra.mxu0 %v4165_v31 }
 0x421   :  { %3077 = vmatprep.subr.bf16.mxu0 %v6607_v61 }
 0x422   :  { %v2328_v21 = vadd.f32 %v2327_v24, %v2326_v30 }
 0x424   :  { %v2329_v54 = vrot.slane %v2328_v21, 1 }
 0x426   :  { %v2330_v1 = vadd.f32 %v2329_v54, %v2328_v21 }
 0x428   :  { %v2332_v38 = vmul.f32 0.013888889, %v2330_v1 }
 0x42a   :  { %v2333_v47 = vsub.f32 %v5996_v20, %v2332_v38  ;;  %v2334_v17 = vsub.f32 %v2273_v18, %v2332_v38  ;;  %v2335_v63 = vsub.f32 %v2278_v5, %v2332_v38  ;;  %v2336_v35 = vsub.f32 %v2281_v44, %v2332_v38 }
 0x42b   :  { %v2337_v23 = vsub.f32 %v2286_v3, %v2332_v38  ;;  %v2338_v45 = vsub.f32 %v2289_v49, %v2332_v38  ;;  %v2339_v7 = vsub.f32 %v2294_v36, %v2332_v38  ;;  %v2340_v16 = vsub.f32 %v2297_v42, %v2332_v38 }
 0x42c   :  { %v2341_v9 = vsub.f32 %v2302_v13, %v2332_v38  ;;  %v2342_v62 = vmul.f32 %v2333_v47, %v2333_v47  ;;  %v2343_v2 = vmul.f32 %v2334_v17, %v2334_v17  ;;  %v2344_v56 = vmul.f32 %v2335_v63, %v2335_v63 }
 0x42d   :  { %v2345_v0 = vmul.f32 %v2336_v35, %v2336_v35  ;;  %v2346_v55 = vmul.f32 %v2337_v23, %v2337_v23  ;;  %v2347_v14 = vmul.f32 %v2338_v45, %v2338_v45  ;;  %v2348_v28 = vmul.f32 %v2339_v7, %v2339_v7 }
 0x42e   :  { %v2351_v20 = vsel %vm2307_vm2, %v2342_v62, 0.0  ;;  %v2352_v18 = vsel %vm2307_vm2, %v2343_v2, 0.0  ;;  %v2354_v51 = vsel %vm2307_vm2, %v2344_v56, 0.0  ;;  %v2349_v60 = vmul.f32 %v2340_v16, %v2340_v16 }
 0x42f   :  { %v2353_v5 = vadd.f32 %v2352_v18, %v2351_v20  ;;  %v2356_v44 = vsel %vm2307_vm2, %v2345_v0, 0.0  ;;  %v2358_v4 = vsel %vm2307_vm2, %v2346_v55, 0.0  ;;  %v2360_v49 = vsel %vm2307_vm2, %v2347_v14, 0.0 }
 0x430   :  { %v2350_v22 = vmul.f32 %v2341_v9, %v2341_v9  ;;  %v2362_v33 = vsel %vm2307_vm2, %v2348_v28, 0.0  ;;  %v2364_v32 = vsel %vm2307_vm2, %v2349_v60, 0.0 }
 0x431   :  { %v2355_v29 = vadd.f32 %v2354_v51, %v2353_v5 }
 0x432   :  { %v2366_v40 = vsel %vm2307_vm2, %v2350_v22, 0.0 }
 0x433   :  { %v2357_v3 = vadd.f32 %v2356_v44, %v2355_v29 }
 0x435   :  { %v2359_v59 = vadd.f32 %v2358_v4, %v2357_v3 }
 0x437   :  { %v2361_v11 = vadd.f32 %v2360_v49, %v2359_v59  ;;  %v4166_v49 = vld [vmem:[%s6434_s5 + $0x40] sm:$0xff]  }
 0x438   :  { %3982 = vmatprep.subr.bf16.mxu1 %v4166_v49 }
 0x439   :  { %v2363_v34 = vadd.f32 %v2362_v33, %v2361_v11 }
 0x43b   :  { %v2365_v36 = vadd.f32 %v2364_v32, %v2363_v34 }
 0x43d   :  { %v2367_v57 = vadd.f32 %v2366_v40, %v2365_v36 }
 0x43f   :  { %v2368_v26 = vrot.slane %v2367_v57, 4 }
 0x441   :  { %v2369_v42 = vadd.f32 %v2368_v26, %v2367_v57 }
 0x443   :  { %v2370_v15 = vrot.slane %v2369_v42, 2 }
 0x445   :  { %v2371_v10 = vadd.f32 %v2370_v15, %v2369_v42 }
 0x447   :  { %v2372_v39 = vrot.slane %v2371_v10, 1 }
 0x449   :  { %v2373_v50 = vadd.f32 %v2372_v39, %v2371_v10 }
 0x44b   :  { %v2374_v27 = vmul.f32 0.013888889, %v2373_v50 }
 0x44d   :  { %v2376_v13 = vadd.f32 1e-05, %v2374_v27 }
 0x44f   :  { %4225 = vrsqrt.f32 %v2376_v13 }
 0x459   :  { %v4226_v12 = vpop.eup %4225 }
 0x45a   :  { %v2378_v52 = vmul.f32 %v4226_v12, %v2375_v8  ;;  %v4167_v8 = vld [vmem:[%s6434_s5] sm:$0xff]   ;;  %v4168_v12 = vld [vmem:[%s6434_s5 + $0xb8] sm:$0xff]  }
 0x45b   :  { %3983 = vmatpush3.bf16.msra.mxu1 %v4167_v8  ;;  %3078 = vmatpush1.bf16.msra.mxu0 %v4168_v12 }
 0x45c   :  { %v2382_v46 = vrot.slane %v2378_v52, %v6608_v41  ;;  %v4169_v52 = vld [vmem:[%s6434_s5 + $0x48] sm:$0xff]   ;;  %3079 = vmatprep.subr.bf16.mxu0 %v6607_v61 }
 0x45d   :  { %3984 = vmatprep.subr.bf16.mxu1 %v4169_v52 }
 0x45e   :  { %v2383_v30 = vmul.f32 %v2382_v46, %v2333_v47  ;;  %v2384_v6 = vmul.f32 %v2382_v46, %v2334_v17  ;;  %v2385_v24 = vmul.f32 %v2382_v46, %v2335_v63  ;;  %v2386_v48 = vmul.f32 %v2382_v46, %v2336_v35 }
 0x45f   :  { %v2387_v21 = vmul.f32 %v2382_v46, %v2337_v23  ;;  %v2388_v54 = vmul.f32 %v2382_v46, %v2338_v45  ;;  %v2389_v25 = vmul.f32 %v2382_v46, %v2339_v7  ;;  %v2390_v1 = vmul.f32 %v2382_v46, %v2340_v16 }
 0x460   :  { %v2391_v58 = vmul.f32 %v2382_v46, %v2341_v9  ;;  %v2397_v38 = vadd.f32 %v3833_v19, %v2383_v30  ;;  %v2398_v43 = vadd.f32 %v3833_v19, %v2384_v6  ;;  %v2399_v62 = vadd.f32 %v3833_v19, %v2385_v24  ;;  %v4170_v6 = vld [vmem:[%s6434_s5 + $0x8] sm:$0xff]  }
 0x461   :  { %v2400_v2 = vadd.f32 %v3833_v19, %v2386_v48  ;;  %v2401_v56 = vadd.f32 %v3833_v19, %v2387_v21  ;;  %v2402_v0 = vadd.f32 %v3833_v19, %v2388_v54  ;;  %v2403_v55 = vadd.f32 %v3833_v19, %v2389_v25  ;;  %v4171_v54 = vld [vmem:[%s6434_s5 + $0x50] sm:$0xff]   ;;  %3985 = vmatpush3.bf16.msra.mxu1 %v4170_v6 }
 0x462   :  { %v2404_v20 = vadd.f32 %v3833_v19, %v2390_v1  ;;  %v2405_v18 = vadd.f32 %v3833_v19, %v2391_v58  ;;  %2406 = vst.msk [vmem:[#allocation4] sm:$0xff] %vm2307_vm2, %v2397_v38  ;;  %2407 = vst.msk [vmem:[#allocation4 + $0x8] sm:$0xff] %vm2307_vm2, %v2398_v43  ;;  %v4173_v38 = vld [vmem:[%s6434_s5 + $0xc0] sm:$0xff]   ;;  %3986 = vmatprep.subr.bf16.mxu1 %v4171_v54 }
 0x463   :  { %2408 = vst.msk [vmem:[#allocation4 + $0x10] sm:$0xff] %vm2307_vm2, %v2399_v62  ;;  %2409 = vst.msk [vmem:[#allocation4 + $0x18] sm:$0xff] %vm2307_vm2, %v2400_v2  ;;  %3080 = vmatpush1.bf16.msra.mxu0 %v4173_v38 }
 0x464   :  { %2410 = vst.msk [vmem:[#allocation4 + $0x20] sm:$0xff] %vm2307_vm2, %v2401_v56  ;;  %2411 = vst.msk [vmem:[#allocation4 + $0x28] sm:$0xff] %vm2307_vm2, %v2402_v0  ;;  %v4172_v0 = vld [vmem:[%s6434_s5 + $0x10] sm:$0xff]   ;;  %3081 = vmatprep.subr.bf16.mxu0 %v6607_v61 }
 0x465   :  { %2412 = vst.msk [vmem:[#allocation4 + $0x30] sm:$0xff] %vm2307_vm2, %v2403_v55  ;;  %2413 = vst.msk [vmem:[#allocation4 + $0x38] sm:$0xff] %vm2307_vm2, %v2404_v20  ;;  %3987 = vmatpush3.bf16.msra.mxu1 %v4172_v0  ;;  %v4180_v0 = vld [vmem:[%s6434_s5 + $0x28] sm:$0xff]  }
 0x466   :  { %2414 = vst.msk [vmem:[#allocation4 + $0x40] sm:$0xff] %vm2307_vm2, %v2405_v18  ;;  %vm6615_vm2 = vmmov 0  }
 0x469   :  { %v2415_v47 = vld [vmem:[#allocation4] ss:$2 sm:$0xff]  ;;  %v2421_v17 = vld [vmem:[#allocation4 + $0x1] ss:$2 sm:$0xff] }
 0x46a   :  { %v2426_v63 = vmax.f32 %v2415_v47, %v2421_v17  ;;  %v2417_v35 = vld [vmem:[#allocation4 + $0x10] ss:$2 sm:$0xff]  ;;  %v2423_v23 = vld [vmem:[#allocation4 + $0x11] ss:$2 sm:$0xff]  ;;  %v4174_v17 = vld [vmem:[%s6434_s5 + $0x58] sm:$0xff]  }
 0x46b   :  { %v2430_v16 = vld [vmem:[#allocation4 + $0x2] ss:$2 sm:$0xff]  ;;  %v2427_v9 = vmax.f32 %v2417_v35, %v2423_v23  ;;  %v2439_v44 = vld [vmem:[#allocation4 + $0x3] ss:$2 sm:$0xff]  ;;  %v2432_v4 = vld [vmem:[#allocation4 + $0x12] ss:$2 sm:$0xff]  ;;  %3988 = vmatprep.subr.bf16.mxu1 %v4174_v17 }
 0x46c   :  { %v2435_v51 = vmax.f32 %v2426_v63, %v2430_v16  ;;  %v2600_v14 = vld [vmem:[#allocation4 + $0x24] ss:$2 sm:$0xff]  ;;  %v2606_v31 = vld [vmem:[#allocation4 + $0x25] ss:$2 sm:$0xff] }
 0x46d   :  { %v2602_v45 = vld [vmem:[#allocation4 + $0x34] ss:$2 sm:$0xff]  ;;  %v2608_v7 = vld [vmem:[#allocation4 + $0x35] ss:$2 sm:$0xff]  ;;  %v2436_v29 = vmax.f32 %v2427_v9, %v2432_v4  ;;  %v2611_v60 = vmax.f32 %v2600_v14, %v2606_v31 }
 0x46e   :  { %v2612_v5 = vmax.f32 %v2602_v45, %v2608_v7  ;;  %v2617_v53 = vld [vmem:[#allocation4 + $0x36] ss:$2 sm:$0xff]  ;;  %v2444_v28 = vmax.f32 %v2435_v51, %v2439_v44  ;;  %v2441_v59 = vld [vmem:[#allocation4 + $0x13] ss:$2 sm:$0xff]  ;;  %v2615_v33 = vld [vmem:[#allocation4 + $0x26] ss:$2 sm:$0xff] }
 0x46f   :  { %v2626_v11 = vld [vmem:[#allocation4 + $0x37] ss:$2 sm:$0xff]  ;;  %v2445_v22 = vmax.f32 %v2436_v29, %v2441_v59  ;;  %v2620_v36 = vmax.f32 %v2611_v60, %v2615_v33  ;;  %v2624_v57 = vld [vmem:[#allocation4 + $0x27] ss:$2 sm:$0xff] }
 0x470   :  { %v2621_v3 = vmax.f32 %v2612_v5, %v2617_v53  ;;  %vm2447_vm9 = vcmp.ge.f32.partialorder %v2444_v28, 0.0  ;;  %v2450_v32 = vmul.f32 0.01, %v2444_v28  ;;  %v2419_v21 = vld [vmem:[#allocation4 + $0x20] ss:$2 sm:$0x1] }
 0x471   :  { %vm2448_vm1 = vcmp.ge.f32.partialorder %v2445_v22, 0.0  ;;  %v2451_v40 = vmul.f32 0.01, %v2445_v22  ;;  %v2629_v15 = vmax.f32 %v2620_v36, %v2624_v57  ;;  %v2425_v58 = vld [vmem:[#allocation4 + $0x21] ss:$2 sm:$0x1] }
 0x472   :  { %v2630_v34 = vmax.f32 %v2621_v3, %v2626_v11  ;;  %v2453_v42 = vsel %vm2447_vm9, %v2444_v28, %v2450_v32  ;;  %v2428_v18 = vmax.f32 %v2419_v21, %v2425_v58  ;;  %v2604_v47 = vld [vmem:[#allocation4 + $0x44] ss:$2 sm:$0x1]  ;;  %v2610_v16 = vld [vmem:[#allocation4 + $0x45] ss:$2 sm:$0x1] }
 0x473   :  { %v6065_v10 = vpack.c.bf16 %v2453_v42, %v2453_v42  ;;  %v2454_v39 = vsel %vm2448_vm1, %v2445_v22, %v2451_v40  ;;  %vm2632_vm0 = vcmp.ge.f32.partialorder %v2629_v15, 0.0  ;;  %v2635_v13 = vmul.f32 0.01, %v2629_v15  ;;  %v2434_v53 = vld [vmem:[#allocation4 + $0x22] ss:$2 sm:$0x1] }
 0x474   :  { %vm2633_vm3 = vcmp.ge.f32.partialorder %v2630_v34, 0.0  ;;  %v2636_v26 = vmul.f32 0.01, %v2630_v34  ;;  %v6067_v27 = vpack.c.bf16 %v2454_v39, %v2454_v39  ;;  %v4175_v29 = vld [vmem:[%s6434_s5 + $0x18] sm:$0xff]   ;;  %v2437_v3 = vmax.f32 %v2428_v18, %v2434_v53  ;;  %v4176_v28 = vld [vmem:[%s6434_s5 + $0x60] sm:$0xff]   ;;  %v4177_v59 = vld [vmem:[%s6434_s5 + $0xc8] sm:$0xff]  }
 0x475   :  { %v3835_v19 = vrot.slane %v6065_v10, 9  ;;  %2458 = vst.msk [vmem:[#allocation5] sm:$0x3] %vm2457_vm8, %v6065_v10  ;;  %v2638_v30 = vsel %vm2632_vm0, %v2629_v15, %v2635_v13  ;;  %v3839_v25 = vrot.slane %v6065_v10, 11  ;;  %v6134_v7 = vshrl.u32 %v6065_v10, 16  ;;  %3082 = vmatpush1.bf16.msra.mxu0 %v4177_v59  ;;  %3989 = vmatpush3.bf16.msra.mxu1 %v4175_v29  ;;  %v4178_v15 = vld [vmem:[%s6434_s5 + $0x20] sm:$0xff]  }
 0x476   :  { %v2639_v50 = vsel %vm2633_vm3, %v2630_v34, %v2636_v26  ;;  %2540 = vst.msk [vmem:[#allocation5 + $0x8] sm:$0x3] %vm2457_vm8, %v6067_v27  ;;  %v6090_v48 = vpack.c.bf16 %v2638_v30, %v2638_v30  ;;  %v2522_v1 = vrot.slane %v6067_v27, 7  ;;  %v6114_v56 = vshrl.u32 %v6067_v27, 16  ;;  %3083 = vmatprep.subr.bf16.mxu0 %v6607_v61  ;;  %3990 = vmatprep.subr.bf16.mxu1 %v4176_v28  ;;  %v4183_v28 = vld [vmem:[%s6434_s5 + $0x30] sm:$0xff]  }
 0x477   :  { %v6078_v46 = vpack.c.bf16 %v2639_v50, %v2639_v50  ;;  %2478 = vrot.lane.b32.xlu0 %v3835_v19, %s4247_s2  ;;  %v3842_v9 = vrot.slane %v6067_v27, 9  ;;  %v2466_v44 = vshll.u32 %v6065_v10, 16  ;;  %v6158_v11 = vshll.u32 %v6067_v27, 16  ;;  %v2443_v42 = vld [vmem:[#allocation4 + $0x23] ss:$2 sm:$0x1] }
 0x478   :  { %v2662_v43 = vrot.slane %v6090_v48, 7  ;;  %v6106_v62 = vshrl.u32 %v6090_v48, 16  ;;  %2675 = vst.msk [vmem:[#allocation5 + $0x4] sm:$0xc] %vm2647_vm7, %v6090_v48  ;;  %v6111_v2 = vshll.u32 %v6090_v48, 16  ;;  %v2523_v35 = vsel %vm4846_vm12, %v3839_v25, %v2522_v1 }
 0x479   :  { %v2739_v24 = vrot.slane %v6078_v46, 7  ;;  %2750 = vst.msk [vmem:[#allocation5 + $0xc] sm:$0xc] %vm2647_vm7, %v6078_v46  ;;  %v6121_v55 = vshll.u32 %v6078_v46, 16  ;;  %v6124_v20 = vshrl.u32 %v6078_v46, 16  ;;  %v3849_v23 = vrot.slane %v6090_v48, 9  ;;  %3991 = vmatpush3.bf16.msra.mxu1 %v4178_v15 }
 0x47a   :  { %v2702_v45 = vrot.slane %v6078_v46, 5  ;;  %v2652_v5 = vrot.slane %v6106_v62, 6  ;;  %v2655_v51 = vrot.slane %v6111_v2, 7  ;;  %v2532_v4 = vrot.slane %v6114_v56, 7 }
 0x47b   :  { %2740 = vrot.lane.b32.xlu1 %v2739_v24, %s4247_s2  ;;  %2663 = vrot.lane.b32.xlu0 %v2662_v43, %s4247_s2  ;;  %v2730_v14 = vrot.slane %v6124_v20, 6  ;;  %v2733_v31 = vrot.slane %v6121_v55, 7  ;;  %v2613_v22 = vmax.f32 %v2604_v47, %v2610_v16  ;;  %v2668_v34 = vrot.slane %v6106_v62, 7  ;;  %v2619_v8 = vld [vmem:[#allocation4 + $0x46] ss:$2 sm:$0x1] }
 0x47c   :  { %v2703_v49 = vsel %vm4794_vm4, %v3849_v23, %v2702_v45  ;;  %v2656_v33 = vor.u32 %v2655_v51, %v2652_v5  ;;  %v2465_v32 = vrot.slane %v6134_v7, 4  ;;  %v2468_v36 = vrot.slane %v2466_v44, 5  ;;  %v2628_v38 = vld [vmem:[#allocation4 + $0x47] ss:$2 sm:$0x1]  ;;  %v4179_v43 = vld [vmem:[%s6434_s5 + $0x68] sm:$0xff]  }
 0x47d   :  { %v2533_v40 = vor.u32 %v2532_v4, %v6158_v11  ;;  %v2712_v57 = vrot.slane %v6124_v20, 5  ;;  %v2713_v26 = vrot.slane %v6121_v55, 6  ;;  %v2734_v39 = vor.u32 %v2733_v31, %v2730_v14  ;;  %3992 = vmatprep.subr.bf16.mxu1 %v4179_v43 }
 0x47e   :  { %v3840_v50 = vrot.slane %v6134_v7, 11  ;;  %v2446_v13 = vmax.f32 %v2437_v3, %v2443_v42  ;;  %v2505_v12 = vrot.slane %v6134_v7, 6  ;;  %v2508_v52 = vrot.slane %v2466_v44, 7  ;;  %3993 = vmatpush3.bf16.msra.mxu1 %v4180_v0 }
 0x47f   :  { %2524 = vrot.lane.b32.xlu1 %v2523_v35, %s4247_s2  ;;  %2559 = vrot.lane.b32.xlu0 %v3842_v9, %s4247_s2  ;;  %v2483_v19 = vrot.slane %v6134_v7, 5  ;;  %v2484_v30 = vrot.slane %v2466_v44, 6  ;;  %v2669_v6 = vor.u32 %v2668_v34, %v6111_v2  ;;  %v2469_v24 = vor.u32 %v2468_v36, %v2465_v32  ;;  %v4182_v44 = vld [vmem:[%s6434_s5 + $0x70] sm:$0xff]  }
 0x480   :  { %v2622_v21 = vmax.f32 %v2613_v22, %v2619_v8  ;;  %v2534_v25 = vsel %vm4927_vm15, %v3840_v50, %v2533_v40  ;;  %v3850_v1 = vrot.slane %v6106_v62, 9  ;;  %v2714_v58 = vor.u32 %v2713_v26, %v2712_v57  ;;  %3994 = vmatprep.subr.bf16.mxu1 %v4182_v44  ;;  %v4184_v40 = vld [vmem:[%s6434_s5 + $0x78] sm:$0xff]  }
 0x481   :  { %v2685_v18 = vrot.slane %v6106_v62, 4  ;;  %v2688_v47 = vrot.slane %v6111_v2, 5  ;;  %v2452_v17 = vmul.f32 0.01, %v2446_v13  ;;  %v2509_v35 = vor.u32 %v2508_v52, %v2505_v12  ;;  %v4185_v57 = vld [vmem:[%s6434_s5 + $0x38] sm:$0xff]  }
 0x482   :  { %v2631_v63 = vmax.f32 %v2622_v21, %v2628_v38  ;;  %v2485_v23 = vor.u32 %v2484_v30, %v2483_v19  ;;  %vm2449_vm4 = vcmp.ge.f32.partialorder %v2446_v13, 0.0  ;;  %v2724_v45 = vrot.slane %v6078_v46, 6  ;;  %v4181_v46 = vld [vmem:[%s6434_s5 + $0xd0] sm:$0xff]   ;;  %3995 = vmatpush3.bf16.msra.mxu1 %v4183_v28  ;;  %v4186_v26 = vld [vmem:[%s6434_s5 + $0xd8] sm:$0xff]   ;;  %v4199_v28 = vld [vmem:[%s6435_s7 + $0x24] ss:$8 sps:$4 sm:$0xff]  }
 0x483   :  { %2704 = vrot.lane.b32.xlu1 %v2703_v49, %s4247_s2  ;;  %2657 = vrot.lane.b32.xlu0 %v2656_v33, %s4248_s28  ;;  %v2470_v7 = vrot.slane %v2469_v24, 4  ;;  %v2547_v16 = vrot.slane %v6114_v56, 4  ;;  %v2550_v9 = vrot.slane %v6158_v11, 5  ;;  %v2715_v62 = vsel %vm5140_vm13, %v3850_v1, %v2714_v58 }
 0x484   :  { %v2514_v2 = vrot.slane %v6158_v11, 7  ;;  %2726 = vst.msk [vmem:[#allocation5 + $0x8] sm:$0xc] %vm2647_vm7, %v2724_v45  ;;  %v2645_v51 = vrot.slane %v6090_v48, 6  ;;  %v2689_v4 = vor.u32 %v2688_v47, %v2685_v18  ;;  %v2455_v53 = vsel %vm2449_vm4, %v2446_v13, %v2452_v17  ;;  %3084 = vmatpush1.bf16.msra.mxu0 %v4181_v46  ;;  %3996 = vmatprep.subr.bf16.mxu1 %v4184_v40 }
 0x485   :  { %v2584_v29 = vrot.slane %v6114_v56, 6  ;;  %v2637_v14 = vmul.f32 0.01, %v2631_v63  ;;  %v2510_v31 = vrot.slane %v2509_v35, 4  ;;  %v2486_v3 = vrot.slane %v2485_v23, 4  ;;  %3085 = vmatprep.subr.bf16.mxu0 %v6607_v61 }
 0x486   :  { %vm2634_vm12 = vcmp.ge.f32.partialorder %v2631_v63, 0.0  ;;  %2648 = vst.msk [vmem:[#allocation5] sm:$0xc] %vm2647_vm7, %v2645_v51  ;;  %v3836_v48 = vrot.slane %v6065_v10, 10  ;;  %v2551_v59 = vor.u32 %v2550_v9, %v2547_v16  ;;  %v2563_v60 = vrot.slane %v6114_v56, 5  ;;  %3997 = vmatpush3.bf16.msra.mxu1 %v4185_v57 }
 0x487   :  { %2735 = vrot.lane.b32.xlu1 %v2734_v39, %s4248_s28  ;;  %2670 = vrot.lane.b32.xlu0 %v2669_v6, %s4249_s29  ;;  %v2564_v49 = vrot.slane %v6158_v11, 6  ;;  %v3843_v22 = vrot.slane %v6067_v27, 10  ;;  %v3958_v33 = vpack.c.bf16 %v2455_v53, %v2455_v53  ;;  %v2694_v10 = vrot.slane %v6121_v55, 5 }
 0x488   :  { %2495 = vst.msk [vmem:[#allocation5 + $0x4] sm:$0x3] %vm2457_vm8, %v3836_v48  ;;  %v2640_v34 = vsel %vm2634_vm12, %v2631_v63, %v2637_v14  ;;  %v2515_v56 = vsel %vm5161_vm14, %v2510_v31, %v2514_v2  ;;  %v2690_v11 = vrot.slane %v2689_v4, 4  ;;  %v2588_v36 = vor.u32 %v2584_v29, %v2514_v2  ;;  %3086 = vmatpush1.bf16.msra.mxu0 %v4186_v26  ;;  %v4191_v31 = vld [vmem:[%s6435_s7] ss:$8 sps:$4 sm:$0xff]  }
 0x489   :  { %2574 = vst.msk [vmem:[#allocation5 + $0xc] sm:$0x3] %vm2457_vm8, %v3843_v22  ;;  %v2760_v27 = vrot.slane %v6124_v20, 4  ;;  %v2552_v42 = vrot.slane %v2551_v59, 4  ;;  %v2565_v15 = vor.u32 %v2564_v49, %v2563_v60  ;;  %v2591_v39 = vshll.u32 %v3958_v33, 16 }
 0x48a   :  { %v3964_v50 = vpack.c.bf16 %v2640_v34, %v2640_v34  ;;  %v2695_v13 = vsel %vm5115_vm11, %v2690_v11, %v2694_v10  ;;  %v2589_v8 = vrot.slane %v2588_v36, 4  ;;  %v6614_v52 = vmov 0.0   ;;  %v4194_v48 = vld [vmem:[%s6435_s7 + $0x10] ss:$8 sps:$4 sm:$0xff]   ;;  %v4197_v59 = vld [vmem:[%s6435_s7 + $0x20] ss:$8 sps:$4 sm:$0xff]  }
 0x48b   :  { %2535 = vrot.lane.b32.xlu1 %v2534_v25, %s4249_s29  ;;  %2471 = vrot.lane.b32.xlu0 %v2470_v7, %s4248_s28  ;;  %v2764_v12 = vor.u32 %v2760_v27, %v2694_v10  ;;  %v2566_v19 = vrot.slane %v2565_v15, 4  ;;  %v2744_v30 = vrot.slane %v6124_v20, 7  ;;  %v2593_v6 = vrot.slane %v2591_v39, 7  ;;  %v4202_v60 = vld [vmem:[%s6435_s7 + $0x34] ss:$8 sps:$4 sm:$0xff]   ;;  %3723 = vst [vmem:[%s6442_s13] sm:$0x3] %v6614_v52 }
 0x48c   :  { %4091 = vmatprep.subr.bf16.mxu0 %v6614_v52  ;;  %v2767_v24 = vshll.u32 %v3964_v50, 16  ;;  %vm2660_vm15 = vcmask 519426   ;;  %vm2666_vm13 = vcmask 781826   ;;  %v4200_v49 = vld [vmem:[%s6435_s7 + $0x30] ss:$8 sps:$4 sm:$0xff]   ;;  %vm3139_vm9 = vcmask 519168  }
 0x48d   :  { %v2594_v21 = vsel %vm5161_vm14, %v2589_v8, %v2593_v6  ;;  %v2765_v54 = vrot.slane %v2764_v12, 4  ;;  %v2745_v25 = vor.u32 %v2744_v30, %v6121_v55  ;;  %vm2673_vm14 = vcmask 1044226   ;;  %v3854_v10 = vld [vmem:[%s6436_s6] ss:$0 sm:$0xff] }
 0x48e   :  { %v2769_v1 = vrot.slane %v2767_v24, 5  ;;  %vm3150_vm1 = vcmask 516096   ;;  %vm6617_vm7 = vcmask 1041408  }
 0x48f   :  { %2716 = vrot.lane.b32.xlu1 %v2715_v62, %s4249_s29  ;;  %2487 = vrot.lane.b32.xlu0 %v2486_v3, %s4249_s29  ;;  %v4193_v3 = vld [vmem:[%s6435_s7 + $0x4] ss:$8 sps:$4 sm:$0xff]   ;;  %vm6618_vm0 = vmmov %vm6617_vm7 }
 0x490   :  { %v2770_v58 = vsel %vm5115_vm11, %v2765_v54, %v2769_v1  ;;  %vm2474_vm11 = vcmask 517376   ;;  %3229 = vmatprep.subr.bf16.mxu1 %v4193_v3  ;;  %vm6619_vm4 = vmmov %vm6618_vm0 }
 0x491   :  { %vm6620_vm12 = vmmov %vm6618_vm0 }
 0x493   :  { %2516 = vrot.lane.b32.xlu1 %v2515_v56, %s4248_s28  ;;  %2553 = vrot.lane.b32.xlu0 %v2552_v42, %s4248_s28 }
 0x497   :  { %2696 = vrot.lane.b32.xlu1 %v2695_v13, %s4248_s28  ;;  %2567 = vrot.lane.b32.xlu0 %v2566_v19, %s4249_s29 }
 0x49b   :  { %2595 = vrot.lane.b32.xlu1 %v2594_v21, %s4248_s28  ;;  %2746 = vrot.lane.b32.xlu0 %v2745_v25, %s4249_s29 }
 0x49f   :  { %2771 = vrot.lane.b32.xlu1 %v2770_v58, %s4248_s28 }
 0x4e9   :  { %v2479_v20 = vpop.permute.xlu0 %2478 }
 0x4ed   :  { %v2741_v38 = vpop.permute.xlu1 %2740  ;;  %v2664_v43 = vpop.permute.xlu0 %2663 }
 0x4f1   :  { %v2525_v0 = vpop.permute.xlu1 %2524  ;;  %v2560_v18 = vpop.permute.xlu0 %2559 }
 0x4f5   :  { %v2705_v47 = vpop.permute.xlu1 %2704  ;;  %v2658_v17 = vpop.permute.xlu0 %2657 }
 0x4f6   :  { %2661 = vst.msk [vmem:[#allocation5] sm:$0xc] %vm2660_vm15, %v2658_v17 }
 0x4f7   :  { %2667 = vst.msk [vmem:[#allocation5] sm:$0xc] %vm2666_vm13, %v2664_v43 }
 0x4f9   :  { %v2736_v55 = vpop.permute.xlu1 %2735  ;;  %v2671_v37 = vpop.permute.xlu0 %2670 }
 0x4fa   :  { %2738 = vst.msk [vmem:[#allocation5 + $0x8] sm:$0xc] %vm2660_vm15, %v2736_v55  ;;  %v3888_v55 = vld [vmem:[%s6436_s6 + $0x2] ss:$0 sm:$0xff] }
 0x4fb   :  { %2743 = vst.msk [vmem:[#allocation5 + $0x8] sm:$0xc] %vm2666_vm13, %v2741_v38 }
 0x4fc   :  { %2674 = vst.msk [vmem:[#allocation5] sm:$0xc] %vm2673_vm14, %v2671_v37 }
 0x4fd   :  { %v2536_v63 = vpop.permute.xlu1 %2535  ;;  %v2472_v35 = vpop.permute.xlu0 %2471 }
 0x4fe   :  { %2475 = vst.msk [vmem:[#allocation5] sm:$0x3] %vm2474_vm11, %v2472_v35 }
 0x4ff   :  { %2482 = vst.msk [vmem:[#allocation5] sm:$0x3] %vm2481_vm10, %v2479_v20 }
 0x501   :  { %v2717_v23 = vpop.permute.xlu1 %2716  ;;  %v2488_v45 = vpop.permute.xlu0 %2487 }
 0x502   :  { %2491 = vst.msk [vmem:[#allocation5] sm:$0x3] %vm2490_vm5, %v2488_v45 }
 0x505   :  { %v2517_v7 = vpop.permute.xlu1 %2516  ;;  %v2554_v16 = vpop.permute.xlu0 %2553 }
 0x506   :  { %2519 = vst.msk [vmem:[#allocation5 + $0x4] sm:$0x3] %vm2474_vm11, %v2517_v7  ;;  %2556 = vst.msk [vmem:[#allocation5 + $0x8] sm:$0x3] %vm2474_vm11, %v2554_v16 }
 0x507   :  { %2527 = vst.msk [vmem:[#allocation5 + $0x4] sm:$0x3] %vm2481_vm10, %v2525_v0  ;;  %2562 = vst.msk [vmem:[#allocation5 + $0x8] sm:$0x3] %vm2481_vm10, %v2560_v18  ;;  %v3122_v0 = vld [vmem:[%s6436_s6 + $0x1] sm:$0x1] }
 0x508   :  { %2538 = vst.msk [vmem:[#allocation5 + $0x4] sm:$0x3] %vm2490_vm5, %v2536_v63  ;;  %vm3579_vm10 = vcmask 41984  }
 0x509   :  { %v2697_v9 = vpop.permute.xlu1 %2696  ;;  %v2568_v5 = vpop.permute.xlu0 %2567 }
 0x50a   :  { %2699 = vst.msk [vmem:[#allocation5 + $0x4] sm:$0xc] %vm2660_vm15, %v2697_v9 }
 0x50b   :  { %2707 = vst.msk [vmem:[#allocation5 + $0x4] sm:$0xc] %vm2666_vm13, %v2705_v47 }
 0x50c   :  { %2719 = vst.msk [vmem:[#allocation5 + $0x4] sm:$0xc] %vm2673_vm14, %v2717_v23 }
 0x50d   :  { %2570 = vst.msk [vmem:[#allocation5 + $0x8] sm:$0x3] %vm2490_vm5, %v2568_v5  ;;  %v2596_v62 = vpop.permute.xlu1 %2595  ;;  %v2747_v2 = vpop.permute.xlu0 %2746  ;;  %vm3675_vm5 = vcmask 9216  }
 0x50e   :  { %2598 = vst.msk [vmem:[#allocation5 + $0xc] sm:$0x3] %vm2474_vm11, %v2596_v62 }
 0x50f   :  { %2749 = vst.msk [vmem:[#allocation5 + $0x8] sm:$0xc] %vm2673_vm14, %v2747_v2  ;;  %vm3542_vm14 = vcmask 566272  }
 0x511   :  { %v2772_v51 = vpop.permute.xlu1 %2771 }
 0x512   :  { %2774 = vst.msk [vmem:[#allocation5 + $0xc] sm:$0xc] %vm2660_vm15, %v2772_v51 }
 0x513   :  { %v2775_v46 = vld [vmem:[#allocation5] sm:$0xff] }
 0x514   :  { %v3855_v44 = vcombine.low %v2775_v46, %v2775_v46  ;;  %v3856_v4 = vcombine.high %v2775_v46, %v2775_v46 }
 0x516   :  { %3055 = vmatprep.mubr.bf16.mxu1 %v3856_v4 }
 0x517   :  { %3056 = vmatmul.mubr.bf16.vlgmr.msra.gmra.mrb[20].mxu1 %v3855_v44 }
 0x518   :  { %3261 = vmatprep.mubr.bf16.mxu1 %v6607_v61  ;;  %v4196_v61 = vld [vmem:[%s6435_s7 + $0x14] ss:$8 sps:$4 sm:$0xff]   ;;  %3230 = vmatpush1.bf16.msra.mxu1 %v4191_v31 }
 0x519   :  { %v2776_v53 = vld [vmem:[#allocation5 + $0x8] sm:$0xff]  ;;  %3231 = vmatprep.subr.bf16.mxu1 %v4196_v61 }
 0x51a   :  { %v3857_v29 = vcombine.low %v2776_v53, %v2776_v53  ;;  %v3858_v14 = vcombine.high %v2776_v53, %v2776_v53 }
 0x51c   :  { %3887 = vmatprep.mubr.msk.bf16.mxu0 %vm3019_vm6, %v3858_v14  ;;  %3232 = vmatpush1.bf16.msra.mxu1 %v4194_v48 }
 0x51d   :  { %3096 = vmatmul.mubr.bf16.vlgmr.msra.gmra.mrb[52].mxu0 %v3857_v29  ;;  %3233 = vmatprep.subr.bf16.mxu1 %v4199_v28 }
 0x51e   :  { %4099 = vmatprep.mubr.msk.bf16.mxu0 %vm6615_vm2, %v6614_v52  ;;  %vm3729_vm2 = vcmask 58416  }
 0x520   :  { %3234 = vmatpush1.bf16.msra.mxu1 %v4197_v59 }
 0x521   :  { %3235 = vmatprep.subr.bf16.mxu1 %v4202_v60  ;;  %v4203_v60 = vld [vmem:[%s6437_s9 + $0x40] sm:$0xff]  }
 0x524   :  { %3236 = vmatpush1.bf16.msra.mxu1 %v4200_v49  ;;  %v4204_v49 = vld [vmem:[%s6437_s9] sm:$0xff]  }
 0x525   :  { %4004 = vmatprep.subr.bf16.mxu1 %v4203_v60 }
 0x5ea   :  { %v3998_v22 = vpop.f32.mrb[20].mxu1 }
 0x5eb   :  { %v3999_v33 = vpop.f32.mrb[21].mxu1 }
 0x5ec   :  { %v4000_v34 = vadd.f32 %v3999_v33, %v3998_v22  ;;  %v4001_v32 = vpop.f32.mrb[22].mxu1  ;;  %v4205_v22 = vld [vmem:[%s6437_s9 + $0x48] sm:$0xff]  }
 0x5ed   :  { %v4002_v56 = vpop.f32.mrb[23].mxu1  ;;  %v4206_v33 = vld [vmem:[%s6437_s9 + $0x8] sm:$0xff]   ;;  %v4209_v32 = vld [vmem:[%s6437_s9 + $0x58] sm:$0xff]  }
 0x5ee   :  { %v3058_v11 = vadd.f32 %v4000_v34, %v3854_v10  ;;  %v4207_v10 = vld [vmem:[%s6437_s9 + $0x50] sm:$0xff]   ;;  %v4210_v56 = vld [vmem:[%s6437_s9 + $0x18] sm:$0xff]  }
 0x5ef   :  { %v4208_v34 = vld [vmem:[%s6437_s9 + $0x10] sm:$0xff]  }
 0x5f0   :  { %v3097_v36 = vpop.f32.mrb[52].mxu0 }
 0x5f1   :  { %v3098_v27 = vadd.f32 %v3097_v36, %v3058_v11  ;;  %v3099_v40 = vpop.f32.mrb[53].mxu0  ;;  %v4211_v11 = vld [vmem:[%s6437_s9 + $0x60] sm:$0xff]  }
 0x5f2   :  { %v3100_v57 = vpop.f32.mrb[54].mxu0  ;;  %v4212_v36 = vld [vmem:[%s6437_s9 + $0x20] sm:$0xff]   ;;  %v4214_v40 = vld [vmem:[%s6437_s9 + $0x28] sm:$0xff]  }
 0x5f3   :  { %v3103_v26 = vsel %vm3019_vm6, %v3098_v27, 0.0  ;;  %v3101_v42 = vpop.f32.mrb[55].mxu0  ;;  %v4215_v57 = vld [vmem:[%s6437_s9 + $0x70] sm:$0xff]  }
 0x5f4   :  { %v3104_v15 = vrot.slane %v3103_v26, 4  ;;  %v4217_v42 = vld [vmem:[%s6437_s9 + $0x78] sm:$0xff]  }
 0x5f6   :  { %v3105_v39 = vadd.f32 %v3104_v15, %v3103_v26  ;;  %v4216_v26 = vld [vmem:[%s6437_s9 + $0x30] sm:$0xff]   ;;  %v4218_v15 = vld [vmem:[%s6437_s9 + $0x38] sm:$0xff]  }
 0x5f8   :  { %v3106_v50 = vrot.slane %v3105_v39, 2 }
 0x5fa   :  { %v3107_v13 = vadd.f32 %v3106_v50, %v3105_v39  ;;  %v3174_v39 = vld [vmem:[%s6438_s8] ss:$4 sm:$0x3]  ;;  %v6616_v50 = vld [vmem:[#allocation8_spill] sm:$0xff] }
 0x5fc   :  { %v3108_v8 = vrot.slane %v3107_v13, 1 }
 0x5fe   :  { %v3109_v12 = vadd.f32 %v3108_v8, %v3107_v13  ;;  %v6357_v13 = vsub.s32 1, %v6616_v50  ;;  %v3179_v8 = vrot.slane %v3174_v39, %v6608_v41 }
 0x600   :  { %v3111_v19 = vmul.f32 0.125, %v3109_v12  ;;  %v3183_v12 = vrot.slane %v3174_v39, %v6357_v13 }
 0x602   :  { %v3112_v30 = vsub.f32 %v3098_v27, %v3111_v19  ;;  %v4213_v27 = vld [vmem:[%s6437_s9 + $0x68] sm:$0xff]  }
 0x604   :  { %v3113_v6 = vmul.f32 %v3112_v30, %v3112_v30 }
 0x606   :  { %v3114_v24 = vsel %vm3019_vm6, %v3113_v6, 0.0 }
 0x607   :  { %v3115_v21 = vrot.slane %v3114_v24, 4 }
 0x609   :  { %v3116_v54 = vadd.f32 %v3115_v21, %v3114_v24 }
 0x60b   :  { %v3117_v25 = vrot.slane %v3116_v54, 2 }
 0x60d   :  { %v3118_v1 = vadd.f32 %v3117_v25, %v3116_v54 }
 0x60f   :  { %v3119_v58 = vrot.slane %v3118_v1, 1 }
 0x611   :  { %v3120_v20 = vadd.f32 %v3119_v58, %v3118_v1 }
 0x613   :  { %v3121_v38 = vmul.f32 0.125, %v3120_v20 }
 0x615   :  { %v3123_v43 = vadd.f32 1e-05, %v3121_v38 }
 0x617   :  { %4227 = vrsqrt.f32 %v3123_v43 }
 0x621   :  { %v4228_v18 = vpop.eup %4227 }
 0x622   :  { %v3125_v47 = vmul.f32 %v4228_v18, %v3122_v0 }
 0x624   :  { %v3129_v17 = vrot.slane %v3125_v47, %v6608_v41 }
 0x626   :  { %v3130_v37 = vmul.f32 %v3129_v17, %v3112_v30 }
 0x628   :  { %v3136_v63 = vadd.f32 %v3888_v55, %v3130_v37 }
 0x62a   :  { %3137 = vst.msk [vmem:[#allocation6] sm:$0xff] %vm3019_vm6, %v3136_v63 }
 0x631   :  { %v3138_v35 = vld [vmem:[#allocation6] sm:$0xf]  ;;  %v3152_v23 = vld [vmem:[#allocation6 + $0x4] sm:$0xf] }
 0x632   :  { %v3140_v45 = vsel %vm3139_vm9, %v3138_v35, -inf  ;;  %v3153_v7 = vsel %vm3139_vm9, %v3152_v23, -inf }
 0x633   :  { %v3141_v16 = vrot.slane %v3140_v45, 4  ;;  %v3154_v9 = vrot.slane %v3153_v7, 4 }
 0x635   :  { %v3142_v5 = vmax.f32 %v3140_v45, %v3141_v16  ;;  %v3155_v62 = vmax.f32 %v3153_v7, %v3154_v9 }
 0x637   :  { %v3143_v2 = vrot.slane %v3142_v5, 2  ;;  %v3156_v51 = vrot.slane %v3155_v62, 2 }
 0x639   :  { %v3144_v46 = vmax.f32 %v3142_v5, %v3143_v2  ;;  %v3157_v44 = vmax.f32 %v3155_v62, %v3156_v51 }
 0x63b   :  { %v3145_v4 = vrot.slane %v3144_v46, 1  ;;  %v3158_v53 = vrot.slane %v3157_v44, 1 }
 0x63d   :  { %v3146_v29 = vmax.f32 %v3144_v46, %v3145_v4  ;;  %v3159_v14 = vmax.f32 %v3157_v44, %v3158_v53 }
 0x63f   :  { %vm3147_vm8 = vcmp.ge.f32.partialorder %v3146_v29, 0.0  ;;  %v3148_v31 = vmul.f32 0.01, %v3146_v29  ;;  %vm3160_vm3 = vcmp.ge.f32.partialorder %v3159_v14, 0.0  ;;  %v3161_v3 = vmul.f32 0.01, %v3159_v14 }
 0x641   :  { %v3149_v61 = vsel %vm3147_vm8, %v3146_v29, %v3148_v31  ;;  %v3162_v48 = vsel %vm3160_vm3, %v3159_v14, %v3161_v3 }
 0x642   :  { %3151 = vst.msk [vmem:[#allocation7] sm:$0x1] %vm3150_vm1, %v3149_v61  ;;  %3163 = vst.msk [vmem:[#allocation7 + $0x1] sm:$0x1] %vm3150_vm1, %v3162_v48 }
 0x649   :  { %v3164_v28 = vld [vmem:[#allocation7] sm:$0x3] }
 0x64a   :  { %v3165_v59 = vpack.c.bf16 %v3164_v28, %v3164_v28 }
 0x64c   :  { %3897 = vmatmul.mubr.msk.bf16.vlgmr.msra.gmra.mrb[24].mxu1 %vm3019_vm6, %v3165_v59 }
 0x64d   :  { %4005 = vmatpush3.bf16.msra.mxu1 %v4204_v49 }
 0x64e   :  { %4006 = vmatprep.subr.bf16.mxu1 %v4205_v22 }
 0x651   :  { %4007 = vmatpush3.bf16.msra.mxu1 %v4206_v33  ;;  %v4255_v33 = vmov 1966171168  }
 0x652   :  { %4008 = vmatprep.subr.bf16.mxu1 %v4207_v10  ;;  %v3318_v10 = vunpack.c.l.s4 %v4255_v33 }
 0x655   :  { %4009 = vmatpush3.bf16.msra.mxu1 %v4208_v34  ;;  %v3319_v34 = vunpack.c.0.s8 %v3318_v10 }
 0x656   :  { %4010 = vmatprep.subr.bf16.mxu1 %v4209_v32 }
 0x659   :  { %4011 = vmatpush3.bf16.msra.mxu1 %v4210_v56  ;;  %v3322_v56 = vsub.s32 %v3319_v34, %v6616_v50 }
 0x65a   :  { %4012 = vmatprep.subr.bf16.mxu1 %v4211_v11 }
 0x65d   :  { %4013 = vmatpush3.bf16.msra.mxu1 %v4212_v36 }
 0x65e   :  { %4014 = vmatprep.subr.bf16.mxu1 %v4213_v27 }
 0x661   :  { %4015 = vmatpush3.bf16.msra.mxu1 %v4214_v40  ;;  %v3898_v40 = vld [vmem:[%s6438_s8 + $0x1] ss:$4 sm:$0x3] }
 0x662   :  { %4016 = vmatprep.subr.bf16.mxu1 %v4215_v57 }
 0x665   :  { %4017 = vmatpush3.bf16.msra.mxu1 %v4216_v26  ;;  %v3899_v26 = vld [vmem:[%s6438_s8 + $0x2] ss:$4 sm:$0x3] }
 0x666   :  { %4018 = vmatprep.subr.bf16.mxu1 %v4217_v42  ;;  %v3356_v50 = vrot.slane %v3899_v26, %v6357_v13 }
 0x669   :  { %4019 = vmatpush3.bf16.msra.mxu1 %v4218_v15  ;;  %v3352_v15 = vrot.slane %v3899_v26, %v6608_v41 }
 0x71f   :  { %v3263_v19 = vpop.f32.mrb[24].mxu1 }
 0x720   :  { %v3264_v30 = vadd.f32 %v3263_v19, %v3179_v8  ;;  %v3265_v6 = vpop.f32.mrb[25].mxu1 }
 0x721   :  { %v3266_v24 = vadd.f32 %v3265_v6, %v3183_v12  ;;  %v3267_v21 = vpop.f32.mrb[26].mxu1 }
 0x722   :  { %v3271_v54 = vsel %vm6617_vm7, %v3264_v30, 0.0  ;;  %v3268_v25 = vpop.f32.mrb[27].mxu1 }
 0x723   :  { %v3272_v1 = vrot.slane %v3271_v54, 4  ;;  %v3278_v58 = vsel %vm6618_vm0, %v3266_v24, 0.0 }
 0x724   :  { %v3279_v20 = vrot.slane %v3278_v58, 4 }
 0x725   :  { %v3273_v38 = vadd.f32 %v3272_v1, %v3271_v54 }
 0x726   :  { %v3280_v43 = vadd.f32 %v3279_v20, %v3278_v58  ;;  %v4219_v20 = vld [vmem:[%s6439_s11] sm:$0xff]  }
 0x727   :  { %v3274_v0 = vrot.slane %v3273_v38, 2  ;;  %4092 = vmatpush3.bf16.msra.mxu0 %v4219_v20 }
 0x728   :  { %v3281_v18 = vrot.slane %v3280_v43, 2  ;;  %4093 = vmatprep.subr.bf16.mxu0 %v6614_v52 }
 0x729   :  { %v3275_v47 = vadd.f32 %v3274_v0, %v3273_v38  ;;  %v4221_v38 = vld [vmem:[%s6439_s11 + $0x10] sm:$0xff]  }
 0x72a   :  { %v3282_v17 = vadd.f32 %v3281_v18, %v3280_v43  ;;  %v4222_v43 = vld [vmem:[%s6439_s11 + $0x18] sm:$0xff]   ;;  %v3900_v18 = vld [vmem:[%s6440_s10] ss:$0 sm:$0xff] }
 0x72b   :  { %v3276_v55 = vrot.slane %v3275_v47, 1 }
 0x72c   :  { %v3283_v37 = vrot.slane %v3282_v17, 1 }
 0x72d   :  { %v3277_v63 = vadd.f32 %v3276_v55, %v3275_v47 }
 0x72e   :  { %v3284_v35 = vadd.f32 %v3283_v37, %v3282_v17 }
 0x72f   :  { %v3286_v23 = vmul.f32 0.5, %v3277_v63 }
 0x730   :  { %v3287_v45 = vmul.f32 0.5, %v3284_v35 }
 0x731   :  { %v3288_v7 = vsub.f32 %v3264_v30, %v3286_v23 }
 0x732   :  { %v3289_v16 = vsub.f32 %v3266_v24, %v3287_v45 }
 0x733   :  { %v3290_v9 = vmul.f32 %v3288_v7, %v3288_v7 }
 0x734   :  { %v3291_v5 = vmul.f32 %v3289_v16, %v3289_v16 }
 0x735   :  { %v3292_v62 = vsel %vm6619_vm4, %v3290_v9, 0.0 }
 0x736   :  { %v3293_v2 = vrot.slane %v3292_v62, 4  ;;  %v3299_v51 = vsel %vm6620_vm12, %v3291_v5, 0.0 }
 0x737   :  { %v3300_v46 = vrot.slane %v3299_v51, 4 }
 0x738   :  { %v3294_v44 = vadd.f32 %v3293_v2, %v3292_v62 }
 0x739   :  { %v3301_v4 = vadd.f32 %v3300_v46, %v3299_v51 }
 0x73a   :  { %v3295_v53 = vrot.slane %v3294_v44, 2 }
 0x73b   :  { %v3302_v29 = vrot.slane %v3301_v4, 2 }
 0x73c   :  { %v3296_v14 = vadd.f32 %v3295_v53, %v3294_v44 }
 0x73d   :  { %v3303_v31 = vadd.f32 %v3302_v29, %v3301_v4 }
 0x73e   :  { %v3297_v3 = vrot.slane %v3296_v14, 1 }
 0x73f   :  { %v3304_v61 = vrot.slane %v3303_v31, 1 }
 0x740   :  { %v3298_v48 = vadd.f32 %v3297_v3, %v3296_v14 }
 0x741   :  { %v3305_v28 = vadd.f32 %v3304_v61, %v3303_v31 }
 0x742   :  { %v3306_v59 = vmul.f32 0.5, %v3298_v48  ;;  %v3561_v48 = vld [vmem:[%s6440_s10 + $0x1] sm:$0x1] }
 0x743   :  { %v3307_v60 = vmul.f32 0.5, %v3305_v28 }
 0x744   :  { %v3310_v49 = vadd.f32 1e-05, %v3306_v59 }
 0x745   :  { %v3311_v22 = vadd.f32 1e-05, %v3307_v60 }
 0x746   :  { %4229 = vrsqrt.f32 %v3310_v49  ;;  %v3917_v49 = vld [vmem:[%s6440_s10 + $0x2] ss:$0 sm:$0xff] }
 0x747   :  { %4231 = vrsqrt.f32 %v3311_v22 }
 0x750   :  { %v4230_v32 = vpop.eup %4229 }
 0x751   :  { %v4232_v11 = vpop.eup %4231 }
 0x752   :  { %v3316_v36 = vcombine.low %v4230_v32, %v4232_v11 }
 0x754   :  { %v3323_v27 = vrot.slane %v3316_v36, %v3322_v56  ;;  %v3918_v36 = vld [vmem:[%s6441_s12] ss:$0 sm:$0xff] }
 0x756   :  { %v3330_v57 = vrot.slane %v3323_v27, %v3322_v56 }
 0x758   :  { %v3332_v42 = vmul.f32 %v3898_v40, %v3330_v57 }
 0x75a   :  { %v3337_v39 = vrot.slane %v3332_v42, %v6608_v41  ;;  %v3341_v8 = vrot.slane %v3332_v42, %v6357_v13  ;;  %v4220_v13 = vld [vmem:[%s6439_s11 + $0x8] sm:$0xff]  }
 0x75b   :  { %4094 = vmatpush3.bf16.msra.mxu0 %v4220_v13 }
 0x75c   :  { %v3344_v12 = vmul.f32 %v3337_v39, %v3288_v7  ;;  %v3345_v19 = vmul.f32 %v3341_v8, %v3289_v16  ;;  %4095 = vmatprep.subr.bf16.mxu0 %v6614_v52 }
 0x75e   :  { %v3360_v30 = vadd.f32 %v3356_v50, %v3345_v19  ;;  %v3359_v6 = vadd.f32 %v3352_v15, %v3344_v12 }
 0x75f   :  { %4096 = vmatpush3.bf16.msra.mxu0 %v4221_v38 }
 0x760   :  { %vm3362_vm15 = vcmp.ge.f32.partialorder %v3360_v30, 0.0  ;;  %v3364_v24 = vmul.f32 0.01, %v3360_v30  ;;  %vm3361_vm13 = vcmp.ge.f32.partialorder %v3359_v6, 0.0  ;;  %v3363_v21 = vmul.f32 0.01, %v3359_v6  ;;  %4097 = vmatprep.subr.bf16.mxu0 %v6614_v52 }
 0x762   :  { %v3366_v54 = vsel %vm3362_vm15, %v3360_v30, %v3364_v24  ;;  %v3365_v25 = vsel %vm3361_vm13, %v3359_v6, %v3363_v21 }
 0x763   :  { %v3368_v1 = vpack.c.bf16 %v3366_v54, %v3366_v54  ;;  %v3367_v58 = vpack.c.bf16 %v3365_v25, %v3365_v25  ;;  %4098 = vmatpush3.bf16.msra.mxu0 %v4222_v43 }
 0x765   :  { %3534 = vmatprep.mubr.bf16.mxu1 %v3368_v1 }
 0x766   :  { %3535 = vmatmul.mubr.bf16.vlgmr.msra.gmra.mrb[28].mxu1 %v3367_v58 }
 0x839   :  { %v4020_v0 = vpop.f32.mrb[28].mxu1 }
 0x83a   :  { %v4021_v47 = vpop.f32.mrb[29].mxu1 }
 0x83b   :  { %v4022_v17 = vadd.f32 %v4021_v47, %v4020_v0  ;;  %v4023_v55 = vpop.f32.mrb[30].mxu1 }
 0x83c   :  { %v4024_v37 = vpop.f32.mrb[31].mxu1 }
 0x83d   :  { %v3537_v63 = vadd.f32 %v4022_v17, %v3900_v18  ;;  %v3694_v17 = vld [vmem:[%s6441_s12 + $0x1] sm:$0x1] }
 0x83f   :  { %v3543_v35 = vsel %vm3542_vm14, %v3537_v63, 0.0 }
 0x840   :  { %v3544_v23 = vrot.slane %v3543_v35, 4 }
 0x842   :  { %v3545_v45 = vadd.f32 %v3544_v23, %v3543_v35  ;;  %v3924_v23 = vld [vmem:[%s6441_s12 + $0x2] ss:$0 sm:$0xff] }
 0x844   :  { %v3546_v7 = vrot.slane %v3545_v45, 2 }
 0x846   :  { %v3547_v16 = vadd.f32 %v3546_v7, %v3545_v45 }
 0x848   :  { %v3548_v9 = vrot.slane %v3547_v16, 1 }
 0x84a   :  { %v3549_v5 = vadd.f32 %v3548_v9, %v3547_v16 }
 0x84c   :  { %v3550_v62 = vmul.f32 0.5, %v3549_v5 }
 0x84e   :  { %v3551_v2 = vsub.f32 %v3537_v63, %v3550_v62 }
 0x850   :  { %v3552_v51 = vmul.f32 %v3551_v2, %v3551_v2 }
 0x852   :  { %v3553_v46 = vsel %vm3542_vm14, %v3552_v51, 0.0 }
 0x853   :  { %v3554_v44 = vrot.slane %v3553_v46, 4 }
 0x855   :  { %v3555_v4 = vadd.f32 %v3554_v44, %v3553_v46 }
 0x857   :  { %v3556_v53 = vrot.slane %v3555_v4, 2 }
 0x859   :  { %v3557_v29 = vadd.f32 %v3556_v53, %v3555_v4 }
 0x85b   :  { %v3558_v14 = vrot.slane %v3557_v29, 1 }
 0x85d   :  { %v3559_v31 = vadd.f32 %v3558_v14, %v3557_v29 }
 0x85f   :  { %v3560_v3 = vmul.f32 0.5, %v3559_v31 }
 0x861   :  { %v3562_v61 = vadd.f32 1e-05, %v3560_v3 }
 0x863   :  { %4233 = vrsqrt.f32 %v3562_v61 }
 0x86d   :  { %v4234_v28 = vpop.eup %4233 }
 0x86e   :  { %v3564_v59 = vmul.f32 %v4234_v28, %v3561_v48 }
 0x870   :  { %v3568_v60 = vrot.slane %v3564_v59, %v6608_v41 }
 0x872   :  { %v3569_v22 = vmul.f32 %v3568_v60, %v3551_v2 }
 0x874   :  { %v3575_v33 = vadd.f32 %v3917_v49, %v3569_v22 }
 0x876   :  { %v3577_v10 = vmul.f32 0.01, %v3575_v33  ;;  %vm3576_vm11 = vcmp.ge.f32.partialorder %v3575_v33, 0.0 }
 0x878   :  { %v3578_v34 = vsel %vm3576_vm11, %v3575_v33, %v3577_v10 }
 0x879   :  { %v3591_v32 = vpack.c.bf16 %v3578_v34, %v3578_v34  ;;  %v3580_v56 = vsel %vm3579_vm10, %v3578_v34, -inf }
 0x87b   :  { %3606 = vrot.lane.b32.xlu0 %v3591_v32, %s4256_s4 }
 0x89a   :  { %3581 = vmax.xlane.f32.xlu0 %v3580_v56 }
 0x8ed   :  { %v3607_v11 = vpop.permute.xlu0 %3606 }
 0x8ee   :  { %4100 = vmatmul.mubr.msk.bf16.vlgmr.msra.gmra.mrb[56].mxu0 %vm3019_vm6, %v3607_v11 }
 0x927   :  { %v3582_v18 = vpop.xlane.xlu0 %3581 }
 0x928   :  { %v3583_v47 = vsub.f32 %v3578_v34, %v3582_v18 }
 0x92a   :  { %v3584_v55 = vmul.f32 1.442695, %v3583_v47 }
 0x9c1   :  { %v3669_v27 = vpop.f32.mrb[56].mxu0 }
 0x9c2   :  { %v3670_v40 = vadd.f32 %v3918_v36, %v3669_v27  ;;  %v4101_v57 = vpop.f32.mrb[57].mxu0 }
 0x9c3   :  { %v3672_v26 = vpop.f32.mrb[58].mxu0 }
 0x9c4   :  { %v3676_v42 = vsel %vm3675_vm5, %v3670_v40, 0.0  ;;  %v4102_v15 = vpop.f32.mrb[59].mxu0 }
 0x9c5   :  { %v3677_v39 = vrot.slane %v3676_v42, 4 }
 0x9c7   :  { %v3678_v8 = vadd.f32 %v3677_v39, %v3676_v42 }
 0x9c9   :  { %v3679_v50 = vrot.slane %v3678_v8, 2 }
 0x9cb   :  { %v3680_v12 = vadd.f32 %v3679_v50, %v3678_v8 }
 0x9cd   :  { %v3681_v19 = vrot.slane %v3680_v12, 1 }
 0x9cf   :  { %v3682_v30 = vadd.f32 %v3681_v19, %v3680_v12 }
 0x9d1   :  { %v3683_v6 = vmul.f32 0.5, %v3682_v30 }
 0x9d3   :  { %v3684_v24 = vsub.f32 %v3670_v40, %v3683_v6 }
 0x9d5   :  { %v3685_v21 = vmul.f32 %v3684_v24, %v3684_v24 }
 0x9d7   :  { %v3686_v54 = vsel %vm3675_vm5, %v3685_v21, 0.0 }
 0x9d8   :  { %v3687_v25 = vrot.slane %v3686_v54, 4 }
 0x9da   :  { %v3688_v1 = vadd.f32 %v3687_v25, %v3686_v54 }
 0x9dc   :  { %v3689_v58 = vrot.slane %v3688_v1, 2 }
 0x9de   :  { %v3690_v20 = vadd.f32 %v3689_v58, %v3688_v1 }
 0x9e0   :  { %v3691_v13 = vrot.slane %v3690_v20, 1 }
 0x9e2   :  { %v3692_v38 = vadd.f32 %v3691_v13, %v3690_v20 }
 0x9e4   :  { %v3693_v43 = vmul.f32 0.5, %v3692_v38 }
 0x9e6   :  { %v3695_v0 = vadd.f32 1e-05, %v3693_v43 }
 0x9e8   :  { %4235 = vrsqrt.f32 %v3695_v0 }
 0x9e9   :  { %4237 = vpow2.f32 %v3584_v55 }
 0x9f2   :  { %v4236_v37 = vpop.eup %4235 }
 0x9f3   :  { %v3697_v63 = vmul.f32 %v4236_v37, %v3694_v17  ;;  %v4238_v62 = vpop.eup %4237 }
 0x9f4   :  { %v3586_v2 = vsel %vm3579_vm10, %v4238_v62, 0.0 }
 0x9f5   :  { %v3701_v35 = vrot.slane %v3697_v63, %v6608_v41 }
 0x9f7   :  { %v3702_v45 = vmul.f32 %v3701_v35, %v3684_v24 }
 0x9f9   :  { %v3708_v7 = vadd.f32 %v3924_v23, %v3702_v45 }
 0x9fb   :  { %vm3709_vm6 = vcmp.ge.f32.partialorder %v3708_v7, 0.0  ;;  %v3710_v16 = vmul.f32 0.01, %v3708_v7 }
 0x9fd   :  { %v3711_v9 = vsel %vm3709_vm6, %v3708_v7, %v3710_v16 }
 0x9fe   :  { %v3712_v5 = vsel %vm3675_vm5, %v3711_v9, -inf }
 0x9ff   :  { %3713 = vmax.xlane.f32.xlu1 %v3712_v5 }
 0xa03   :  { %3587 = vadd.xlane.f32.xlu1 %v3586_v2 }
 0xa8c   :  { %v3714_v41 = vpop.xlane.xlu1 %3713 }
 0xa8d   :  { %v3715_v51 = vsub.f32 %v3711_v9, %v3714_v41 }
 0xa8f   :  { %v3716_v46 = vmul.f32 1.442695, %v3715_v51 }
 0xa90   :  { %v3588_v44 = vpop.xlane.xlu1 %3587 }
 0xa91   :  { %4239 = vpow2.f32 %v3716_v46 }
 0xa92   :  { %4241 = vrcp.f32 %v3588_v44 }
 0xa9b   :  { %v4240_v4 = vpop.eup %4239 }
 0xa9c   :  { %v4242_v53 = vpop.eup %4241  ;;  %v3718_v29 = vsel %vm3675_vm5, %v4240_v4, 0.0 }
 0xa9d   :  { %v3590_v14 = vmul.f32 %v4242_v53, %v4238_v62  ;;  %3719 = vadd.xlane.f32.xlu0 %v3718_v29 }
 0xa9f   :  { %3724 = vst.msk [vmem:[%s6442_s13] sm:$0x3] %vm3579_vm10, %v3590_v14 }
 0xb2a   :  { %v3720_v31 = vpop.xlane.xlu0 %3719 }
 0xb2b   :  { %4243 = vrcp.f32 %v3720_v31 }
 0xb35   :  { %v4244_v52 = vpop.eup %4243 }
 0xb36   :  { %v3722_v3 = vmul.f32 %v4244_v52, %v4240_v4 }
 0xb38   :  { %3726 = vrot.lane.b32.xlu0 %v3722_v3, %s4257_s19 }
 0xbaa   :  { %v3727_v61 = vpop.permute.xlu0 %3726 }
 0xbab   :  { %3730 = vst.msk [vmem:[%s6442_s13] sm:$0x3] %vm3729_vm2, %v3727_v61 }

</bundles_post_ra>
